<compile_context>
chip_gen: v7x
topology: tpu7x:2x2x1
jax: 0.10.0
libtpu: 0.0.40
codegen_flags: <defaults>
</compile_context>

<pallas_src>
import numpy as np

import jax
import jax.numpy as jnp
from jax.experimental import pallas as pl
from jax.experimental.pallas import tpu as pltpu


# ----------------------------- config (small) -----------------------------
IMG = 32                      # input spatial size
CIN = 3                       # input channels
EMBED = [8, 16, 24, 32]       # patch-embedding conv channels (LeViT-128S: 16,32,64,128)
DIM = EMBED[-1]               # transformer hidden size
HEADS = 2
KEY_DIM = 8
RATIO = 2                     # attention ratio (dv = RATIO * dk)
MLP_RATIO = 2
DEPTH = 2                     # blocks in the (single) stage
CLASSES = 2
GRID = IMG // 16              # spatial after 4 stride-2 convs -> 2
N_TOK = GRID * GRID           # 4 tokens
D_K = KEY_DIM
D_V = KEY_DIM * RATIO
SEG = 2 * D_K + D_V           # per-head qkv width (q|k|v)
QKV_OUT = HEADS * SEG
P1 = (IMG // 2) ** 2          # positions per image after conv1 (16x16 = 256)


# ------------------------------ kernel helpers ------------------------------
def _hardswish(x):
    return x * jnp.clip(x + 3.0, 0.0, 6.0) * (1.0 / 6.0)


def _conv_stage(x_bf16, s_ref, w_ref, t_ref, act):
    """conv3x3 stride2 pad1 + folded BN (+ hardswish).

    x_bf16 : (P_in, C_in) bf16, rows = spatial positions, channels on lanes
    s_ref  : (9, P_out, P_in) bf16 constant 0/1 spatial selection matrices
    w_ref  : (9*C_in, C_out)  bf16 weights with BN scale folded in (tap-major rows)
    t_ref  : (1, C_out)       f32 folded BN shift
    """
    gathered = [
        jnp.dot(s_ref[tap], x_bf16,
                preferred_element_type=jnp.float32).astype(jnp.bfloat16)
        for tap in range(9)
    ]
    col = jnp.concatenate(gathered, axis=-1)                      # (P_out, 9*C_in) bf16
    y = jnp.dot(col, w_ref[...], preferred_element_type=jnp.float32) + t_ref[...]
    return _hardswish(y) if act else y                            # f32


# --------------------------- the per-image fused kernel ---------------------------
def _levit_kernel(col1_ref, w1_ref, t1_ref,
                  s2_ref, w2_ref, t2_ref,
                  s3_ref, w3_ref, t3_ref,
                  s4_ref, w4_ref, t4_ref,
                  qkv_w_ref, qkv_t_ref, bias_ref,
                  proj_w_ref, proj_t_ref,
                  up_w_ref, up_t_ref, down_w_ref, down_t_ref,
                  head_w_ref, head_t_ref,
                  o_ref):
    # ---- patch embedding stage 1: conv1 (wrapper-provided im2col) + BN + hardswish ----
    h = jnp.dot(col1_ref[0], w1_ref[...],
                preferred_element_type=jnp.float32) + t1_ref[...]
    h = _hardswish(h)                                             # (256, 8) f32

    # ---- patch embedding stages 2-4 ----
    h = _conv_stage(h.astype(jnp.bfloat16), s2_ref, w2_ref, t2_ref, act=True)    # (64, 16)
    h = _conv_stage(h.astype(jnp.bfloat16), s3_ref, w3_ref, t3_ref, act=True)    # (16, 24)
    tok = _conv_stage(h.astype(jnp.bfloat16), s4_ref, w4_ref, t4_ref, act=False)  # (4, 32) f32

    # ---- transformer stage: DEPTH x (attention + MLP), residual stream in f32 ----
    for d in range(DEPTH):
        # fused qkv: one matmul per block, per-head q/k/v sliced from the 64-lane result
        qkv = jnp.dot(tok.astype(jnp.bfloat16), qkv_w_ref[d],
                      preferred_element_type=jnp.float32) + qkv_t_ref[d]   # (4, 64)
        head_outs = []
        for hh in range(HEADS):
            base = hh * SEG
            q = qkv[:, base:base + D_K]                           # scale folded into weights
            k = qkv[:, base + D_K:base + 2 * D_K]
            v = qkv[:, base + 2 * D_K:base + SEG]
            s = jax.lax.dot_general(q, k, (((1,), (1,)), ((), ())),
                                    preferred_element_type=jnp.float32)
            s = s + bias_ref[d * HEADS + hh]                      # learned relative bias
            m = jnp.max(s, axis=-1, keepdims=True)
            p = jnp.exp(s - m)
            p = p * pl.reciprocal(jnp.sum(p, axis=-1, keepdims=True), approx=True)
            head_outs.append(jnp.dot(p, v, preferred_element_type=jnp.float32))
        att = _hardswish(jnp.concatenate(head_outs, axis=-1)).astype(jnp.bfloat16)
        tok = tok + jnp.dot(att, proj_w_ref[d],
                            preferred_element_type=jnp.float32) + proj_t_ref[d]

        up = jnp.dot(tok.astype(jnp.bfloat16), up_w_ref[d],
                     preferred_element_type=jnp.float32) + up_t_ref[d]
        up = _hardswish(up).astype(jnp.bfloat16)
        tok = tok + jnp.dot(up, down_w_ref[d],
                            preferred_element_type=jnp.float32) + down_t_ref[d]

    # ---- head: mean-pool (1/N folded into head_w), BN folded into the classifier ----
    pooled = jnp.broadcast_to(jnp.sum(tok, axis=0, keepdims=True), (8, DIM))
    logits = jnp.dot(pooled, head_w_ref[...],
                     preferred_element_type=jnp.float32) + head_t_ref[...]   # (8, CLASSES)
    o_ref[0] = logits                                             # one full-block store


# --------------------------------- JAX glue ---------------------------------
def _im2col_stride2(x):
    """NHWC -> (B, Ho*Wo, 9*C) patches of a 3x3/stride2/pad1 conv (one-time input prep)."""
    b, h, w, c = x.shape
    ho, wo = h // 2, w // 2
    xp = jnp.pad(x, ((0, 0), (1, 1), (1, 1), (0, 0)))
    taps = [xp[:, di:di + 2 * ho:2, dj:dj + 2 * wo:2, :]
            for di in range(3) for dj in range(3)]
    col = jnp.stack(taps, axis=3)                                 # (B, Ho, Wo, 9, C)
    return col.reshape(b, ho * wo, 9 * c)


_PARAM_ORDER = ("w1", "t1", "s2", "w2", "t2", "s3", "w3", "t3", "s4", "w4", "t4",
                "qkv_w", "qkv_t", "bias", "proj_w", "proj_t",
                "up_w", "up_t", "down_w", "down_t", "head_w", "head_t")


def _const_spec(arr):
    zeros = (0,) * arr.ndim
    return pl.BlockSpec(arr.shape, lambda b, z=zeros: z)          # VMEM-resident, never re-DMA'd


def image_classifier_forward(x_nchw, params):
    b = x_nchw.shape[0]
    x = jnp.transpose(x_nchw, (0, 2, 3, 1))                       # channels-last, once
    col1 = _im2col_stride2(x).astype(jnp.bfloat16)                # (B, 256, 27)

    args = (col1,) + tuple(params[k] for k in _PARAM_ORDER)
    in_specs = [pl.BlockSpec((1, P1, 9 * CIN), lambda bb: (bb, 0, 0))]
    in_specs += [_const_spec(params[k]) for k in _PARAM_ORDER]

    out = pl.pallas_call(
        _levit_kernel,
        grid=(b,),
        out_shape=jax.ShapeDtypeStruct((b, 8, CLASSES), jnp.float32),
        in_specs=in_specs,
        out_specs=pl.BlockSpec((1, 8, CLASSES), lambda bb: (bb, 0, 0)),
        compiler_params=pltpu.CompilerParams(dimension_semantics=("parallel",)),
    )(*args)
    return out[:, 0, :]                                           # (B, CLASSES)


# ------------------------------ deterministic params ------------------------------
def _make_conv_select(h_in, w_in):
    """0/1 selection matrices implementing the spatial gather of conv3x3/s2/p1."""
    h_out, w_out = h_in // 2, w_in // 2
    sel = np.zeros((9, h_out * w_out, h_in * w_in), np.float32)
    for di in range(3):
        for dj in range(3):
            t = di * 3 + dj
            for ho in range(h_out):
                hi = 2 * ho + di - 1
                if not (0 <= hi < h_in):
                    continue
                for wo in range(w_out):
                    wi = 2 * wo + dj - 1
                    if 0 <= wi < w_in:
                        sel[t, ho * w_out + wo, hi * w_in + wi] = 1.0
    return jnp.asarray(sel)


def _attention_bias_index():
    """LeViT-style relative-position bias indexing for the GRIDxGRID token grid."""
    pts = [(i, j) for i in range(GRID) for j in range(GRID)]
    offsets, idx = {}, []
    for p1 in pts:
        row = []
        for p2 in pts:
            off = (abs(p1[0] - p2[0]), abs(p1[1] - p2[1]))
            if off not in offsets:
                offsets[off] = len(offsets)
            row.append(offsets[off])
        idx.append(row)
    return np.asarray(idx, np.int32), len(offsets)


def init_params(key):
    keys = iter(jax.random.split(key, 128))

    def w(shape, s=0.1):
        return jax.random.normal(next(keys), shape, jnp.float32) * s

    def bn(n):
        g = 1.0 + 0.1 * jax.random.normal(next(keys), (n,), jnp.float32)
        beta = 0.1 * jax.random.normal(next(keys), (n,), jnp.float32)
        mean = 0.1 * jax.random.normal(next(keys), (n,), jnp.float32)
        var = jnp.abs(1.0 + 0.1 * jax.random.normal(next(keys), (n,), jnp.float32))
        sc = g / jnp.sqrt(var + 1e-5)
        sh = beta - mean * sc
        return sc, sh

    p = {}
    # patch-embedding convs: HWIO weights, eval-BN scale folded into weights, bf16 store.
    chans = [CIN] + EMBED
    spatial = [IMG, IMG // 2, IMG // 4, IMG // 8]
    for li in range(4):
        cin, cout = chans[li], chans[li + 1]
        wc = w((3, 3, cin, cout))
        sc, sh = bn(cout)
        wf = (wc * sc).reshape(9 * cin, cout)                     # rows = (tap, cin), im2col order
        p[f"w{li + 1}"] = wf.astype(jnp.bfloat16)
        p[f"t{li + 1}"] = sh.reshape(1, cout)
        if li > 0:
            p[f"s{li + 1}"] = _make_conv_select(spatial[li], spatial[li]).astype(jnp.bfloat16)

    bias_idx, n_off = _attention_bias_index()
    scale = D_K ** -0.5
    col_scale = np.ones((QKV_OUT,), np.float32)
    for hh in range(HEADS):                                       # fold attn scale into q cols
        col_scale[hh * SEG: hh * SEG + D_K] = scale
    col_scale = jnp.asarray(col_scale)

    qkv_w, qkv_t, bias_l = [], [], []
    proj_w, proj_t, up_w, up_t, down_w, down_t = [], [], [], [], [], []
    for _ in range(DEPTH):
        # fused qkv Linear_BN, head-major [q|k|v] column layout
        wq = w((DIM, QKV_OUT))
        sc, sh = bn(QKV_OUT)
        qkv_w.append((wq * sc * col_scale).astype(jnp.bfloat16))
        qkv_t.append((sh * col_scale).reshape(1, QKV_OUT))

        tbl = w((HEADS, n_off), s=0.5)                            # learned attention biases
        gathered = tbl[:, bias_idx]                               # (HEADS, N, N)
        for hh in range(HEADS):
            bias_l.append(gathered[hh])

        sc, sh = bn(DIM)
        proj_w.append((w((HEADS * D_V, DIM)) * sc).astype(jnp.bfloat16))
        proj_t.append(sh.reshape(1, DIM))

        sc, sh = bn(DIM * MLP_RATIO)
        up_w.append((w((DIM, DIM * MLP_RATIO)) * sc).astype(jnp.bfloat16))
        up_t.append(sh.reshape(1, DIM * MLP_RATIO))
        sc, sh = bn(DIM)
        down_w.append((w((DIM * MLP_RATIO, DIM)) * sc).astype(jnp.bfloat16))
        down_t.append(sh.reshape(1, DIM))

    p["qkv_w"] = jnp.stack(qkv_w); p["qkv_t"] = jnp.stack(qkv_t)
    p["bias"] = jnp.stack(bias_l)                                 # (DEPTH*HEADS, N, N) f32
    p["proj_w"] = jnp.stack(proj_w); p["proj_t"] = jnp.stack(proj_t)
    p["up_w"] = jnp.stack(up_w); p["up_t"] = jnp.stack(up_t)
    p["down_w"] = jnp.stack(down_w); p["down_t"] = jnp.stack(down_t)

    # classifier head: BatchNorm1d(DIM) folded into Linear(DIM, CLASSES); 1/N_TOK folded in.
    hs, ht = bn(DIM)
    hw = w((DIM, CLASSES))
    hb = w((CLASSES,))
    p["head_w"] = (hs[:, None] * hw) * (1.0 / N_TOK)
    p["head_t"] = (ht @ hw + hb).reshape(1, CLASSES)
    return p


# ------------------------------------ main ------------------------------------
if __name__ == "__main__":
    key = jax.random.PRNGKey(0)
    kx, kp = jax.random.split(key)
    x = jax.random.normal(kx, (2, CIN, IMG, IMG), jnp.float32)    # NCHW, like PyTorch
    params = init_params(kp)

    logits = jax.jit(image_classifier_forward)(x, params)
    logits = jax.block_until_ready(logits)
    assert logits.shape == (2, CLASSES) and bool(jnp.all(jnp.isfinite(logits)))
    print("KERNEL_OK")
</pallas_src>

<mosaic_0001>
module attributes {stable_mosaic.version = 11 : i64} {
  func.func @_levit_kernel(%arg0: i32, %arg1: memref<1x256x27xbf16, #tpu.memory_space<vmem>>, %arg2: memref<27x8xbf16, #tpu.memory_space<vmem>>, %arg3: memref<1x8xf32, #tpu.memory_space<vmem>>, %arg4: memref<9x64x256xbf16, #tpu.memory_space<vmem>>, %arg5: memref<72x16xbf16, #tpu.memory_space<vmem>>, %arg6: memref<1x16xf32, #tpu.memory_space<vmem>>, %arg7: memref<9x16x64xbf16, #tpu.memory_space<vmem>>, %arg8: memref<144x24xbf16, #tpu.memory_space<vmem>>, %arg9: memref<1x24xf32, #tpu.memory_space<vmem>>, %arg10: memref<9x4x16xbf16, #tpu.memory_space<vmem>>, %arg11: memref<216x32xbf16, #tpu.memory_space<vmem>>, %arg12: memref<1x32xf32, #tpu.memory_space<vmem>>, %arg13: memref<2x32x64xbf16, #tpu.memory_space<vmem>>, %arg14: memref<2x1x64xf32, #tpu.memory_space<vmem>>, %arg15: memref<4x4x4xf32, #tpu.memory_space<vmem>>, %arg16: memref<2x32x32xbf16, #tpu.memory_space<vmem>>, %arg17: memref<2x1x32xf32, #tpu.memory_space<vmem>>, %arg18: memref<2x32x64xbf16, #tpu.memory_space<vmem>>, %arg19: memref<2x1x64xf32, #tpu.memory_space<vmem>>, %arg20: memref<2x64x32xbf16, #tpu.memory_space<vmem>>, %arg21: memref<2x1x32xf32, #tpu.memory_space<vmem>>, %arg22: memref<32x2xf32, #tpu.memory_space<vmem>>, %arg23: memref<1x2xf32, #tpu.memory_space<vmem>>, %arg24: memref<1x8x2xf32, #tpu.memory_space<vmem>>) attributes {dimension_semantics = [#tpu.dimension_semantics<parallel>], iteration_bounds = array<i64: 2>, scalar_prefetch = 0 : i64, scratch_operands = 0 : i64, tpu.core_type = #tpu.core_type<tc>, window_params = [{transform_indices = @transform_0, window_bounds = array<i64: 1, 256, 27>}, {pipeline_mode = #tpu.pipeline_mode<synchronous>, transform_indices = @transform_1, window_bounds = array<i64: 27, 8>}, {pipeline_mode = #tpu.pipeline_mode<synchronous>, transform_indices = @transform_2, window_bounds = array<i64: 1, 8>}, {pipeline_mode = #tpu.pipeline_mode<synchronous>, transform_indices = @transform_3, window_bounds = array<i64: 9, 64, 256>}, {pipeline_mode = #tpu.pipeline_mode<synchronous>, transform_indices = @transform_4, window_bounds = array<i64: 72, 16>}, {pipeline_mode = #tpu.pipeline_mode<synchronous>, transform_indices = @transform_5, window_bounds = array<i64: 1, 16>}, {pipeline_mode = #tpu.pipeline_mode<synchronous>, transform_indices = @transform_6, window_bounds = array<i64: 9, 16, 64>}, {pipeline_mode = #tpu.pipeline_mode<synchronous>, transform_indices = @transform_7, window_bounds = array<i64: 144, 24>}, {pipeline_mode = #tpu.pipeline_mode<synchronous>, transform_indices = @transform_8, window_bounds = array<i64: 1, 24>}, {pipeline_mode = #tpu.pipeline_mode<synchronous>, transform_indices = @transform_9, window_bounds = array<i64: 9, 4, 16>}, {pipeline_mode = #tpu.pipeline_mode<synchronous>, transform_indices = @transform_10, window_bounds = array<i64: 216, 32>}, {pipeline_mode = #tpu.pipeline_mode<synchronous>, transform_indices = @transform_11, window_bounds = array<i64: 1, 32>}, {pipeline_mode = #tpu.pipeline_mode<synchronous>, transform_indices = @transform_12, window_bounds = array<i64: 2, 32, 64>}, {pipeline_mode = #tpu.pipeline_mode<synchronous>, transform_indices = @transform_13, window_bounds = array<i64: 2, 1, 64>}, {pipeline_mode = #tpu.pipeline_mode<synchronous>, transform_indices = @transform_14, window_bounds = array<i64: 4, 4, 4>}, {pipeline_mode = #tpu.pipeline_mode<synchronous>, transform_indices = @transform_15, window_bounds = array<i64: 2, 32, 32>}, {pipeline_mode = #tpu.pipeline_mode<synchronous>, transform_indices = @transform_16, window_bounds = array<i64: 2, 1, 32>}, {pipeline_mode = #tpu.pipeline_mode<synchronous>, transform_indices = @transform_17, window_bounds = array<i64: 2, 32, 64>}, {pipeline_mode = #tpu.pipeline_mode<synchronous>, transform_indices = @transform_18, window_bounds = array<i64: 2, 1, 64>}, {pipeline_mode = #tpu.pipeline_mode<synchronous>, transform_indices = @transform_19, window_bounds = array<i64: 2, 64, 32>}, {pipeline_mode = #tpu.pipeline_mode<synchronous>, transform_indices = @transform_20, window_bounds = array<i64: 2, 1, 32>}, {pipeline_mode = #tpu.pipeline_mode<synchronous>, transform_indices = @transform_21, window_bounds = array<i64: 32, 2>}, {pipeline_mode = #tpu.pipeline_mode<synchronous>, transform_indices = @transform_22, window_bounds = array<i64: 1, 2>}, {transform_indices = @transform_23, window_bounds = array<i64: 1, 8, 2>}]} {
    %c0 = arith.constant 0 : index
    %c0_0 = arith.constant 0 : index
    %c0_1 = arith.constant 0 : index
    %0 = vector.load %arg1[%c0, %c0_0, %c0_1] : memref<1x256x27xbf16, #tpu.memory_space<vmem>>, vector<1x256x27xbf16>
    %1 = vector.shape_cast %0 : vector<1x256x27xbf16> to vector<256x27xbf16>
    %c0_2 = arith.constant 0 : index
    %c0_3 = arith.constant 0 : index
    %2 = vector.load %arg2[%c0_2, %c0_3] : memref<27x8xbf16, #tpu.memory_space<vmem>>, vector<27x8xbf16>
    %cst = arith.constant dense<0.000000e+00> : vector<256x8xf32>
    %3 = tpu.matmul %1, %2, %cst {dimension_numbers = #tpu.dot_dimension_numbers<[1], [0], [0], [1], [0, 0, 1, 1], [], []>} : vector<256x27xbf16>, vector<27x8xbf16>, vector<256x8xf32> -> vector<256x8xf32>
    %c0_4 = arith.constant 0 : index
    %c0_5 = arith.constant 0 : index
    %4 = vector.load %arg3[%c0_4, %c0_5] : memref<1x8xf32, #tpu.memory_space<vmem>>, vector<1x8xf32>
    %5 = vector.broadcast %4 : vector<1x8xf32> to vector<256x8xf32>
    %6 = arith.addf %3, %5 : vector<256x8xf32>
    %cst_6 = arith.constant 3.000000e+00 : f32
    %7 = vector.broadcast %cst_6 : f32 to vector<256x8xf32>
    %8 = arith.addf %6, %7 : vector<256x8xf32>
    %cst_7 = arith.constant 0.000000e+00 : f32
    %cst_8 = arith.constant 6.000000e+00 : f32
    %9 = vector.broadcast %cst_7 : f32 to vector<256x8xf32>
    %10 = arith.maximumf %9, %8 : vector<256x8xf32>
    %11 = vector.broadcast %cst_8 : f32 to vector<256x8xf32>
    %12 = arith.minimumf %11, %10 : vector<256x8xf32>
    %13 = arith.mulf %6, %12 : vector<256x8xf32>
    %cst_9 = arith.constant 0.166666672 : f32
    %14 = vector.broadcast %cst_9 : f32 to vector<256x8xf32>
    %15 = arith.mulf %13, %14 : vector<256x8xf32>
    %16 = arith.truncf %15 : vector<256x8xf32> to vector<256x8xbf16>
    %c0_10 = arith.constant 0 : index
    %c0_11 = arith.constant 0 : index
    %c0_12 = arith.constant 0 : index
    %17 = vector.load %arg4[%c0_10, %c0_11, %c0_12] : memref<9x64x256xbf16, #tpu.memory_space<vmem>>, vector<1x64x256xbf16>
    %18 = vector.shape_cast %17 : vector<1x64x256xbf16> to vector<64x256xbf16>
    %cst_13 = arith.constant dense<0.000000e+00> : vector<64x8xf32>
    %19 = tpu.matmul %18, %16, %cst_13 {dimension_numbers = #tpu.dot_dimension_numbers<[1], [0], [0], [1], [0, 0, 1, 1], [], []>} : vector<64x256xbf16>, vector<256x8xbf16>, vector<64x8xf32> -> vector<64x8xf32>
    %20 = arith.truncf %19 : vector<64x8xf32> to vector<64x8xbf16>
    %c1 = arith.constant 1 : index
    %c0_14 = arith.constant 0 : index
    %c0_15 = arith.constant 0 : index
    %21 = vector.load %arg4[%c1, %c0_14, %c0_15] : memref<9x64x256xbf16, #tpu.memory_space<vmem>>, vector<1x64x256xbf16>
    %22 = vector.shape_cast %21 : vector<1x64x256xbf16> to vector<64x256xbf16>
    %cst_16 = arith.constant dense<0.000000e+00> : vector<64x8xf32>
    %23 = tpu.matmul %22, %16, %cst_16 {dimension_numbers = #tpu.dot_dimension_numbers<[1], [0], [0], [1], [0, 0, 1, 1], [], []>} : vector<64x256xbf16>, vector<256x8xbf16>, vector<64x8xf32> -> vector<64x8xf32>
    %24 = arith.truncf %23 : vector<64x8xf32> to vector<64x8xbf16>
    %c2 = arith.constant 2 : index
    %c0_17 = arith.constant 0 : index
    %c0_18 = arith.constant 0 : index
    %25 = vector.load %arg4[%c2, %c0_17, %c0_18] : memref<9x64x256xbf16, #tpu.memory_space<vmem>>, vector<1x64x256xbf16>
    %26 = vector.shape_cast %25 : vector<1x64x256xbf16> to vector<64x256xbf16>
    %cst_19 = arith.constant dense<0.000000e+00> : vector<64x8xf32>
    %27 = tpu.matmul %26, %16, %cst_19 {dimension_numbers = #tpu.dot_dimension_numbers<[1], [0], [0], [1], [0, 0, 1, 1], [], []>} : vector<64x256xbf16>, vector<256x8xbf16>, vector<64x8xf32> -> vector<64x8xf32>
    %28 = arith.truncf %27 : vector<64x8xf32> to vector<64x8xbf16>
    %c3 = arith.constant 3 : index
    %c0_20 = arith.constant 0 : index
    %c0_21 = arith.constant 0 : index
    %29 = vector.load %arg4[%c3, %c0_20, %c0_21] : memref<9x64x256xbf16, #tpu.memory_space<vmem>>, vector<1x64x256xbf16>
    %30 = vector.shape_cast %29 : vector<1x64x256xbf16> to vector<64x256xbf16>
    %cst_22 = arith.constant dense<0.000000e+00> : vector<64x8xf32>
    %31 = tpu.matmul %30, %16, %cst_22 {dimension_numbers = #tpu.dot_dimension_numbers<[1], [0], [0], [1], [0, 0, 1, 1], [], []>} : vector<64x256xbf16>, vector<256x8xbf16>, vector<64x8xf32> -> vector<64x8xf32>
    %32 = arith.truncf %31 : vector<64x8xf32> to vector<64x8xbf16>
    %c4 = arith.constant 4 : index
    %c0_23 = arith.constant 0 : index
    %c0_24 = arith.constant 0 : index
    %33 = vector.load %arg4[%c4, %c0_23, %c0_24] : memref<9x64x256xbf16, #tpu.memory_space<vmem>>, vector<1x64x256xbf16>
    %34 = vector.shape_cast %33 : vector<1x64x256xbf16> to vector<64x256xbf16>
    %cst_25 = arith.constant dense<0.000000e+00> : vector<64x8xf32>
    %35 = tpu.matmul %34, %16, %cst_25 {dimension_numbers = #tpu.dot_dimension_numbers<[1], [0], [0], [1], [0, 0, 1, 1], [], []>} : vector<64x256xbf16>, vector<256x8xbf16>, vector<64x8xf32> -> vector<64x8xf32>
    %36 = arith.truncf %35 : vector<64x8xf32> to vector<64x8xbf16>
    %c5 = arith.constant 5 : index
    %c0_26 = arith.constant 0 : index
    %c0_27 = arith.constant 0 : index
    %37 = vector.load %arg4[%c5, %c0_26, %c0_27] : memref<9x64x256xbf16, #tpu.memory_space<vmem>>, vector<1x64x256xbf16>
    %38 = vector.shape_cast %37 : vector<1x64x256xbf16> to vector<64x256xbf16>
    %cst_28 = arith.constant dense<0.000000e+00> : vector<64x8xf32>
    %39 = tpu.matmul %38, %16, %cst_28 {dimension_numbers = #tpu.dot_dimension_numbers<[1], [0], [0], [1], [0, 0, 1, 1], [], []>} : vector<64x256xbf16>, vector<256x8xbf16>, vector<64x8xf32> -> vector<64x8xf32>
    %40 = arith.truncf %39 : vector<64x8xf32> to vector<64x8xbf16>
    %c6 = arith.constant 6 : index
    %c0_29 = arith.constant 0 : index
    %c0_30 = arith.constant 0 : index
    %41 = vector.load %arg4[%c6, %c0_29, %c0_30] : memref<9x64x256xbf16, #tpu.memory_space<vmem>>, vector<1x64x256xbf16>
    %42 = vector.shape_cast %41 : vector<1x64x256xbf16> to vector<64x256xbf16>
    %cst_31 = arith.constant dense<0.000000e+00> : vector<64x8xf32>
    %43 = tpu.matmul %42, %16, %cst_31 {dimension_numbers = #tpu.dot_dimension_numbers<[1], [0], [0], [1], [0, 0, 1, 1], [], []>} : vector<64x256xbf16>, vector<256x8xbf16>, vector<64x8xf32> -> vector<64x8xf32>
    %44 = arith.truncf %43 : vector<64x8xf32> to vector<64x8xbf16>
    %c7 = arith.constant 7 : index
    %c0_32 = arith.constant 0 : index
    %c0_33 = arith.constant 0 : index
    %45 = vector.load %arg4[%c7, %c0_32, %c0_33] : memref<9x64x256xbf16, #tpu.memory_space<vmem>>, vector<1x64x256xbf16>
    %46 = vector.shape_cast %45 : vector<1x64x256xbf16> to vector<64x256xbf16>
    %cst_34 = arith.constant dense<0.000000e+00> : vector<64x8xf32>
    %47 = tpu.matmul %46, %16, %cst_34 {dimension_numbers = #tpu.dot_dimension_numbers<[1], [0], [0], [1], [0, 0, 1, 1], [], []>} : vector<64x256xbf16>, vector<256x8xbf16>, vector<64x8xf32> -> vector<64x8xf32>
    %48 = arith.truncf %47 : vector<64x8xf32> to vector<64x8xbf16>
    %c8 = arith.constant 8 : index
    %c0_35 = arith.constant 0 : index
    %c0_36 = arith.constant 0 : index
    %49 = vector.load %arg4[%c8, %c0_35, %c0_36] : memref<9x64x256xbf16, #tpu.memory_space<vmem>>, vector<1x64x256xbf16>
    %50 = vector.shape_cast %49 : vector<1x64x256xbf16> to vector<64x256xbf16>
    %cst_37 = arith.constant dense<0.000000e+00> : vector<64x8xf32>
    %51 = tpu.matmul %50, %16, %cst_37 {dimension_numbers = #tpu.dot_dimension_numbers<[1], [0], [0], [1], [0, 0, 1, 1], [], []>} : vector<64x256xbf16>, vector<256x8xbf16>, vector<64x8xf32> -> vector<64x8xf32>
    %52 = arith.truncf %51 : vector<64x8xf32> to vector<64x8xbf16>
    %53 = tpu.concatenate %20, %24, %28, %32, %36, %40, %44, %48, %52 in 1 : vector<64x8xbf16>, vector<64x8xbf16>, vector<64x8xbf16>, vector<64x8xbf16>, vector<64x8xbf16>, vector<64x8xbf16>, vector<64x8xbf16>, vector<64x8xbf16>, vector<64x8xbf16> -> vector<64x72xbf16>
    %c0_38 = arith.constant 0 : index
    %c0_39 = arith.constant 0 : index
    %54 = vector.load %arg5[%c0_38, %c0_39] : memref<72x16xbf16, #tpu.memory_space<vmem>>, vector<72x16xbf16>
    %cst_40 = arith.constant dense<0.000000e+00> : vector<64x16xf32>
    %55 = tpu.matmul %53, %54, %cst_40 {dimension_numbers = #tpu.dot_dimension_numbers<[1], [0], [0], [1], [0, 0, 1, 1], [], []>} : vector<64x72xbf16>, vector<72x16xbf16>, vector<64x16xf32> -> vector<64x16xf32>
    %c0_41 = arith.constant 0 : index
    %c0_42 = arith.constant 0 : index
    %56 = vector.load %arg6[%c0_41, %c0_42] : memref<1x16xf32, #tpu.memory_space<vmem>>, vector<1x16xf32>
    %57 = vector.broadcast %56 : vector<1x16xf32> to vector<64x16xf32>
    %58 = arith.addf %55, %57 : vector<64x16xf32>
    %cst_43 = arith.constant 3.000000e+00 : f32
    %59 = vector.broadcast %cst_43 : f32 to vector<64x16xf32>
    %60 = arith.addf %58, %59 : vector<64x16xf32>
    %cst_44 = arith.constant 0.000000e+00 : f32
    %cst_45 = arith.constant 6.000000e+00 : f32
    %61 = vector.broadcast %cst_44 : f32 to vector<64x16xf32>
    %62 = arith.maximumf %61, %60 : vector<64x16xf32>
    %63 = vector.broadcast %cst_45 : f32 to vector<64x16xf32>
    %64 = arith.minimumf %63, %62 : vector<64x16xf32>
    %65 = arith.mulf %58, %64 : vector<64x16xf32>
    %cst_46 = arith.constant 0.166666672 : f32
    %66 = vector.broadcast %cst_46 : f32 to vector<64x16xf32>
    %67 = arith.mulf %65, %66 : vector<64x16xf32>
    %68 = arith.truncf %67 : vector<64x16xf32> to vector<64x16xbf16>
    %c0_47 = arith.constant 0 : index
    %c0_48 = arith.constant 0 : index
    %c0_49 = arith.constant 0 : index
    %69 = vector.load %arg7[%c0_47, %c0_48, %c0_49] : memref<9x16x64xbf16, #tpu.memory_space<vmem>>, vector<1x16x64xbf16>
    %70 = vector.shape_cast %69 : vector<1x16x64xbf16> to vector<16x64xbf16>
    %cst_50 = arith.constant dense<0.000000e+00> : vector<16x16xf32>
    %71 = tpu.matmul %70, %68, %cst_50 {dimension_numbers = #tpu.dot_dimension_numbers<[1], [0], [0], [1], [0, 0, 1, 1], [], []>} : vector<16x64xbf16>, vector<64x16xbf16>, vector<16x16xf32> -> vector<16x16xf32>
    %72 = arith.truncf %71 : vector<16x16xf32> to vector<16x16xbf16>
    %c1_51 = arith.constant 1 : index
    %c0_52 = arith.constant 0 : index
    %c0_53 = arith.constant 0 : index
    %73 = vector.load %arg7[%c1_51, %c0_52, %c0_53] : memref<9x16x64xbf16, #tpu.memory_space<vmem>>, vector<1x16x64xbf16>
    %74 = vector.shape_cast %73 : vector<1x16x64xbf16> to vector<16x64xbf16>
    %cst_54 = arith.constant dense<0.000000e+00> : vector<16x16xf32>
    %75 = tpu.matmul %74, %68, %cst_54 {dimension_numbers = #tpu.dot_dimension_numbers<[1], [0], [0], [1], [0, 0, 1, 1], [], []>} : vector<16x64xbf16>, vector<64x16xbf16>, vector<16x16xf32> -> vector<16x16xf32>
    %76 = arith.truncf %75 : vector<16x16xf32> to vector<16x16xbf16>
    %c2_55 = arith.constant 2 : index
    %c0_56 = arith.constant 0 : index
    %c0_57 = arith.constant 0 : index
    %77 = vector.load %arg7[%c2_55, %c0_56, %c0_57] : memref<9x16x64xbf16, #tpu.memory_space<vmem>>, vector<1x16x64xbf16>
    %78 = vector.shape_cast %77 : vector<1x16x64xbf16> to vector<16x64xbf16>
    %cst_58 = arith.constant dense<0.000000e+00> : vector<16x16xf32>
    %79 = tpu.matmul %78, %68, %cst_58 {dimension_numbers = #tpu.dot_dimension_numbers<[1], [0], [0], [1], [0, 0, 1, 1], [], []>} : vector<16x64xbf16>, vector<64x16xbf16>, vector<16x16xf32> -> vector<16x16xf32>
    %80 = arith.truncf %79 : vector<16x16xf32> to vector<16x16xbf16>
    %c3_59 = arith.constant 3 : index
    %c0_60 = arith.constant 0 : index
    %c0_61 = arith.constant 0 : index
    %81 = vector.load %arg7[%c3_59, %c0_60, %c0_61] : memref<9x16x64xbf16, #tpu.memory_space<vmem>>, vector<1x16x64xbf16>
    %82 = vector.shape_cast %81 : vector<1x16x64xbf16> to vector<16x64xbf16>
    %cst_62 = arith.constant dense<0.000000e+00> : vector<16x16xf32>
    %83 = tpu.matmul %82, %68, %cst_62 {dimension_numbers = #tpu.dot_dimension_numbers<[1], [0], [0], [1], [0, 0, 1, 1], [], []>} : vector<16x64xbf16>, vector<64x16xbf16>, vector<16x16xf32> -> vector<16x16xf32>
    %84 = arith.truncf %83 : vector<16x16xf32> to vector<16x16xbf16>
    %c4_63 = arith.constant 4 : index
    %c0_64 = arith.constant 0 : index
    %c0_65 = arith.constant 0 : index
    %85 = vector.load %arg7[%c4_63, %c0_64, %c0_65] : memref<9x16x64xbf16, #tpu.memory_space<vmem>>, vector<1x16x64xbf16>
    %86 = vector.shape_cast %85 : vector<1x16x64xbf16> to vector<16x64xbf16>
    %cst_66 = arith.constant dense<0.000000e+00> : vector<16x16xf32>
    %87 = tpu.matmul %86, %68, %cst_66 {dimension_numbers = #tpu.dot_dimension_numbers<[1], [0], [0], [1], [0, 0, 1, 1], [], []>} : vector<16x64xbf16>, vector<64x16xbf16>, vector<16x16xf32> -> vector<16x16xf32>
    %88 = arith.truncf %87 : vector<16x16xf32> to vector<16x16xbf16>
    %c5_67 = arith.constant 5 : index
    %c0_68 = arith.constant 0 : index
    %c0_69 = arith.constant 0 : index
    %89 = vector.load %arg7[%c5_67, %c0_68, %c0_69] : memref<9x16x64xbf16, #tpu.memory_space<vmem>>, vector<1x16x64xbf16>
    %90 = vector.shape_cast %89 : vector<1x16x64xbf16> to vector<16x64xbf16>
    %cst_70 = arith.constant dense<0.000000e+00> : vector<16x16xf32>
    %91 = tpu.matmul %90, %68, %cst_70 {dimension_numbers = #tpu.dot_dimension_numbers<[1], [0], [0], [1], [0, 0, 1, 1], [], []>} : vector<16x64xbf16>, vector<64x16xbf16>, vector<16x16xf32> -> vector<16x16xf32>
    %92 = arith.truncf %91 : vector<16x16xf32> to vector<16x16xbf16>
    %c6_71 = arith.constant 6 : index
    %c0_72 = arith.constant 0 : index
    %c0_73 = arith.constant 0 : index
    %93 = vector.load %arg7[%c6_71, %c0_72, %c0_73] : memref<9x16x64xbf16, #tpu.memory_space<vmem>>, vector<1x16x64xbf16>
    %94 = vector.shape_cast %93 : vector<1x16x64xbf16> to vector<16x64xbf16>
    %cst_74 = arith.constant dense<0.000000e+00> : vector<16x16xf32>
    %95 = tpu.matmul %94, %68, %cst_74 {dimension_numbers = #tpu.dot_dimension_numbers<[1], [0], [0], [1], [0, 0, 1, 1], [], []>} : vector<16x64xbf16>, vector<64x16xbf16>, vector<16x16xf32> -> vector<16x16xf32>
    %96 = arith.truncf %95 : vector<16x16xf32> to vector<16x16xbf16>
    %c7_75 = arith.constant 7 : index
    %c0_76 = arith.constant 0 : index
    %c0_77 = arith.constant 0 : index
    %97 = vector.load %arg7[%c7_75, %c0_76, %c0_77] : memref<9x16x64xbf16, #tpu.memory_space<vmem>>, vector<1x16x64xbf16>
    %98 = vector.shape_cast %97 : vector<1x16x64xbf16> to vector<16x64xbf16>
    %cst_78 = arith.constant dense<0.000000e+00> : vector<16x16xf32>
    %99 = tpu.matmul %98, %68, %cst_78 {dimension_numbers = #tpu.dot_dimension_numbers<[1], [0], [0], [1], [0, 0, 1, 1], [], []>} : vector<16x64xbf16>, vector<64x16xbf16>, vector<16x16xf32> -> vector<16x16xf32>
    %100 = arith.truncf %99 : vector<16x16xf32> to vector<16x16xbf16>
    %c8_79 = arith.constant 8 : index
    %c0_80 = arith.constant 0 : index
    %c0_81 = arith.constant 0 : index
    %101 = vector.load %arg7[%c8_79, %c0_80, %c0_81] : memref<9x16x64xbf16, #tpu.memory_space<vmem>>, vector<1x16x64xbf16>
    %102 = vector.shape_cast %101 : vector<1x16x64xbf16> to vector<16x64xbf16>
    %cst_82 = arith.constant dense<0.000000e+00> : vector<16x16xf32>
    %103 = tpu.matmul %102, %68, %cst_82 {dimension_numbers = #tpu.dot_dimension_numbers<[1], [0], [0], [1], [0, 0, 1, 1], [], []>} : vector<16x64xbf16>, vector<64x16xbf16>, vector<16x16xf32> -> vector<16x16xf32>
    %104 = arith.truncf %103 : vector<16x16xf32> to vector<16x16xbf16>
    %105 = tpu.concatenate %72, %76, %80, %84, %88, %92, %96, %100, %104 in 1 : vector<16x16xbf16>, vector<16x16xbf16>, vector<16x16xbf16>, vector<16x16xbf16>, vector<16x16xbf16>, vector<16x16xbf16>, vector<16x16xbf16>, vector<16x16xbf16>, vector<16x16xbf16> -> vector<16x144xbf16>
    %c0_83 = arith.constant 0 : index
    %c0_84 = arith.constant 0 : index
    %106 = vector.load %arg8[%c0_83, %c0_84] : memref<144x24xbf16, #tpu.memory_space<vmem>>, vector<144x24xbf16>
    %cst_85 = arith.constant dense<0.000000e+00> : vector<16x24xf32>
    %107 = tpu.matmul %105, %106, %cst_85 {dimension_numbers = #tpu.dot_dimension_numbers<[1], [0], [0], [1], [0, 0, 1, 1], [], []>} : vector<16x144xbf16>, vector<144x24xbf16>, vector<16x24xf32> -> vector<16x24xf32>
    %c0_86 = arith.constant 0 : index
    %c0_87 = arith.constant 0 : index
    %108 = vector.load %arg9[%c0_86, %c0_87] : memref<1x24xf32, #tpu.memory_space<vmem>>, vector<1x24xf32>
    %109 = vector.broadcast %108 : vector<1x24xf32> to vector<16x24xf32>
    %110 = arith.addf %107, %109 : vector<16x24xf32>
    %cst_88 = arith.constant 3.000000e+00 : f32
    %111 = vector.broadcast %cst_88 : f32 to vector<16x24xf32>
    %112 = arith.addf %110, %111 : vector<16x24xf32>
    %cst_89 = arith.constant 0.000000e+00 : f32
    %cst_90 = arith.constant 6.000000e+00 : f32
    %113 = vector.broadcast %cst_89 : f32 to vector<16x24xf32>
    %114 = arith.maximumf %113, %112 : vector<16x24xf32>
    %115 = vector.broadcast %cst_90 : f32 to vector<16x24xf32>
    %116 = arith.minimumf %115, %114 : vector<16x24xf32>
    %117 = arith.mulf %110, %116 : vector<16x24xf32>
    %cst_91 = arith.constant 0.166666672 : f32
    %118 = vector.broadcast %cst_91 : f32 to vector<16x24xf32>
    %119 = arith.mulf %117, %118 : vector<16x24xf32>
    %120 = arith.truncf %119 : vector<16x24xf32> to vector<16x24xbf16>
    %c0_92 = arith.constant 0 : index
    %c0_93 = arith.constant 0 : index
    %c0_94 = arith.constant 0 : index
    %121 = vector.load %arg10[%c0_92, %c0_93, %c0_94] : memref<9x4x16xbf16, #tpu.memory_space<vmem>>, vector<1x4x16xbf16>
    %122 = vector.shape_cast %121 : vector<1x4x16xbf16> to vector<4x16xbf16>
    %cst_95 = arith.constant dense<0.000000e+00> : vector<4x24xf32>
    %123 = tpu.matmul %122, %120, %cst_95 {dimension_numbers = #tpu.dot_dimension_numbers<[1], [0], [0], [1], [0, 0, 1, 1], [], []>} : vector<4x16xbf16>, vector<16x24xbf16>, vector<4x24xf32> -> vector<4x24xf32>
    %124 = arith.truncf %123 : vector<4x24xf32> to vector<4x24xbf16>
    %c1_96 = arith.constant 1 : index
    %c0_97 = arith.constant 0 : index
    %c0_98 = arith.constant 0 : index
    %125 = vector.load %arg10[%c1_96, %c0_97, %c0_98] : memref<9x4x16xbf16, #tpu.memory_space<vmem>>, vector<1x4x16xbf16>
    %126 = vector.shape_cast %125 : vector<1x4x16xbf16> to vector<4x16xbf16>
    %cst_99 = arith.constant dense<0.000000e+00> : vector<4x24xf32>
    %127 = tpu.matmul %126, %120, %cst_99 {dimension_numbers = #tpu.dot_dimension_numbers<[1], [0], [0], [1], [0, 0, 1, 1], [], []>} : vector<4x16xbf16>, vector<16x24xbf16>, vector<4x24xf32> -> vector<4x24xf32>
    %128 = arith.truncf %127 : vector<4x24xf32> to vector<4x24xbf16>
    %c2_100 = arith.constant 2 : index
    %c0_101 = arith.constant 0 : index
    %c0_102 = arith.constant 0 : index
    %129 = vector.load %arg10[%c2_100, %c0_101, %c0_102] : memref<9x4x16xbf16, #tpu.memory_space<vmem>>, vector<1x4x16xbf16>
    %130 = vector.shape_cast %129 : vector<1x4x16xbf16> to vector<4x16xbf16>
    %cst_103 = arith.constant dense<0.000000e+00> : vector<4x24xf32>
    %131 = tpu.matmul %130, %120, %cst_103 {dimension_numbers = #tpu.dot_dimension_numbers<[1], [0], [0], [1], [0, 0, 1, 1], [], []>} : vector<4x16xbf16>, vector<16x24xbf16>, vector<4x24xf32> -> vector<4x24xf32>
    %132 = arith.truncf %131 : vector<4x24xf32> to vector<4x24xbf16>
    %c3_104 = arith.constant 3 : index
    %c0_105 = arith.constant 0 : index
    %c0_106 = arith.constant 0 : index
    %133 = vector.load %arg10[%c3_104, %c0_105, %c0_106] : memref<9x4x16xbf16, #tpu.memory_space<vmem>>, vector<1x4x16xbf16>
    %134 = vector.shape_cast %133 : vector<1x4x16xbf16> to vector<4x16xbf16>
    %cst_107 = arith.constant dense<0.000000e+00> : vector<4x24xf32>
    %135 = tpu.matmul %134, %120, %cst_107 {dimension_numbers = #tpu.dot_dimension_numbers<[1], [0], [0], [1], [0, 0, 1, 1], [], []>} : vector<4x16xbf16>, vector<16x24xbf16>, vector<4x24xf32> -> vector<4x24xf32>
    %136 = arith.truncf %135 : vector<4x24xf32> to vector<4x24xbf16>
    %c4_108 = arith.constant 4 : index
    %c0_109 = arith.constant 0 : index
    %c0_110 = arith.constant 0 : index
    %137 = vector.load %arg10[%c4_108, %c0_109, %c0_110] : memref<9x4x16xbf16, #tpu.memory_space<vmem>>, vector<1x4x16xbf16>
    %138 = vector.shape_cast %137 : vector<1x4x16xbf16> to vector<4x16xbf16>
    %cst_111 = arith.constant dense<0.000000e+00> : vector<4x24xf32>
    %139 = tpu.matmul %138, %120, %cst_111 {dimension_numbers = #tpu.dot_dimension_numbers<[1], [0], [0], [1], [0, 0, 1, 1], [], []>} : vector<4x16xbf16>, vector<16x24xbf16>, vector<4x24xf32> -> vector<4x24xf32>
    %140 = arith.truncf %139 : vector<4x24xf32> to vector<4x24xbf16>
    %c5_112 = arith.constant 5 : index
    %c0_113 = arith.constant 0 : index
    %c0_114 = arith.constant 0 : index
    %141 = vector.load %arg10[%c5_112, %c0_113, %c0_114] : memref<9x4x16xbf16, #tpu.memory_space<vmem>>, vector<1x4x16xbf16>
    %142 = vector.shape_cast %141 : vector<1x4x16xbf16> to vector<4x16xbf16>
    %cst_115 = arith.constant dense<0.000000e+00> : vector<4x24xf32>
    %143 = tpu.matmul %142, %120, %cst_115 {dimension_numbers = #tpu.dot_dimension_numbers<[1], [0], [0], [1], [0, 0, 1, 1], [], []>} : vector<4x16xbf16>, vector<16x24xbf16>, vector<4x24xf32> -> vector<4x24xf32>
    %144 = arith.truncf %143 : vector<4x24xf32> to vector<4x24xbf16>
    %c6_116 = arith.constant 6 : index
    %c0_117 = arith.constant 0 : index
    %c0_118 = arith.constant 0 : index
    %145 = vector.load %arg10[%c6_116, %c0_117, %c0_118] : memref<9x4x16xbf16, #tpu.memory_space<vmem>>, vector<1x4x16xbf16>
    %146 = vector.shape_cast %145 : vector<1x4x16xbf16> to vector<4x16xbf16>
    %cst_119 = arith.constant dense<0.000000e+00> : vector<4x24xf32>
    %147 = tpu.matmul %146, %120, %cst_119 {dimension_numbers = #tpu.dot_dimension_numbers<[1], [0], [0], [1], [0, 0, 1, 1], [], []>} : vector<4x16xbf16>, vector<16x24xbf16>, vector<4x24xf32> -> vector<4x24xf32>
    %148 = arith.truncf %147 : vector<4x24xf32> to vector<4x24xbf16>
    %c7_120 = arith.constant 7 : index
    %c0_121 = arith.constant 0 : index
    %c0_122 = arith.constant 0 : index
    %149 = vector.load %arg10[%c7_120, %c0_121, %c0_122] : memref<9x4x16xbf16, #tpu.memory_space<vmem>>, vector<1x4x16xbf16>
    %150 = vector.shape_cast %149 : vector<1x4x16xbf16> to vector<4x16xbf16>
    %cst_123 = arith.constant dense<0.000000e+00> : vector<4x24xf32>
    %151 = tpu.matmul %150, %120, %cst_123 {dimension_numbers = #tpu.dot_dimension_numbers<[1], [0], [0], [1], [0, 0, 1, 1], [], []>} : vector<4x16xbf16>, vector<16x24xbf16>, vector<4x24xf32> -> vector<4x24xf32>
    %152 = arith.truncf %151 : vector<4x24xf32> to vector<4x24xbf16>
    %c8_124 = arith.constant 8 : index
    %c0_125 = arith.constant 0 : index
    %c0_126 = arith.constant 0 : index
    %153 = vector.load %arg10[%c8_124, %c0_125, %c0_126] : memref<9x4x16xbf16, #tpu.memory_space<vmem>>, vector<1x4x16xbf16>
    %154 = vector.shape_cast %153 : vector<1x4x16xbf16> to vector<4x16xbf16>
    %cst_127 = arith.constant dense<0.000000e+00> : vector<4x24xf32>
    %155 = tpu.matmul %154, %120, %cst_127 {dimension_numbers = #tpu.dot_dimension_numbers<[1], [0], [0], [1], [0, 0, 1, 1], [], []>} : vector<4x16xbf16>, vector<16x24xbf16>, vector<4x24xf32> -> vector<4x24xf32>
    %156 = arith.truncf %155 : vector<4x24xf32> to vector<4x24xbf16>
    %157 = tpu.concatenate %124, %128, %132, %136, %140, %144, %148, %152, %156 in 1 : vector<4x24xbf16>, vector<4x24xbf16>, vector<4x24xbf16>, vector<4x24xbf16>, vector<4x24xbf16>, vector<4x24xbf16>, vector<4x24xbf16>, vector<4x24xbf16>, vector<4x24xbf16> -> vector<4x216xbf16>
    %c0_128 = arith.constant 0 : index
    %c0_129 = arith.constant 0 : index
    %158 = vector.load %arg11[%c0_128, %c0_129] : memref<216x32xbf16, #tpu.memory_space<vmem>>, vector<216x32xbf16>
    %cst_130 = arith.constant dense<0.000000e+00> : vector<4x32xf32>
    %159 = tpu.matmul %157, %158, %cst_130 {dimension_numbers = #tpu.dot_dimension_numbers<[1], [0], [0], [1], [0, 0, 1, 1], [], []>} : vector<4x216xbf16>, vector<216x32xbf16>, vector<4x32xf32> -> vector<4x32xf32>
    %c0_131 = arith.constant 0 : index
    %c0_132 = arith.constant 0 : index
    %160 = vector.load %arg12[%c0_131, %c0_132] : memref<1x32xf32, #tpu.memory_space<vmem>>, vector<1x32xf32>
    %161 = vector.broadcast %160 : vector<1x32xf32> to vector<4x32xf32>
    %162 = arith.addf %159, %161 : vector<4x32xf32>
    %163 = arith.truncf %162 : vector<4x32xf32> to vector<4x32xbf16>
    %c0_133 = arith.constant 0 : index
    %c0_134 = arith.constant 0 : index
    %c0_135 = arith.constant 0 : index
    %164 = vector.load %arg13[%c0_133, %c0_134, %c0_135] : memref<2x32x64xbf16, #tpu.memory_space<vmem>>, vector<1x32x64xbf16>
    %165 = vector.shape_cast %164 : vector<1x32x64xbf16> to vector<32x64xbf16>
    %cst_136 = arith.constant dense<0.000000e+00> : vector<4x64xf32>
    %166 = tpu.matmul %163, %165, %cst_136 {dimension_numbers = #tpu.dot_dimension_numbers<[1], [0], [0], [1], [0, 0, 1, 1], [], []>} : vector<4x32xbf16>, vector<32x64xbf16>, vector<4x64xf32> -> vector<4x64xf32>
    %c0_137 = arith.constant 0 : index
    %c0_138 = arith.constant 0 : index
    %c0_139 = arith.constant 0 : index
    %167 = vector.load %arg14[%c0_137, %c0_138, %c0_139] : memref<2x1x64xf32, #tpu.memory_space<vmem>>, vector<1x1x64xf32>
    %168 = vector.shape_cast %167 : vector<1x1x64xf32> to vector<1x64xf32>
    %169 = vector.broadcast %168 : vector<1x64xf32> to vector<4x64xf32>
    %170 = arith.addf %166, %169 : vector<4x64xf32>
    %171 = vector.extract_strided_slice %170 {offsets = [0, 0], sizes = [4, 8], strides = [1, 1]} : vector<4x64xf32> to vector<4x8xf32>
    %172 = vector.extract_strided_slice %170 {offsets = [0, 8], sizes = [4, 8], strides = [1, 1]} : vector<4x64xf32> to vector<4x8xf32>
    %173 = vector.extract_strided_slice %170 {offsets = [0, 16], sizes = [4, 16], strides = [1, 1]} : vector<4x64xf32> to vector<4x16xf32>
    %cst_140 = arith.constant dense<0.000000e+00> : vector<4x4xf32>
    %174 = tpu.matmul %171, %172, %cst_140 {dimension_numbers = #tpu.dot_dimension_numbers<[1], [1], [0], [0], [0, 0, 1, 0], [], []>} : vector<4x8xf32>, vector<4x8xf32>, vector<4x4xf32> -> vector<4x4xf32>
    %c0_141 = arith.constant 0 : index
    %c0_142 = arith.constant 0 : index
    %c0_143 = arith.constant 0 : index
    %175 = vector.load %arg15[%c0_141, %c0_142, %c0_143] : memref<4x4x4xf32, #tpu.memory_space<vmem>>, vector<1x4x4xf32>
    %176 = vector.shape_cast %175 : vector<1x4x4xf32> to vector<4x4xf32>
    %177 = arith.addf %174, %176 : vector<4x4xf32>
    %cst_144 = arith.constant dense<0xFF800000> : vector<4xf32>
    %178 = vector.multi_reduction <maximumf>, %177, %cst_144 [1] : vector<4x4xf32> to vector<4xf32>
    %179 = vector.shape_cast %178 : vector<4xf32> to vector<4x1xf32>
    %180 = vector.broadcast %179 : vector<4x1xf32> to vector<4x4xf32>
    %181 = arith.subf %177, %180 : vector<4x4xf32>
    %182 = math.exp %181 : vector<4x4xf32>
    %cst_145 = arith.constant dense<0.000000e+00> : vector<4xf32>
    %183 = vector.multi_reduction <add>, %182, %cst_145 [1] : vector<4x4xf32> to vector<4xf32>
    %184 = vector.shape_cast %183 : vector<4xf32> to vector<4x1xf32>
    %185 = tpu.reciprocal %184 {approx = true} : vector<4x1xf32> -> vector<4x1xf32>
    %186 = vector.broadcast %185 : vector<4x1xf32> to vector<4x4xf32>
    %187 = arith.mulf %182, %186 : vector<4x4xf32>
    %cst_146 = arith.constant dense<0.000000e+00> : vector<4x16xf32>
    %188 = tpu.matmul %187, %173, %cst_146 {dimension_numbers = #tpu.dot_dimension_numbers<[1], [0], [0], [1], [0, 0, 1, 1], [], []>} : vector<4x4xf32>, vector<4x16xf32>, vector<4x16xf32> -> vector<4x16xf32>
    %189 = vector.extract_strided_slice %170 {offsets = [0, 32], sizes = [4, 8], strides = [1, 1]} : vector<4x64xf32> to vector<4x8xf32>
    %190 = vector.extract_strided_slice %170 {offsets = [0, 40], sizes = [4, 8], strides = [1, 1]} : vector<4x64xf32> to vector<4x8xf32>
    %191 = vector.extract_strided_slice %170 {offsets = [0, 48], sizes = [4, 16], strides = [1, 1]} : vector<4x64xf32> to vector<4x16xf32>
    %cst_147 = arith.constant dense<0.000000e+00> : vector<4x4xf32>
    %192 = tpu.matmul %189, %190, %cst_147 {dimension_numbers = #tpu.dot_dimension_numbers<[1], [1], [0], [0], [0, 0, 1, 0], [], []>} : vector<4x8xf32>, vector<4x8xf32>, vector<4x4xf32> -> vector<4x4xf32>
    %c1_148 = arith.constant 1 : index
    %c0_149 = arith.constant 0 : index
    %c0_150 = arith.constant 0 : index
    %193 = vector.load %arg15[%c1_148, %c0_149, %c0_150] : memref<4x4x4xf32, #tpu.memory_space<vmem>>, vector<1x4x4xf32>
    %194 = vector.shape_cast %193 : vector<1x4x4xf32> to vector<4x4xf32>
    %195 = arith.addf %192, %194 : vector<4x4xf32>
    %cst_151 = arith.constant dense<0xFF800000> : vector<4xf32>
    %196 = vector.multi_reduction <maximumf>, %195, %cst_151 [1] : vector<4x4xf32> to vector<4xf32>
    %197 = vector.shape_cast %196 : vector<4xf32> to vector<4x1xf32>
    %198 = vector.broadcast %197 : vector<4x1xf32> to vector<4x4xf32>
    %199 = arith.subf %195, %198 : vector<4x4xf32>
    %200 = math.exp %199 : vector<4x4xf32>
    %cst_152 = arith.constant dense<0.000000e+00> : vector<4xf32>
    %201 = vector.multi_reduction <add>, %200, %cst_152 [1] : vector<4x4xf32> to vector<4xf32>
    %202 = vector.shape_cast %201 : vector<4xf32> to vector<4x1xf32>
    %203 = tpu.reciprocal %202 {approx = true} : vector<4x1xf32> -> vector<4x1xf32>
    %204 = vector.broadcast %203 : vector<4x1xf32> to vector<4x4xf32>
    %205 = arith.mulf %200, %204 : vector<4x4xf32>
    %cst_153 = arith.constant dense<0.000000e+00> : vector<4x16xf32>
    %206 = tpu.matmul %205, %191, %cst_153 {dimension_numbers = #tpu.dot_dimension_numbers<[1], [0], [0], [1], [0, 0, 1, 1], [], []>} : vector<4x4xf32>, vector<4x16xf32>, vector<4x16xf32> -> vector<4x16xf32>
    %207 = tpu.concatenate %188, %206 in 1 : vector<4x16xf32>, vector<4x16xf32> -> vector<4x32xf32>
    %cst_154 = arith.constant 3.000000e+00 : f32
    %208 = vector.broadcast %cst_154 : f32 to vector<4x32xf32>
    %209 = arith.addf %207, %208 : vector<4x32xf32>
    %cst_155 = arith.constant 0.000000e+00 : f32
    %cst_156 = arith.constant 6.000000e+00 : f32
    %210 = vector.broadcast %cst_155 : f32 to vector<4x32xf32>
    %211 = arith.maximumf %210, %209 : vector<4x32xf32>
    %212 = vector.broadcast %cst_156 : f32 to vector<4x32xf32>
    %213 = arith.minimumf %212, %211 : vector<4x32xf32>
    %214 = arith.mulf %207, %213 : vector<4x32xf32>
    %cst_157 = arith.constant 0.166666672 : f32
    %215 = vector.broadcast %cst_157 : f32 to vector<4x32xf32>
    %216 = arith.mulf %214, %215 : vector<4x32xf32>
    %217 = arith.truncf %216 : vector<4x32xf32> to vector<4x32xbf16>
    %c0_158 = arith.constant 0 : index
    %c0_159 = arith.constant 0 : index
    %c0_160 = arith.constant 0 : index
    %218 = vector.load %arg16[%c0_158, %c0_159, %c0_160] : memref<2x32x32xbf16, #tpu.memory_space<vmem>>, vector<1x32x32xbf16>
    %219 = vector.shape_cast %218 : vector<1x32x32xbf16> to vector<32x32xbf16>
    %cst_161 = arith.constant dense<0.000000e+00> : vector<4x32xf32>
    %220 = tpu.matmul %217, %219, %cst_161 {dimension_numbers = #tpu.dot_dimension_numbers<[1], [0], [0], [1], [0, 0, 1, 1], [], []>} : vector<4x32xbf16>, vector<32x32xbf16>, vector<4x32xf32> -> vector<4x32xf32>
    %221 = arith.addf %162, %220 : vector<4x32xf32>
    %c0_162 = arith.constant 0 : index
    %c0_163 = arith.constant 0 : index
    %c0_164 = arith.constant 0 : index
    %222 = vector.load %arg17[%c0_162, %c0_163, %c0_164] : memref<2x1x32xf32, #tpu.memory_space<vmem>>, vector<1x1x32xf32>
    %223 = vector.shape_cast %222 : vector<1x1x32xf32> to vector<1x32xf32>
    %224 = vector.broadcast %223 : vector<1x32xf32> to vector<4x32xf32>
    %225 = arith.addf %221, %224 : vector<4x32xf32>
    %226 = arith.truncf %225 : vector<4x32xf32> to vector<4x32xbf16>
    %c0_165 = arith.constant 0 : index
    %c0_166 = arith.constant 0 : index
    %c0_167 = arith.constant 0 : index
    %227 = vector.load %arg18[%c0_165, %c0_166, %c0_167] : memref<2x32x64xbf16, #tpu.memory_space<vmem>>, vector<1x32x64xbf16>
    %228 = vector.shape_cast %227 : vector<1x32x64xbf16> to vector<32x64xbf16>
    %cst_168 = arith.constant dense<0.000000e+00> : vector<4x64xf32>
    %229 = tpu.matmul %226, %228, %cst_168 {dimension_numbers = #tpu.dot_dimension_numbers<[1], [0], [0], [1], [0, 0, 1, 1], [], []>} : vector<4x32xbf16>, vector<32x64xbf16>, vector<4x64xf32> -> vector<4x64xf32>
    %c0_169 = arith.constant 0 : index
    %c0_170 = arith.constant 0 : index
    %c0_171 = arith.constant 0 : index
    %230 = vector.load %arg19[%c0_169, %c0_170, %c0_171] : memref<2x1x64xf32, #tpu.memory_space<vmem>>, vector<1x1x64xf32>
    %231 = vector.shape_cast %230 : vector<1x1x64xf32> to vector<1x64xf32>
    %232 = vector.broadcast %231 : vector<1x64xf32> to vector<4x64xf32>
    %233 = arith.addf %229, %232 : vector<4x64xf32>
    %cst_172 = arith.constant 3.000000e+00 : f32
    %234 = vector.broadcast %cst_172 : f32 to vector<4x64xf32>
    %235 = arith.addf %233, %234 : vector<4x64xf32>
    %cst_173 = arith.constant 0.000000e+00 : f32
    %cst_174 = arith.constant 6.000000e+00 : f32
    %236 = vector.broadcast %cst_173 : f32 to vector<4x64xf32>
    %237 = arith.maximumf %236, %235 : vector<4x64xf32>
    %238 = vector.broadcast %cst_174 : f32 to vector<4x64xf32>
    %239 = arith.minimumf %238, %237 : vector<4x64xf32>
    %240 = arith.mulf %233, %239 : vector<4x64xf32>
    %cst_175 = arith.constant 0.166666672 : f32
    %241 = vector.broadcast %cst_175 : f32 to vector<4x64xf32>
    %242 = arith.mulf %240, %241 : vector<4x64xf32>
    %243 = arith.truncf %242 : vector<4x64xf32> to vector<4x64xbf16>
    %c0_176 = arith.constant 0 : index
    %c0_177 = arith.constant 0 : index
    %c0_178 = arith.constant 0 : index
    %244 = vector.load %arg20[%c0_176, %c0_177, %c0_178] : memref<2x64x32xbf16, #tpu.memory_space<vmem>>, vector<1x64x32xbf16>
    %245 = vector.shape_cast %244 : vector<1x64x32xbf16> to vector<64x32xbf16>
    %cst_179 = arith.constant dense<0.000000e+00> : vector<4x32xf32>
    %246 = tpu.matmul %243, %245, %cst_179 {dimension_numbers = #tpu.dot_dimension_numbers<[1], [0], [0], [1], [0, 0, 1, 1], [], []>} : vector<4x64xbf16>, vector<64x32xbf16>, vector<4x32xf32> -> vector<4x32xf32>
    %247 = arith.addf %225, %246 : vector<4x32xf32>
    %c0_180 = arith.constant 0 : index
    %c0_181 = arith.constant 0 : index
    %c0_182 = arith.constant 0 : index
    %248 = vector.load %arg21[%c0_180, %c0_181, %c0_182] : memref<2x1x32xf32, #tpu.memory_space<vmem>>, vector<1x1x32xf32>
    %249 = vector.shape_cast %248 : vector<1x1x32xf32> to vector<1x32xf32>
    %250 = vector.broadcast %249 : vector<1x32xf32> to vector<4x32xf32>
    %251 = arith.addf %247, %250 : vector<4x32xf32>
    %252 = arith.truncf %251 : vector<4x32xf32> to vector<4x32xbf16>
    %c1_183 = arith.constant 1 : index
    %c0_184 = arith.constant 0 : index
    %c0_185 = arith.constant 0 : index
    %253 = vector.load %arg13[%c1_183, %c0_184, %c0_185] : memref<2x32x64xbf16, #tpu.memory_space<vmem>>, vector<1x32x64xbf16>
    %254 = vector.shape_cast %253 : vector<1x32x64xbf16> to vector<32x64xbf16>
    %cst_186 = arith.constant dense<0.000000e+00> : vector<4x64xf32>
    %255 = tpu.matmul %252, %254, %cst_186 {dimension_numbers = #tpu.dot_dimension_numbers<[1], [0], [0], [1], [0, 0, 1, 1], [], []>} : vector<4x32xbf16>, vector<32x64xbf16>, vector<4x64xf32> -> vector<4x64xf32>
    %c1_187 = arith.constant 1 : index
    %c0_188 = arith.constant 0 : index
    %c0_189 = arith.constant 0 : index
    %256 = vector.load %arg14[%c1_187, %c0_188, %c0_189] : memref<2x1x64xf32, #tpu.memory_space<vmem>>, vector<1x1x64xf32>
    %257 = vector.shape_cast %256 : vector<1x1x64xf32> to vector<1x64xf32>
    %258 = vector.broadcast %257 : vector<1x64xf32> to vector<4x64xf32>
    %259 = arith.addf %255, %258 : vector<4x64xf32>
    %260 = vector.extract_strided_slice %259 {offsets = [0, 0], sizes = [4, 8], strides = [1, 1]} : vector<4x64xf32> to vector<4x8xf32>
    %261 = vector.extract_strided_slice %259 {offsets = [0, 8], sizes = [4, 8], strides = [1, 1]} : vector<4x64xf32> to vector<4x8xf32>
    %262 = vector.extract_strided_slice %259 {offsets = [0, 16], sizes = [4, 16], strides = [1, 1]} : vector<4x64xf32> to vector<4x16xf32>
    %cst_190 = arith.constant dense<0.000000e+00> : vector<4x4xf32>
    %263 = tpu.matmul %260, %261, %cst_190 {dimension_numbers = #tpu.dot_dimension_numbers<[1], [1], [0], [0], [0, 0, 1, 0], [], []>} : vector<4x8xf32>, vector<4x8xf32>, vector<4x4xf32> -> vector<4x4xf32>
    %c2_191 = arith.constant 2 : index
    %c0_192 = arith.constant 0 : index
    %c0_193 = arith.constant 0 : index
    %264 = vector.load %arg15[%c2_191, %c0_192, %c0_193] : memref<4x4x4xf32, #tpu.memory_space<vmem>>, vector<1x4x4xf32>
    %265 = vector.shape_cast %264 : vector<1x4x4xf32> to vector<4x4xf32>
    %266 = arith.addf %263, %265 : vector<4x4xf32>
    %cst_194 = arith.constant dense<0xFF800000> : vector<4xf32>
    %267 = vector.multi_reduction <maximumf>, %266, %cst_194 [1] : vector<4x4xf32> to vector<4xf32>
    %268 = vector.shape_cast %267 : vector<4xf32> to vector<4x1xf32>
    %269 = vector.broadcast %268 : vector<4x1xf32> to vector<4x4xf32>
    %270 = arith.subf %266, %269 : vector<4x4xf32>
    %271 = math.exp %270 : vector<4x4xf32>
    %cst_195 = arith.constant dense<0.000000e+00> : vector<4xf32>
    %272 = vector.multi_reduction <add>, %271, %cst_195 [1] : vector<4x4xf32> to vector<4xf32>
    %273 = vector.shape_cast %272 : vector<4xf32> to vector<4x1xf32>
    %274 = tpu.reciprocal %273 {approx = true} : vector<4x1xf32> -> vector<4x1xf32>
    %275 = vector.broadcast %274 : vector<4x1xf32> to vector<4x4xf32>
    %276 = arith.mulf %271, %275 : vector<4x4xf32>
    %cst_196 = arith.constant dense<0.000000e+00> : vector<4x16xf32>
    %277 = tpu.matmul %276, %262, %cst_196 {dimension_numbers = #tpu.dot_dimension_numbers<[1], [0], [0], [1], [0, 0, 1, 1], [], []>} : vector<4x4xf32>, vector<4x16xf32>, vector<4x16xf32> -> vector<4x16xf32>
    %278 = vector.extract_strided_slice %259 {offsets = [0, 32], sizes = [4, 8], strides = [1, 1]} : vector<4x64xf32> to vector<4x8xf32>
    %279 = vector.extract_strided_slice %259 {offsets = [0, 40], sizes = [4, 8], strides = [1, 1]} : vector<4x64xf32> to vector<4x8xf32>
    %280 = vector.extract_strided_slice %259 {offsets = [0, 48], sizes = [4, 16], strides = [1, 1]} : vector<4x64xf32> to vector<4x16xf32>
    %cst_197 = arith.constant dense<0.000000e+00> : vector<4x4xf32>
    %281 = tpu.matmul %278, %279, %cst_197 {dimension_numbers = #tpu.dot_dimension_numbers<[1], [1], [0], [0], [0, 0, 1, 0], [], []>} : vector<4x8xf32>, vector<4x8xf32>, vector<4x4xf32> -> vector<4x4xf32>
    %c3_198 = arith.constant 3 : index
    %c0_199 = arith.constant 0 : index
    %c0_200 = arith.constant 0 : index
    %282 = vector.load %arg15[%c3_198, %c0_199, %c0_200] : memref<4x4x4xf32, #tpu.memory_space<vmem>>, vector<1x4x4xf32>
    %283 = vector.shape_cast %282 : vector<1x4x4xf32> to vector<4x4xf32>
    %284 = arith.addf %281, %283 : vector<4x4xf32>
    %cst_201 = arith.constant dense<0xFF800000> : vector<4xf32>
    %285 = vector.multi_reduction <maximumf>, %284, %cst_201 [1] : vector<4x4xf32> to vector<4xf32>
    %286 = vector.shape_cast %285 : vector<4xf32> to vector<4x1xf32>
    %287 = vector.broadcast %286 : vector<4x1xf32> to vector<4x4xf32>
    %288 = arith.subf %284, %287 : vector<4x4xf32>
    %289 = math.exp %288 : vector<4x4xf32>
    %cst_202 = arith.constant dense<0.000000e+00> : vector<4xf32>
    %290 = vector.multi_reduction <add>, %289, %cst_202 [1] : vector<4x4xf32> to vector<4xf32>
    %291 = vector.shape_cast %290 : vector<4xf32> to vector<4x1xf32>
    %292 = tpu.reciprocal %291 {approx = true} : vector<4x1xf32> -> vector<4x1xf32>
    %293 = vector.broadcast %292 : vector<4x1xf32> to vector<4x4xf32>
    %294 = arith.mulf %289, %293 : vector<4x4xf32>
    %cst_203 = arith.constant dense<0.000000e+00> : vector<4x16xf32>
    %295 = tpu.matmul %294, %280, %cst_203 {dimension_numbers = #tpu.dot_dimension_numbers<[1], [0], [0], [1], [0, 0, 1, 1], [], []>} : vector<4x4xf32>, vector<4x16xf32>, vector<4x16xf32> -> vector<4x16xf32>
    %296 = tpu.concatenate %277, %295 in 1 : vector<4x16xf32>, vector<4x16xf32> -> vector<4x32xf32>
    %cst_204 = arith.constant 3.000000e+00 : f32
    %297 = vector.broadcast %cst_204 : f32 to vector<4x32xf32>
    %298 = arith.addf %296, %297 : vector<4x32xf32>
    %cst_205 = arith.constant 0.000000e+00 : f32
    %cst_206 = arith.constant 6.000000e+00 : f32
    %299 = vector.broadcast %cst_205 : f32 to vector<4x32xf32>
    %300 = arith.maximumf %299, %298 : vector<4x32xf32>
    %301 = vector.broadcast %cst_206 : f32 to vector<4x32xf32>
    %302 = arith.minimumf %301, %300 : vector<4x32xf32>
    %303 = arith.mulf %296, %302 : vector<4x32xf32>
    %cst_207 = arith.constant 0.166666672 : f32
    %304 = vector.broadcast %cst_207 : f32 to vector<4x32xf32>
    %305 = arith.mulf %303, %304 : vector<4x32xf32>
    %306 = arith.truncf %305 : vector<4x32xf32> to vector<4x32xbf16>
    %c1_208 = arith.constant 1 : index
    %c0_209 = arith.constant 0 : index
    %c0_210 = arith.constant 0 : index
    %307 = vector.load %arg16[%c1_208, %c0_209, %c0_210] : memref<2x32x32xbf16, #tpu.memory_space<vmem>>, vector<1x32x32xbf16>
    %308 = vector.shape_cast %307 : vector<1x32x32xbf16> to vector<32x32xbf16>
    %cst_211 = arith.constant dense<0.000000e+00> : vector<4x32xf32>
    %309 = tpu.matmul %306, %308, %cst_211 {dimension_numbers = #tpu.dot_dimension_numbers<[1], [0], [0], [1], [0, 0, 1, 1], [], []>} : vector<4x32xbf16>, vector<32x32xbf16>, vector<4x32xf32> -> vector<4x32xf32>
    %310 = arith.addf %251, %309 : vector<4x32xf32>
    %c1_212 = arith.constant 1 : index
    %c0_213 = arith.constant 0 : index
    %c0_214 = arith.constant 0 : index
    %311 = vector.load %arg17[%c1_212, %c0_213, %c0_214] : memref<2x1x32xf32, #tpu.memory_space<vmem>>, vector<1x1x32xf32>
    %312 = vector.shape_cast %311 : vector<1x1x32xf32> to vector<1x32xf32>
    %313 = vector.broadcast %312 : vector<1x32xf32> to vector<4x32xf32>
    %314 = arith.addf %310, %313 : vector<4x32xf32>
    %315 = arith.truncf %314 : vector<4x32xf32> to vector<4x32xbf16>
    %c1_215 = arith.constant 1 : index
    %c0_216 = arith.constant 0 : index
    %c0_217 = arith.constant 0 : index
    %316 = vector.load %arg18[%c1_215, %c0_216, %c0_217] : memref<2x32x64xbf16, #tpu.memory_space<vmem>>, vector<1x32x64xbf16>
    %317 = vector.shape_cast %316 : vector<1x32x64xbf16> to vector<32x64xbf16>
    %cst_218 = arith.constant dense<0.000000e+00> : vector<4x64xf32>
    %318 = tpu.matmul %315, %317, %cst_218 {dimension_numbers = #tpu.dot_dimension_numbers<[1], [0], [0], [1], [0, 0, 1, 1], [], []>} : vector<4x32xbf16>, vector<32x64xbf16>, vector<4x64xf32> -> vector<4x64xf32>
    %c1_219 = arith.constant 1 : index
    %c0_220 = arith.constant 0 : index
    %c0_221 = arith.constant 0 : index
    %319 = vector.load %arg19[%c1_219, %c0_220, %c0_221] : memref<2x1x64xf32, #tpu.memory_space<vmem>>, vector<1x1x64xf32>
    %320 = vector.shape_cast %319 : vector<1x1x64xf32> to vector<1x64xf32>
    %321 = vector.broadcast %320 : vector<1x64xf32> to vector<4x64xf32>
    %322 = arith.addf %318, %321 : vector<4x64xf32>
    %cst_222 = arith.constant 3.000000e+00 : f32
    %323 = vector.broadcast %cst_222 : f32 to vector<4x64xf32>
    %324 = arith.addf %322, %323 : vector<4x64xf32>
    %cst_223 = arith.constant 0.000000e+00 : f32
    %cst_224 = arith.constant 6.000000e+00 : f32
    %325 = vector.broadcast %cst_223 : f32 to vector<4x64xf32>
    %326 = arith.maximumf %325, %324 : vector<4x64xf32>
    %327 = vector.broadcast %cst_224 : f32 to vector<4x64xf32>
    %328 = arith.minimumf %327, %326 : vector<4x64xf32>
    %329 = arith.mulf %322, %328 : vector<4x64xf32>
    %cst_225 = arith.constant 0.166666672 : f32
    %330 = vector.broadcast %cst_225 : f32 to vector<4x64xf32>
    %331 = arith.mulf %329, %330 : vector<4x64xf32>
    %332 = arith.truncf %331 : vector<4x64xf32> to vector<4x64xbf16>
    %c1_226 = arith.constant 1 : index
    %c0_227 = arith.constant 0 : index
    %c0_228 = arith.constant 0 : index
    %333 = vector.load %arg20[%c1_226, %c0_227, %c0_228] : memref<2x64x32xbf16, #tpu.memory_space<vmem>>, vector<1x64x32xbf16>
    %334 = vector.shape_cast %333 : vector<1x64x32xbf16> to vector<64x32xbf16>
    %cst_229 = arith.constant dense<0.000000e+00> : vector<4x32xf32>
    %335 = tpu.matmul %332, %334, %cst_229 {dimension_numbers = #tpu.dot_dimension_numbers<[1], [0], [0], [1], [0, 0, 1, 1], [], []>} : vector<4x64xbf16>, vector<64x32xbf16>, vector<4x32xf32> -> vector<4x32xf32>
    %336 = arith.addf %314, %335 : vector<4x32xf32>
    %c1_230 = arith.constant 1 : index
    %c0_231 = arith.constant 0 : index
    %c0_232 = arith.constant 0 : index
    %337 = vector.load %arg21[%c1_230, %c0_231, %c0_232] : memref<2x1x32xf32, #tpu.memory_space<vmem>>, vector<1x1x32xf32>
    %338 = vector.shape_cast %337 : vector<1x1x32xf32> to vector<1x32xf32>
    %339 = vector.broadcast %338 : vector<1x32xf32> to vector<4x32xf32>
    %340 = arith.addf %336, %339 : vector<4x32xf32>
    %cst_233 = arith.constant dense<0.000000e+00> : vector<32xf32>
    %341 = vector.multi_reduction <add>, %340, %cst_233 [0] : vector<4x32xf32> to vector<32xf32>
    %342 = vector.shape_cast %341 : vector<32xf32> to vector<1x32xf32>
    %343 = vector.shape_cast %342 : vector<1x32xf32> to vector<1x32xf32>
    %344 = vector.broadcast %343 : vector<1x32xf32> to vector<8x32xf32>
    %c0_234 = arith.constant 0 : index
    %c0_235 = arith.constant 0 : index
    %345 = vector.load %arg22[%c0_234, %c0_235] : memref<32x2xf32, #tpu.memory_space<vmem>>, vector<32x2xf32>
    %cst_236 = arith.constant dense<0.000000e+00> : vector<8x2xf32>
    %346 = tpu.matmul %344, %345, %cst_236 {dimension_numbers = #tpu.dot_dimension_numbers<[1], [0], [0], [1], [0, 0, 1, 1], [], []>} : vector<8x32xf32>, vector<32x2xf32>, vector<8x2xf32> -> vector<8x2xf32>
    %c0_237 = arith.constant 0 : index
    %c0_238 = arith.constant 0 : index
    %347 = vector.load %arg23[%c0_237, %c0_238] : memref<1x2xf32, #tpu.memory_space<vmem>>, vector<1x2xf32>
    %348 = vector.broadcast %347 : vector<1x2xf32> to vector<8x2xf32>
    %349 = arith.addf %346, %348 : vector<8x2xf32>
    %c0_239 = arith.constant 0 : index
    %c0_240 = arith.constant 0 : index
    %c0_241 = arith.constant 0 : index
    %350 = vector.load %arg24[%c0_239, %c0_240, %c0_241] : memref<1x8x2xf32, #tpu.memory_space<vmem>>, vector<1x8x2xf32>
    %351 = vector.shape_cast %350 : vector<1x8x2xf32> to vector<8x2xf32>
    %352 = vector.shape_cast %349 : vector<8x2xf32> to vector<1x8x2xf32>
    tpu.vector_store %arg24[%c0_239, %c0_240, %c0_241], %352 {strides = array<i32>} : memref<1x8x2xf32, #tpu.memory_space<vmem>>, vector<1x8x2xf32>,
    return
  }
  func.func @transform_0(%arg0: i32) -> (i32, i32, i32) {
    %c0_i32 = arith.constant 0 : i32
    %c0_i32_0 = arith.constant 0 : i32
    %c0_i32_1 = arith.constant 0 : i32
    return %arg0, %c0_i32, %c0_i32_0 : i32, i32, i32
  }
  func.func @transform_1(%arg0: i32) -> (i32, i32) {
    %c0_i32 = arith.constant 0 : i32
    %c0_i32_0 = arith.constant 0 : i32
    %c0_i32_1 = arith.constant 0 : i32
    return %c0_i32, %c0_i32_0 : i32, i32
  }
  func.func @transform_2(%arg0: i32) -> (i32, i32) {
    %c0_i32 = arith.constant 0 : i32
    %c0_i32_0 = arith.constant 0 : i32
    %c0_i32_1 = arith.constant 0 : i32
    return %c0_i32, %c0_i32_0 : i32, i32
  }
  func.func @transform_3(%arg0: i32) -> (i32, i32, i32) {
    %c0_i32 = arith.constant 0 : i32
    %c0_i32_0 = arith.constant 0 : i32
    %c0_i32_1 = arith.constant 0 : i32
    %c0_i32_2 = arith.constant 0 : i32
    return %c0_i32, %c0_i32_0, %c0_i32_1 : i32, i32, i32
  }
  func.func @transform_4(%arg0: i32) -> (i32, i32) {
    %c0_i32 = arith.constant 0 : i32
    %c0_i32_0 = arith.constant 0 : i32
    %c0_i32_1 = arith.constant 0 : i32
    return %c0_i32, %c0_i32_0 : i32, i32
  }
  func.func @transform_5(%arg0: i32) -> (i32, i32) {
    %c0_i32 = arith.constant 0 : i32
    %c0_i32_0 = arith.constant 0 : i32
    %c0_i32_1 = arith.constant 0 : i32
    return %c0_i32, %c0_i32_0 : i32, i32
  }
  func.func @transform_6(%arg0: i32) -> (i32, i32, i32) {
    %c0_i32 = arith.constant 0 : i32
    %c0_i32_0 = arith.constant 0 : i32
    %c0_i32_1 = arith.constant 0 : i32
    %c0_i32_2 = arith.constant 0 : i32
    return %c0_i32, %c0_i32_0, %c0_i32_1 : i32, i32, i32
  }
  func.func @transform_7(%arg0: i32) -> (i32, i32) {
    %c0_i32 = arith.constant 0 : i32
    %c0_i32_0 = arith.constant 0 : i32
    %c0_i32_1 = arith.constant 0 : i32
    return %c0_i32, %c0_i32_0 : i32, i32
  }
  func.func @transform_8(%arg0: i32) -> (i32, i32) {
    %c0_i32 = arith.constant 0 : i32
    %c0_i32_0 = arith.constant 0 : i32
    %c0_i32_1 = arith.constant 0 : i32
    return %c0_i32, %c0_i32_0 : i32, i32
  }
  func.func @transform_9(%arg0: i32) -> (i32, i32, i32) {
    %c0_i32 = arith.constant 0 : i32
    %c0_i32_0 = arith.constant 0 : i32
    %c0_i32_1 = arith.constant 0 : i32
    %c0_i32_2 = arith.constant 0 : i32
    return %c0_i32, %c0_i32_0, %c0_i32_1 : i32, i32, i32
  }
  func.func @transform_10(%arg0: i32) -> (i32, i32) {
    %c0_i32 = arith.constant 0 : i32
    %c0_i32_0 = arith.constant 0 : i32
    %c0_i32_1 = arith.constant 0 : i32
    return %c0_i32, %c0_i32_0 : i32, i32
  }
  func.func @transform_11(%arg0: i32) -> (i32, i32) {
    %c0_i32 = arith.constant 0 : i32
    %c0_i32_0 = arith.constant 0 : i32
    %c0_i32_1 = arith.constant 0 : i32
    return %c0_i32, %c0_i32_0 : i32, i32
  }
  func.func @transform_12(%arg0: i32) -> (i32, i32, i32) {
    %c0_i32 = arith.constant 0 : i32
    %c0_i32_0 = arith.constant 0 : i32
    %c0_i32_1 = arith.constant 0 : i32
    %c0_i32_2 = arith.constant 0 : i32
    return %c0_i32, %c0_i32_0, %c0_i32_1 : i32, i32, i32
  }
  func.func @transform_13(%arg0: i32) -> (i32, i32, i32) {
    %c0_i32 = arith.constant 0 : i32
    %c0_i32_0 = arith.constant 0 : i32
    %c0_i32_1 = arith.constant 0 : i32
    %c0_i32_2 = arith.constant 0 : i32
    return %c0_i32, %c0_i32_0, %c0_i32_1 : i32, i32, i32
  }
  func.func @transform_14(%arg0: i32) -> (i32, i32, i32) {
    %c0_i32 = arith.constant 0 : i32
    %c0_i32_0 = arith.constant 0 : i32
    %c0_i32_1 = arith.constant 0 : i32
    %c0_i32_2 = arith.constant 0 : i32
    return %c0_i32, %c0_i32_0, %c0_i32_1 : i32, i32, i32
  }
  func.func @transform_15(%arg0: i32) -> (i32, i32, i32) {
    %c0_i32 = arith.constant 0 : i32
    %c0_i32_0 = arith.constant 0 : i32
    %c0_i32_1 = arith.constant 0 : i32
    %c0_i32_2 = arith.constant 0 : i32
    return %c0_i32, %c0_i32_0, %c0_i32_1 : i32, i32, i32
  }
  func.func @transform_16(%arg0: i32) -> (i32, i32, i32) {
    %c0_i32 = arith.constant 0 : i32
    %c0_i32_0 = arith.constant 0 : i32
    %c0_i32_1 = arith.constant 0 : i32
    %c0_i32_2 = arith.constant 0 : i32
    return %c0_i32, %c0_i32_0, %c0_i32_1 : i32, i32, i32
  }
  func.func @transform_17(%arg0: i32) -> (i32, i32, i32) {
    %c0_i32 = arith.constant 0 : i32
    %c0_i32_0 = arith.constant 0 : i32
    %c0_i32_1 = arith.constant 0 : i32
    %c0_i32_2 = arith.constant 0 : i32
    return %c0_i32, %c0_i32_0, %c0_i32_1 : i32, i32, i32
  }
  func.func @transform_18(%arg0: i32) -> (i32, i32, i32) {
    %c0_i32 = arith.constant 0 : i32
    %c0_i32_0 = arith.constant 0 : i32
    %c0_i32_1 = arith.constant 0 : i32
    %c0_i32_2 = arith.constant 0 : i32
    return %c0_i32, %c0_i32_0, %c0_i32_1 : i32, i32, i32
  }
  func.func @transform_19(%arg0: i32) -> (i32, i32, i32) {
    %c0_i32 = arith.constant 0 : i32
    %c0_i32_0 = arith.constant 0 : i32
    %c0_i32_1 = arith.constant 0 : i32
    %c0_i32_2 = arith.constant 0 : i32
    return %c0_i32, %c0_i32_0, %c0_i32_1 : i32, i32, i32
  }
  func.func @transform_20(%arg0: i32) -> (i32, i32, i32) {
    %c0_i32 = arith.constant 0 : i32
    %c0_i32_0 = arith.constant 0 : i32
    %c0_i32_1 = arith.constant 0 : i32
    %c0_i32_2 = arith.constant 0 : i32
    return %c0_i32, %c0_i32_0, %c0_i32_1 : i32, i32, i32
  }
  func.func @transform_21(%arg0: i32) -> (i32, i32) {
    %c0_i32 = arith.constant 0 : i32
    %c0_i32_0 = arith.constant 0 : i32
    %c0_i32_1 = arith.constant 0 : i32
    return %c0_i32, %c0_i32_0 : i32, i32
  }
  func.func @transform_22(%arg0: i32) -> (i32, i32) {
    %c0_i32 = arith.constant 0 : i32
    %c0_i32_0 = arith.constant 0 : i32
    %c0_i32_1 = arith.constant 0 : i32
    return %c0_i32, %c0_i32_0 : i32, i32
  }
  func.func @transform_23(%arg0: i32) -> (i32, i32, i32) {
    %c0_i32 = arith.constant 0 : i32
    %c0_i32_0 = arith.constant 0 : i32
    %c0_i32_1 = arith.constant 0 : i32
    return %arg0, %c0_i32, %c0_i32_0 : i32, i32, i32
  }
}

</mosaic_0001>

<bundles_post_ra>
// kernel: image_classifier_forward.1
= control target key start
LH: loop header
LB: loop body
LE: loop exit
PB: predicated region body
PF: predicated region fallthrough
CT: control target
= control target key end

     0   :  { %s8135_s0 = inlined_call_operand.vmem [shape: bf16[2,256,27], index: 0, kind: input, shape index: {}]   ;;  %s8136_s1 = inlined_call_operand.vmem [shape: bf16[27,8], index: 1, kind: input, shape index: {}]   ;;  %s8137_s2 = inlined_call_operand.vmem [shape: f32[1,8], index: 2, kind: input, shape index: {}]   ;;  %s8138_s3 = inlined_call_operand.vmem [shape: bf16[9,64,256], index: 3, kind: input, shape index: {}]   ;;  %s8139_s4 = inlined_call_operand.vmem [shape: bf16[72,16], index: 4, kind: input, shape index: {}]   ;;  %s8140_s5 = inlined_call_operand.vmem [shape: f32[1,16], index: 5, kind: input, shape index: {}]   ;;  %s8141_s6 = inlined_call_operand.vmem [shape: bf16[9,16,64], index: 6, kind: input, shape index: {}]   ;;  %s8142_s7 = inlined_call_operand.vmem [shape: bf16[144,24], index: 7, kind: input, shape index: {}]   ;;  %s8143_s8 = inlined_call_operand.vmem [shape: f32[1,24], index: 8, kind: input, shape index: {}]   ;;  %s8144_s9 = inlined_call_operand.vmem [shape: bf16[9,4,16], index: 9, kind: input, shape index: {}]   ;;  %s8145_s10 = inlined_call_operand.vmem [shape: bf16[216,32], index: 10, kind: input, shape index: {}]   ;;  %s8146_s11 = inlined_call_operand.vmem [shape: f32[1,32], index: 11, kind: input, shape index: {}]   ;;  %s8147_s12 = inlined_call_operand.vmem [shape: bf16[2,32,64], index: 12, kind: input, shape index: {}]   ;;  %s8148_s13 = inlined_call_operand.vmem [shape: f32[2,1,64], index: 13, kind: input, shape index: {}]   ;;  %s8149_s14 = inlined_call_operand.vmem [shape: f32[4,4,4], index: 14, kind: input, shape index: {}]   ;;  %s8150_s15 = inlined_call_operand.vmem [shape: bf16[2,32,32], index: 15, kind: input, shape index: {}]   ;;  %s8151_s16 = inlined_call_operand.vmem [shape: f32[2,1,32], index: 16, kind: input, shape index: {}]   ;;  %s8152_s17 = inlined_call_operand.vmem [shape: bf16[2,32,64], index: 17, kind: input, shape index: {}]   ;;  %s8153_s18 = inlined_call_operand.vmem [shape: f32[2,1,64], index: 18, kind: input, shape index: {}]   ;;  %s8154_s19 = inlined_call_operand.vmem [shape: bf16[2,64,32], index: 19, kind: input, shape index: {}]   ;;  %s8155_s20 = inlined_call_operand.vmem [shape: f32[2,1,32], index: 20, kind: input, shape index: {}]   ;;  %s8156_s21 = inlined_call_operand.vmem [shape: f32[32,2], index: 21, kind: input, shape index: {}]   ;;  %s8157_s22 = inlined_call_operand.vmem [shape: f32[1,2], index: 22, kind: input, shape index: {}]   ;;  %s8158_s23 = inlined_call_operand.vmem [shape: f32[2,8,2], index: 23, kind: output, shape index: {}]  }
   0x1   :  { %8183 = sst [smem:[#allocation2_spill]] %s8135_s0 }
   0x2   :  { %8184 = sst [smem:[#allocation3_spill]] %s8136_s1 }
   0x3   :  { %8185 = sst [smem:[#allocation4_spill]] %s8137_s2 }
   0x4   :  { %8186 = sst [smem:[#allocation5_spill]] %s8138_s3 }
   0x5   :  { %8187 = sst [smem:[#allocation6_spill]] %s8139_s4  ;;  %s6907_s4 = smov 0  }
   0x6   :  { %8188 = sst [smem:[#allocation7_spill]] %s8140_s5 }
   0x7   :  { %8189 = sst [smem:[#allocation8_spill]] %s8141_s6 }
   0x8   :  { %8190 = sst [smem:[#allocation9_spill]] %s8142_s7 }
   0x9 LB: > { %s5334_s30 = sadd.s32 4294967295, %s6766_s4   ;;  %p5338_p0 = scmp.ge.s32.totalorder %s6766_s4, 1  ;;  %s6766_s4 = sphi %s6907_s4, %s33_s4  }
   0xa   : > { %p637_p1 = scmp.lt.s32.totalorder %s6766_s4, 3 }
   0xc   : > { %p638_p2 = pnand %p5338_p0, %p637_p1 }
   0xd   : > { %s8191_s5 = sld [smem:[#allocation3_spill]] (!%p638_p2)  ;;  %vm893_vm0 = vcmask (!%p638_p2), 1044480   ;;  %vm894_vm1 = vcmask (!%p638_p2), 1045504   ;;  %p700_p3 = scmp.lt.s32.totalorder (!%p638_p2), %s5334_s30, 1  ;;  %v6768_v2 = vmov (!%p638_p2), 65535   ;;  %vm844_vm2 = vcmask (!%p638_p2), 220160  }
   0xe   : > { %641 = sbr.rel (%p638_p2) target bundleno = 6722 (0x1a42), region = 112  ;;  %v895_v3 = vsel (!%p638_p2), %vm893_vm0, 4294967295, %v6768_v2  ;;  %s8192_s7 = sld [smem:[#allocation2_spill]] (!%p638_p2)  ;;  %vm2522_vm3 = vcmask (!%p638_p2), 1043456   ;;  %vm2394_vm4 = vcmask (!%p638_p2), 64512   ;;  %vm2407_vm5 = vcmask (!%p638_p2), 130048  }
   0xf   : > { %v896_v4 = vsel (!%p638_p2), %vm894_vm1, %v895_v3, 0  ;;  %s8193_s0 = sld [smem:[#allocation5_spill]] (!%p638_p2)  ;;  %s8170_s1 = smov (!%p638_p2), 16   ;;  %vm2416_vm6 = vcmask (!%p638_p2), 195584   ;;  %vm2425_vm7 = vcmask (!%p638_p2), 261120   ;;  %vm2434_vm8 = vcmask (!%p638_p2), 326656  }
  0x10   : > { %s6770_s26 = smov (!%p638_p2), 8   ;;  %s8165_s6 = smov (!%p638_p2), 24   ;;  %vm2443_vm9 = vcmask (!%p638_p2), 392192   ;;  %vm2452_vm10 = vcmask (!%p638_p2), 457728   ;;  %vm2461_vm11 = vcmask (!%p638_p2), 523264   ;;  %vm2513_vm12 = vcmask (!%p638_p2), 588800  }
  0x11   : > { %s8168_s27 = smov (!%p638_p2), 48   ;;  %s8195_s3 = sld [smem:[#allocation6_spill]] (!%p638_p2)  ;;  %vm6778_vm13 = vmmov (!%p638_p2), 0   ;;  %vm3141_vm14 = vcmask (!%p638_p2), 654336   ;;  %vm3144_vm15 = vcmask (!%p638_p2), 785408   ;;  %vm3147_vm0 = vcmask (!%p638_p2), 916480  }
  0x12   : > { %s8166_s24 = smov (!%p638_p2), 64   ;;  %s6776_s25 = smov (!%p638_p2), 56   ;;  %vm3856_vm1 = vcmask (!%p638_p2), 719872  }
  0x13   : > { %v6561_v0 = vld [vmem:[%s8191_s5] sm:$0xff] (!%p638_p2)   ;;  %v6562_v1 = vld [vmem:[%s8191_s5 + $0x8] sm:$0x3f] (!%p638_p2)   ;;  %s8196_s29 = sld [smem:[#allocation7_spill]] (!%p638_p2) }
  0x14   : > { %6184 = vmatprep.subr.bf16.mxu0 (!%p638_p2), %v6561_v0  ;;  %6529 = vmatprep.subr.bf16.mxu1 (!%p638_p2), %v6561_v0  ;;  %v898_v5 = vand.u32 (!%p638_p2), %v6562_v1, %v896_v4 }
  0x15   : > { %6185 = vmatpush3.bf16.msra.mxu0 %v6561_v0  ;;  %6531 = vmatpush3.bf16.msra.mxu1 %v6561_v0  ;;  %s8210_s30 = smov (!%p700_p3, %s5334_s30), 1  ;;  %v6581_v22 = vld [vmem:[%s8193_s0 + $0x4] ss:$8 sps:$4 sm:$0xff]  }
  0x16   : > { %s5684_s2 = sshll.u32 %s8210_s30, 7  ;;  %6186 = vmatprep.subr.bf16.mxu0 %v898_v5  ;;  %6530 = vmatprep.subr.bf16.mxu1 %v898_v5  ;;  %v6584_v23 = vld [vmem:[%s8193_s0 + $0x84] ss:$8 sps:$4 sm:$0xff]  }
  0x17   : > { %s6927_s28 = scalar_lea.vmem %s8192_s7, %s5684_s2  ;;  %s8194_s2 = sld [smem:[#allocation4_spill]] }
  0x18   : > { %v6563_v6 = vld [vmem:[%s6927_s28] sm:$0xff]   ;;  %v6565_v8 = vld [vmem:[%s6927_s28 + $0x8] sm:$0xff]   ;;  %v6567_v10 = vld [vmem:[%s6927_s28 + $0x10] sm:$0xff]   ;;  %s8164_s7 = smov 40  }
  0x19   : > { %6187 = vmatpush3.bf16.msra.mxu0 %v898_v5  ;;  %6532 = vmatpush3.bf16.msra.mxu1 %v898_v5  ;;  %v6564_v7 = vld [vmem:[%s6927_s28 + $0x40] sm:$0xff]   ;;  %v6566_v9 = vld [vmem:[%s6927_s28 + $0x48] sm:$0xff]   ;;  %v6568_v11 = vld [vmem:[%s6927_s28 + $0x50] sm:$0xff]  }
  0x1a   : > { %6188 = vmatprep.mubr.msk.bf16.mxu0 %vm844_vm2, %v6563_v6  ;;  %6204 = vmatprep.mubr.msk.bf16.mxu1 %vm844_vm2, %v6564_v7  ;;  %v6569_v12 = vld [vmem:[%s6927_s28 + $0x18] sm:$0xff]   ;;  %v6571_v14 = vld [vmem:[%s6927_s28 + $0x20] sm:$0xff]   ;;  %v6573_v16 = vld [vmem:[%s6927_s28 + $0x28] sm:$0xff]  }
  0x1b   : > { %v6570_v13 = vld [vmem:[%s6927_s28 + $0x58] sm:$0xff]   ;;  %v6572_v15 = vld [vmem:[%s6927_s28 + $0x60] sm:$0xff]   ;;  %v6574_v17 = vld [vmem:[%s6927_s28 + $0x68] sm:$0xff]  }
  0x1c   : > { %6189 = vmatmul.mubr.msk.bf16.vlgmr.msra.gmra.mrb[0].mxu0 %vm844_vm2, %v6565_v8  ;;  %6205 = vmatmul.mubr.msk.bf16.vlgmr.msra.gmra.mrb[0].mxu1 %vm844_vm2, %v6566_v9  ;;  %v6575_v18 = vld [vmem:[%s6927_s28 + $0x30] sm:$0xff]   ;;  %v6577_v20 = vld [vmem:[%s6927_s28 + $0x38] sm:$0xff]  }
  0x1d   : > { %6192 = vmatprep.mubr.msk.bf16.mxu0 %vm844_vm2, %v6567_v10  ;;  %6208 = vmatprep.mubr.msk.bf16.mxu1 %vm844_vm2, %v6568_v11  ;;  %v6576_v19 = vld [vmem:[%s6927_s28 + $0x70] sm:$0xff]   ;;  %v6578_v21 = vld [vmem:[%s6927_s28 + $0x78] sm:$0xff]   ;;  %v6970_v24 = vld [vmem:[%s8194_s2] ss:$0 sm:$0xff]  ;;  %s6771_s2 = smov 32   ;;  %s8197_s28 = sld [smem:[#allocation8_spill]] }
  0x24   : > { %6193 = vmatmul.mubr.msk.bf16.gmra.mrb[4].mxu0 %vm844_vm2, %v6569_v12  ;;  %6209 = vmatmul.mubr.msk.bf16.gmra.mrb[4].mxu1 %vm844_vm2, %v6570_v13 }
  0x25   : > { %6196 = vmatprep.mubr.msk.bf16.mxu0 %vm844_vm2, %v6571_v14  ;;  %6212 = vmatprep.mubr.msk.bf16.mxu1 %vm844_vm2, %v6572_v15 }
  0x2c   : > { %6197 = vmatmul.mubr.msk.bf16.gmra.mrb[8].mxu0 %vm844_vm2, %v6573_v16  ;;  %6213 = vmatmul.mubr.msk.bf16.gmra.mrb[8].mxu1 %vm844_vm2, %v6574_v17 }
  0x2d   : > { %6200 = vmatprep.mubr.msk.bf16.mxu0 %vm844_vm2, %v6575_v18  ;;  %6216 = vmatprep.mubr.msk.bf16.mxu1 %vm844_vm2, %v6576_v19 }
  0x34   : > { %6201 = vmatmul.mubr.msk.bf16.gmra.mrb[12].mxu0 %vm844_vm2, %v6577_v20  ;;  %6217 = vmatmul.mubr.msk.bf16.gmra.mrb[12].mxu1 %vm844_vm2, %v6578_v21  ;;  %vm3731_vm2 = vcmask 982016  }
  0x35   : > { %1317 = vmatprep.mubr.bf16.mxu1 %v6581_v22  ;;  %1553 = vmatprep.mubr.bf16.mxu0 %v6584_v23 }
  0xef   : > { %v6190_v25 = vpop.f32.mrb[0].mxu0  ;;  %v6206_v27 = vpop.f32.mrb[0].mxu1 }
  0xf0   : > { %v943_v26 = vadd.f32 %v6190_v25, %v6970_v24  ;;  %v934_v28 = vpop.f32.mrb[1].mxu0  ;;  %v1007_v29 = vadd.f32 %v6206_v27, %v6970_v24  ;;  %v998_v31 = vpop.f32.mrb[1].mxu1 }
  0xf1   : > { %v935_v30 = vadd.f32 %v6970_v24, %v934_v28  ;;  %v6191_v32 = vpop.f32.mrb[2].mxu0  ;;  %v999_v34 = vadd.f32 %v6970_v24, %v998_v31  ;;  %v6207_v36 = vpop.f32.mrb[2].mxu1 }
  0xf2   : > { %v1063_v33 = vadd.f32 3.0, %v943_v26  ;;  %v946_v35 = vadd.f32 %v6191_v32, %v6970_v24  ;;  %v937_v37 = vpop.f32.mrb[3].mxu0  ;;  %v1079_v38 = vadd.f32 3.0, %v1007_v29  ;;  %v1010_v40 = vadd.f32 %v6207_v36, %v6970_v24  ;;  %v1001_v42 = vpop.f32.mrb[3].mxu1 }
  0xf3   : > { %v1061_v39 = vadd.f32 3.0, %v935_v30  ;;  %v938_v41 = vadd.f32 %v6970_v24, %v937_v37  ;;  %v1077_v44 = vadd.f32 3.0, %v999_v34  ;;  %v1002_v46 = vadd.f32 %v6970_v24, %v1001_v42 }
  0xf4   : > { %v1095_v43 = vmax.f32 %v1063_v33, 0.0  ;;  %v1064_v45 = vadd.f32 3.0, %v946_v35  ;;  %v1111_v47 = vmax.f32 %v1079_v38, 0.0  ;;  %v1080_v49 = vadd.f32 3.0, %v1010_v40 }
  0xf5   : > { %v1093_v48 = vmax.f32 %v1061_v39, 0.0  ;;  %v1062_v50 = vadd.f32 3.0, %v938_v41  ;;  %v1109_v52 = vmax.f32 %v1077_v44, 0.0  ;;  %v1078_v54 = vadd.f32 3.0, %v1002_v46 }
  0xf6   : > { %v1127_v51 = vmin.f32 %v1095_v43, 6.0  ;;  %v1096_v53 = vmax.f32 %v1064_v45, 0.0  ;;  %v1143_v55 = vmin.f32 %v1111_v47, 6.0  ;;  %v1112_v57 = vmax.f32 %v1080_v49, 0.0 }
  0xf7   : > { %v1125_v56 = vmin.f32 %v1093_v48, 6.0  ;;  %v1094_v58 = vmax.f32 %v1062_v50, 0.0  ;;  %v6194_v59 = vpop.f32.mrb[4].mxu0  ;;  %v1141_v61 = vmin.f32 %v1109_v52, 6.0  ;;  %v1110_v63 = vmax.f32 %v1078_v54, 0.0  ;;  %v6210_v0 = vpop.f32.mrb[4].mxu1 }
  0xf8   : > { %v1159_v60 = vmul.f32 %v1127_v51, %v943_v26  ;;  %v1128_v62 = vmin.f32 %v1096_v53, 6.0  ;;  %v950_v1 = vpop.f32.mrb[5].mxu0  ;;  %v1175_v2 = vmul.f32 %v1143_v55, %v1007_v29  ;;  %v1144_v4 = vmin.f32 %v1112_v57, 6.0  ;;  %v1014_v6 = vpop.f32.mrb[5].mxu1 }
  0xf9   : > { %v1157_v3 = vmul.f32 %v1125_v56, %v935_v30  ;;  %v1126_v5 = vmin.f32 %v1094_v58, 6.0  ;;  %v6195_v7 = vpop.f32.mrb[6].mxu0  ;;  %v1173_v9 = vmul.f32 %v1141_v61, %v999_v34  ;;  %v1142_v11 = vmin.f32 %v1110_v63, 6.0  ;;  %v6211_v12 = vpop.f32.mrb[6].mxu1 }
  0xfa   : > { %v1191_v8 = vmul.f32 0.16666667, %v1159_v60  ;;  %v1160_v10 = vmul.f32 %v1128_v62, %v946_v35  ;;  %v953_v13 = vpop.f32.mrb[7].mxu0  ;;  %v1207_v14 = vmul.f32 0.16666667, %v1175_v2  ;;  %v1176_v16 = vmul.f32 %v1144_v4, %v1010_v40  ;;  %v1017_v18 = vpop.f32.mrb[7].mxu1 }
  0xfb   : > { %v1189_v15 = vmul.f32 0.16666667, %v1157_v3  ;;  %v1158_v17 = vmul.f32 %v1126_v5, %v938_v41  ;;  %v1205_v19 = vmul.f32 0.16666667, %v1173_v9  ;;  %v1174_v21 = vmul.f32 %v1142_v11, %v1002_v46 }
  0xfc   : > { %v1192_v20 = vmul.f32 0.16666667, %v1160_v10  ;;  %v959_v22 = vadd.f32 %v6194_v59, %v6970_v24  ;;  %v1208_v23 = vmul.f32 0.16666667, %v1176_v16  ;;  %v1023_v26 = vadd.f32 %v6210_v0, %v6970_v24 }
  0xfd   : > { %v1190_v25 = vmul.f32 0.16666667, %v1158_v17  ;;  %v951_v27 = vadd.f32 %v6970_v24, %v950_v1  ;;  %v1206_v29 = vmul.f32 0.16666667, %v1174_v21  ;;  %v1015_v31 = vadd.f32 %v6970_v24, %v1014_v6 }
  0xfe   : > { %v6983_v28 = vpack.c.bf16 %v1192_v20, %v1191_v8  ;;  %v1067_v30 = vadd.f32 3.0, %v959_v22  ;;  %v6986_v32 = vpack.c.bf16 %v1208_v23, %v1207_v14  ;;  %v1083_v34 = vadd.f32 3.0, %v1023_v26 }
  0xff   : > { %v6988_v33 = vpack.c.bf16 %v1190_v25, %v1189_v15  ;;  %v1065_v35 = vadd.f32 3.0, %v951_v27  ;;  %v6198_v36 = vpop.f32.mrb[8].mxu0  ;;  %v6990_v37 = vpack.c.bf16 %v1206_v29, %v1205_v19  ;;  %v1081_v39 = vadd.f32 3.0, %v1015_v31  ;;  %v6214_v41 = vpop.f32.mrb[8].mxu1 }
 0x100   : > { %v1099_v38 = vmax.f32 %v1067_v30, 0.0  ;;  %v962_v40 = vadd.f32 %v6195_v7, %v6970_v24  ;;  %v966_v42 = vpop.f32.mrb[9].mxu0  ;;  %v1115_v43 = vmax.f32 %v1083_v34, 0.0  ;;  %v1026_v45 = vadd.f32 %v6211_v12, %v6970_v24  ;;  %v1030_v47 = vpop.f32.mrb[9].mxu1 }
 0x101   : > { %v1097_v44 = vmax.f32 %v1065_v35, 0.0  ;;  %v954_v46 = vadd.f32 %v6970_v24, %v953_v13  ;;  %v6995_v48 = vpop.f32.mrb[10].mxu0  ;;  %v1113_v50 = vmax.f32 %v1081_v39, 0.0  ;;  %v1018_v52 = vadd.f32 %v6970_v24, %v1017_v18  ;;  %v6998_v53 = vpop.f32.mrb[10].mxu1  ;;  %5703 = vmatprep.subr.bf16.mxu1 %v6990_v37  ;;  %5783 = vmatprep.subr.bf16.mxu0 %v6990_v37 }
 0x102   : > { %v1131_v49 = vmin.f32 %v1099_v38, 6.0  ;;  %v1068_v51 = vadd.f32 3.0, %v962_v40  ;;  %v7002_v54 = vpop.f32.mrb[11].mxu0  ;;  %v1147_v55 = vmin.f32 %v1115_v43, 6.0  ;;  %v1084_v57 = vadd.f32 3.0, %v1026_v45  ;;  %v7004_v59 = vpop.f32.mrb[11].mxu1  ;;  %5704 = vmatpush3.bf16.msra.mxu1 %v6988_v33  ;;  %5784 = vmatpush3.bf16.msra.mxu0 %v6988_v33 }
 0x103   : > { %v1129_v56 = vmin.f32 %v1097_v44, 6.0  ;;  %v1066_v58 = vadd.f32 3.0, %v954_v46  ;;  %v1145_v61 = vmin.f32 %v1113_v50, 6.0  ;;  %v1082_v63 = vadd.f32 3.0, %v1018_v52  ;;  %5705 = vmatprep.subr.bf16.mxu1 %v6986_v32  ;;  %5785 = vmatprep.subr.bf16.mxu0 %v6986_v32 }
 0x104   : > { %v1163_v60 = vmul.f32 %v1131_v49, %v959_v22  ;;  %v1100_v62 = vmax.f32 %v1068_v51, 0.0  ;;  %v1179_v0 = vmul.f32 %v1147_v55, %v1023_v26  ;;  %v1116_v2 = vmax.f32 %v1084_v57, 0.0 }
 0x105   : > { %v1161_v1 = vmul.f32 %v1129_v56, %v951_v27  ;;  %v1098_v3 = vmax.f32 %v1066_v58, 0.0  ;;  %v1177_v5 = vmul.f32 %v1145_v61, %v1015_v31  ;;  %v1114_v7 = vmax.f32 %v1082_v63, 0.0 }
 0x106   : > { %v1195_v4 = vmul.f32 0.16666667, %v1163_v60  ;;  %v1132_v6 = vmin.f32 %v1100_v62, 6.0  ;;  %v1211_v8 = vmul.f32 0.16666667, %v1179_v0  ;;  %v1148_v10 = vmin.f32 %v1116_v2, 6.0  ;;  %5706 = vmatpush3.bf16.msra.mxu1 %v6983_v28  ;;  %5786 = vmatpush3.bf16.msra.mxu0 %v6983_v28 }
 0x107   : > { %v1193_v9 = vmul.f32 0.16666667, %v1161_v1  ;;  %v1130_v11 = vmin.f32 %v1098_v3, 6.0  ;;  %v1209_v12 = vmul.f32 0.16666667, %v1177_v5  ;;  %v1146_v14 = vmin.f32 %v1114_v7, 6.0 }
 0x108   : > { %v1164_v13 = vmul.f32 %v1132_v6, %v962_v40  ;;  %v975_v15 = vadd.f32 %v6198_v36, %v6970_v24  ;;  %v6202_v16 = vpop.f32.mrb[12].mxu0  ;;  %v6218_v17 = vpop.f32.mrb[12].mxu1  ;;  %v1180_v18 = vmul.f32 %v1148_v10, %v1026_v45  ;;  %v1039_v20 = vadd.f32 %v6214_v41, %v6970_v24 }
 0x109   : > { %v1162_v19 = vmul.f32 %v1130_v11, %v954_v46  ;;  %v967_v21 = vadd.f32 %v6970_v24, %v966_v42  ;;  %v982_v22 = vpop.f32.mrb[13].mxu0  ;;  %v1046_v23 = vpop.f32.mrb[13].mxu1  ;;  %v1178_v26 = vmul.f32 %v1146_v14, %v1018_v52  ;;  %v1031_v29 = vadd.f32 %v6970_v24, %v1030_v47 }
 0x10a   : > { %v1196_v25 = vmul.f32 0.16666667, %v1164_v13  ;;  %v1071_v27 = vadd.f32 3.0, %v975_v15  ;;  %v7016_v30 = vpop.f32.mrb[14].mxu0  ;;  %v7018_v31 = vpop.f32.mrb[14].mxu1  ;;  %v1087_v36 = vadd.f32 3.0, %v1039_v20  ;;  %v978_v55 = vadd.f32 %v6995_v48, %v6970_v24 }
 0x10b   : > { %v1212_v34 = vmul.f32 0.16666667, %v1180_v18  ;;  %v1194_v35 = vmul.f32 0.16666667, %v1162_v19  ;;  %v1069_v38 = vadd.f32 3.0, %v967_v21  ;;  %v1085_v42 = vadd.f32 3.0, %v1031_v29 }
 0x10c   : > { %v7020_v39 = vpack.c.bf16 %v1196_v25, %v1195_v4  ;;  %v1210_v40 = vmul.f32 0.16666667, %v1178_v26  ;;  %v1103_v41 = vmax.f32 %v1071_v27, 0.0  ;;  %v7022_v43 = vpop.f32.mrb[15].mxu0  ;;  %v7024_v44 = vpop.f32.mrb[15].mxu1  ;;  %v1119_v47 = vmax.f32 %v1087_v36, 0.0 }
 0x10d   : > { %v7026_v45 = vpack.c.bf16 %v1212_v34, %v1211_v8  ;;  %v7028_v46 = vpack.c.bf16 %v1194_v35, %v1193_v9  ;;  %v1101_v49 = vmax.f32 %v1069_v38, 0.0  ;;  %v1117_v52 = vmax.f32 %v1085_v42, 0.0 }
 0x10e   : > { %v7030_v50 = vpack.c.bf16 %v1210_v40, %v1209_v12  ;;  %v1135_v51 = vmin.f32 %v1103_v41, 6.0  ;;  %v1151_v56 = vmin.f32 %v1119_v47, 6.0  ;;  %v1042_v58 = vadd.f32 %v6998_v53, %v6970_v24 }
 0x10f   : > { %v1133_v57 = vmin.f32 %v1101_v49, 6.0  ;;  %v970_v60 = vadd.f32 %v6970_v24, %v7002_v54  ;;  %v1149_v62 = vmin.f32 %v1117_v52, 6.0  ;;  %v1072_v63 = vadd.f32 3.0, %v978_v55 }
 0x110   : > { %v1167_v61 = vmul.f32 %v1135_v51, %v975_v15  ;;  %v1034_v0 = vadd.f32 %v6970_v24, %v7004_v59  ;;  %5707 = vmatprep.subr.bf16.mxu1 %v7030_v50  ;;  %5787 = vmatprep.subr.bf16.mxu0 %v7030_v50  ;;  %v1183_v1 = vmul.f32 %v1151_v56, %v1039_v20  ;;  %v1088_v48 = vadd.f32 3.0, %v1042_v58 }
 0x111   : > { %v1070_v2 = vadd.f32 3.0, %v970_v60  ;;  %5708 = vmatpush3.bf16.msra.mxu1 %v7028_v46  ;;  %5788 = vmatpush3.bf16.msra.mxu0 %v7028_v46  ;;  %v1165_v53 = vmul.f32 %v1133_v57, %v967_v21  ;;  %v1104_v3 = vmax.f32 %v1072_v63, 0.0  ;;  %v1181_v59 = vmul.f32 %v1149_v62, %v1031_v29 }
 0x112   : > { %v1086_v54 = vadd.f32 3.0, %v1034_v0  ;;  %5709 = vmatprep.subr.bf16.mxu1 %v7026_v45  ;;  %5789 = vmatprep.subr.bf16.mxu0 %v7026_v45  ;;  %v1199_v4 = vmul.f32 0.16666667, %v1167_v61  ;;  %v1120_v5 = vmax.f32 %v1088_v48, 0.0  ;;  %v1215_v7 = vmul.f32 0.16666667, %v1183_v1 }
 0x113   : > { %v1102_v6 = vmax.f32 %v1070_v2, 0.0  ;;  %v1136_v8 = vmin.f32 %v1104_v3, 6.0  ;;  %v991_v10 = vadd.f32 %v6202_v16, %v6970_v24  ;;  %v1055_v13 = vadd.f32 %v6218_v17, %v6970_v24 }
 0x114   : > { %v1118_v9 = vmax.f32 %v1086_v54, 0.0  ;;  %v1152_v11 = vmin.f32 %v1120_v5, 6.0  ;;  %v983_v14 = vadd.f32 %v6970_v24, %v982_v22  ;;  %v1047_v20 = vadd.f32 %v6970_v24, %v1046_v23 }
 0x115   : > { %v1134_v12 = vmin.f32 %v1102_v6, 6.0  ;;  %5710 = vmatpush3.bf16.msra.mxu1 %v7020_v39  ;;  %5790 = vmatpush3.bf16.msra.mxu0 %v7020_v39  ;;  %v1168_v15 = vmul.f32 %v1136_v8, %v978_v55  ;;  %v1075_v19 = vadd.f32 3.0, %v991_v10  ;;  %v1091_v26 = vadd.f32 3.0, %v1055_v13 }
 0x116   : > { %v1150_v18 = vmin.f32 %v1118_v9, 6.0  ;;  %v1184_v21 = vmul.f32 %v1152_v11, %v1042_v58  ;;  %v1073_v27 = vadd.f32 3.0, %v983_v14  ;;  %v1197_v16 = vmul.f32 0.16666667, %v1165_v53 }
 0x117   : > { %v1166_v25 = vmul.f32 %v1134_v12, %v970_v60  ;;  %v1200_v29 = vmul.f32 0.16666667, %v1168_v15  ;;  %v1089_v35 = vadd.f32 3.0, %v1047_v20  ;;  %v1213_v17 = vmul.f32 0.16666667, %v1181_v59 }
 0x118   : > { %v1182_v34 = vmul.f32 %v1150_v18, %v1034_v0  ;;  %v1216_v36 = vmul.f32 0.16666667, %v1184_v21  ;;  %v1107_v41 = vmax.f32 %v1075_v19, 0.0  ;;  %v1123_v42 = vmax.f32 %v1091_v26, 0.0 }
 0x119   : > { %v1198_v22 = vmul.f32 0.16666667, %v1166_v25  ;;  %v7052_v38 = vpack.c.bf16 %v1200_v29, %v1199_v4  ;;  %v1105_v23 = vmax.f32 %v1073_v27, 0.0  ;;  %v1121_v52 = vmax.f32 %v1089_v35, 0.0  ;;  %v6582_v29 = vld [vmem:[%s8193_s0 + $0x80] ss:$8 sps:$4 sm:$0xff]  }
 0x11a   : > { %v1214_v40 = vmul.f32 0.16666667, %v1182_v34  ;;  %v7054_v47 = vpack.c.bf16 %v1216_v36, %v1215_v7  ;;  %v994_v55 = vadd.f32 %v7016_v30, %v6970_v24  ;;  %v1058_v56 = vadd.f32 %v7018_v31, %v6970_v24  ;;  %v6585_v34 = vld [vmem:[%s8193_s0 + $0x14] ss:$8 sps:$4 sm:$0xff]   ;;  %v6590_v36 = vld [vmem:[%s8193_s0 + $0x90] ss:$8 sps:$4 sm:$0xff]  }
 0x11b   : > { %v7056_v49 = vpack.c.bf16 %v1198_v22, %v1197_v16  ;;  %v986_v57 = vadd.f32 %v6970_v24, %v7022_v43  ;;  %v1139_v58 = vmin.f32 %v1107_v41, 6.0  ;;  %v1155_v60 = vmin.f32 %v1123_v42, 6.0  ;;  %v6579_v16 = vld [vmem:[%s8193_s0] ss:$8 sps:$4 sm:$0xff]   ;;  %v6588_v35 = vld [vmem:[%s8193_s0 + $0x94] ss:$8 sps:$4 sm:$0xff]  }
 0x11c   : > { %v7058_v51 = vpack.c.bf16 %v1214_v40, %v1213_v17  ;;  %v1076_v61 = vadd.f32 3.0, %v994_v55  ;;  %v1050_v62 = vadd.f32 %v6970_v24, %v7024_v44  ;;  %v1137_v63 = vmin.f32 %v1105_v23, 6.0  ;;  %v6587_v17 = vld [vmem:[%s8193_s0 + $0x10] ss:$8 sps:$4 sm:$0xff]   ;;  %v6591_v22 = vld [vmem:[%s8193_s0 + $0x24] ss:$8 sps:$4 sm:$0xff]  }
 0x11d   : > { %v1092_v0 = vadd.f32 3.0, %v1058_v56  ;;  %v1074_v1 = vadd.f32 3.0, %v986_v57  ;;  %v1153_v30 = vmin.f32 %v1121_v52, 6.0  ;;  %v1171_v44 = vmul.f32 %v1139_v58, %v991_v10  ;;  %v6594_v40 = vld [vmem:[%s8193_s0 + $0xa4] ss:$8 sps:$4 sm:$0xff]  }
 0x11e   : > { %5711 = vmatprep.subr.bf16.mxu1 %v7058_v51  ;;  %5791 = vmatprep.subr.bf16.mxu0 %v7058_v51  ;;  %v1108_v31 = vmax.f32 %v1076_v61, 0.0  ;;  %v1090_v43 = vadd.f32 3.0, %v1050_v62  ;;  %v1187_v2 = vmul.f32 %v1155_v60, %v1055_v13  ;;  %v1169_v54 = vmul.f32 %v1137_v63, %v983_v14  ;;  %v6593_v41 = vld [vmem:[%s8193_s0 + $0x20] ss:$8 sps:$4 sm:$0xff]   ;;  %v6597_v23 = vld [vmem:[%s8193_s0 + $0x34] ss:$8 sps:$4 sm:$0xff]  }
 0x11f   : > { %5712 = vmatpush3.bf16.msra.mxu1 %v7056_v49  ;;  %5792 = vmatpush3.bf16.msra.mxu0 %v7056_v49  ;;  %v1124_v48 = vmax.f32 %v1092_v0, 0.0  ;;  %v1106_v24 = vmax.f32 %v1074_v1, 0.0  ;;  %v1185_v5 = vmul.f32 %v1153_v30, %v1047_v20  ;;  %v1203_v11 = vmul.f32 0.16666667, %v1171_v44  ;;  %v6596_v42 = vld [vmem:[%s8193_s0 + $0xa0] ss:$8 sps:$4 sm:$0xff]  }
 0x120   : > { %5713 = vmatprep.subr.bf16.mxu1 %v7054_v47  ;;  %5793 = vmatprep.subr.bf16.mxu0 %v7054_v47  ;;  %v1140_v53 = vmin.f32 %v1108_v31, 6.0  ;;  %v1122_v3 = vmax.f32 %v1090_v43, 0.0  ;;  %v1219_v12 = vmul.f32 0.16666667, %v1187_v2  ;;  %v1201_v10 = vmul.f32 0.16666667, %v1169_v54 }
 0x121   : > { %v1156_v4 = vmin.f32 %v1124_v48, 6.0  ;;  %v1138_v59 = vmin.f32 %v1106_v24, 6.0  ;;  %v1217_v21 = vmul.f32 0.16666667, %v1185_v5  ;;  %v6600_v52 = vld [vmem:[%s8193_s0 + $0xb4] ss:$8 sps:$4 sm:$0xff]  }
 0x122   : > { %v1172_v6 = vmul.f32 %v1140_v53, %v994_v55  ;;  %v1154_v7 = vmin.f32 %v1122_v3, 6.0  ;;  %v6599_v55 = vld [vmem:[%s8193_s0 + $0x30] ss:$8 sps:$4 sm:$0xff]   ;;  %v6608_v58 = vld [vmem:[%s8193_s0 + $0x104] ss:$8 sps:$4 sm:$0xff]  }
 0x123   : > { %5714 = vmatpush3.bf16.msra.mxu1 %v7052_v38  ;;  %5794 = vmatpush3.bf16.msra.mxu0 %v7052_v38  ;;  %v1188_v8 = vmul.f32 %v1156_v4, %v1058_v56  ;;  %v1170_v9 = vmul.f32 %v1138_v59, %v986_v57  ;;  %v6602_v56 = vld [vmem:[%s8193_s0 + $0xb0] ss:$8 sps:$4 sm:$0xff]   ;;  %v6605_v57 = vld [vmem:[%s8193_s0 + $0x44] ss:$8 sps:$4 sm:$0xff]   ;;  %v6603_v60 = vld [vmem:[%s8193_s0 + $0x40] ss:$8 sps:$4 sm:$0xff]  }
 0x124   : > { %v1204_v15 = vmul.f32 0.16666667, %v1172_v6  ;;  %v1186_v18 = vmul.f32 %v1154_v7, %v1050_v62  ;;  %v6606_v61 = vld [vmem:[%s8193_s0 + $0x100] ss:$8 sps:$4 sm:$0xff]   ;;  %v6609_v62 = vld [vmem:[%s8193_s0 + $0x54] ss:$8 sps:$4 sm:$0xff]  }
 0x125   : > { %v1220_v13 = vmul.f32 0.16666667, %v1188_v8  ;;  %v1202_v19 = vmul.f32 0.16666667, %v1170_v9  ;;  %v6612_v63 = vld [vmem:[%s8193_s0 + $0x114] ss:$8 sps:$4 sm:$0xff]  }
 0x126   : > { %v7076_v14 = vpack.c.bf16 %v1204_v15, %v1203_v11  ;;  %v1218_v25 = vmul.f32 0.16666667, %v1186_v18  ;;  %v6611_v0 = vld [vmem:[%s8193_s0 + $0x50] ss:$8 sps:$4 sm:$0xff]   ;;  %v6615_v30 = vld [vmem:[%s8193_s0 + $0x64] ss:$8 sps:$4 sm:$0xff]  }
 0x127   : > { %v7078_v26 = vpack.c.bf16 %v1220_v13, %v1219_v12  ;;  %v7080_v27 = vpack.c.bf16 %v1202_v19, %v1201_v10  ;;  %v6614_v1 = vld [vmem:[%s8193_s0 + $0x110] ss:$8 sps:$4 sm:$0xff]   ;;  %v6618_v31 = vld [vmem:[%s8193_s0 + $0x124] ss:$8 sps:$4 sm:$0xff]   ;;  %v6617_v43 = vld [vmem:[%s8193_s0 + $0x60] ss:$8 sps:$4 sm:$0xff]  }
 0x128   : > { %v7082_v20 = vpack.c.bf16 %v1218_v25, %v1217_v21  ;;  %v6620_v48 = vld [vmem:[%s8193_s0 + $0x120] ss:$8 sps:$4 sm:$0xff]   ;;  %v6621_v24 = vld [vmem:[%s8193_s0 + $0x74] ss:$8 sps:$4 sm:$0xff]   ;;  %v6623_v2 = vld [vmem:[%s8193_s0 + $0x70] ss:$8 sps:$4 sm:$0xff]  }
 0x129   : > { %v6624_v44 = vld [vmem:[%s8193_s0 + $0x134] ss:$8 sps:$4 sm:$0xff]   ;;  %v6626_v53 = vld [vmem:[%s8193_s0 + $0x130] ss:$8 sps:$4 sm:$0xff]   ;;  %v6629_v3 = vld [vmem:[%s8193_s0 + $0xc4] ss:$8 sps:$4 sm:$0xff]  }
 0x12a   : > { %5715 = vmatprep.subr.bf16.mxu1 %v7082_v20  ;;  %5795 = vmatprep.subr.bf16.mxu0 %v7082_v20  ;;  %v6632_v54 = vld [vmem:[%s8193_s0 + $0x184] ss:$8 sps:$4 sm:$0xff]   ;;  %v6627_v4 = vld [vmem:[%s8193_s0 + $0xc0] ss:$8 sps:$4 sm:$0xff]   ;;  %v6633_v5 = vld [vmem:[%s8193_s0 + $0xd4] ss:$8 sps:$4 sm:$0xff]  }
 0x12b   : > { %5716 = vmatpush3.bf16.msra.mxu1 %v7080_v27  ;;  %5796 = vmatpush3.bf16.msra.mxu0 %v7080_v27  ;;  %v6630_v59 = vld [vmem:[%s8193_s0 + $0x180] ss:$8 sps:$4 sm:$0xff]   ;;  %v6636_v6 = vld [vmem:[%s8193_s0 + $0x194] ss:$8 sps:$4 sm:$0xff]   ;;  %v6635_v7 = vld [vmem:[%s8193_s0 + $0xd0] ss:$8 sps:$4 sm:$0xff]  }
 0x12c   : > { %5717 = vmatprep.subr.bf16.mxu1 %v7078_v26  ;;  %5797 = vmatprep.subr.bf16.mxu0 %v7078_v26  ;;  %v6638_v8 = vld [vmem:[%s8193_s0 + $0x190] ss:$8 sps:$4 sm:$0xff]   ;;  %v6639_v9 = vld [vmem:[%s8193_s0 + $0xe4] ss:$8 sps:$4 sm:$0xff]   ;;  %v6641_v12 = vld [vmem:[%s8193_s0 + $0xe0] ss:$8 sps:$4 sm:$0xff]  }
 0x12d   : > { %v6642_v11 = vld [vmem:[%s8193_s0 + $0x1a4] ss:$8 sps:$4 sm:$0xff]   ;;  %v6644_v15 = vld [vmem:[%s8193_s0 + $0x1a0] ss:$8 sps:$4 sm:$0xff]   ;;  %v6645_v18 = vld [vmem:[%s8193_s0 + $0xf4] ss:$8 sps:$4 sm:$0xff]  }
 0x12e   : > { %v6648_v10 = vld [vmem:[%s8193_s0 + $0x1b4] ss:$8 sps:$4 sm:$0xff]   ;;  %v6647_v13 = vld [vmem:[%s8193_s0 + $0xf0] ss:$8 sps:$4 sm:$0xff]   ;;  %v6653_v21 = vld [vmem:[%s8193_s0 + $0x144] ss:$8 sps:$4 sm:$0xff]  }
 0x12f   : > { %5718 = vmatpush3.bf16.msra.mxu1 %v7076_v14  ;;  %5798 = vmatpush3.bf16.msra.mxu0 %v7076_v14  ;;  %v6650_v19 = vld [vmem:[%s8193_s0 + $0x1b0] ss:$8 sps:$4 sm:$0xff]   ;;  %v6656_v25 = vld [vmem:[%s8193_s0 + $0x204] ss:$8 sps:$4 sm:$0xff]  }
 0x130   : > { %5743 = vmatprep.subr.bf16.mxu1 %v6990_v37  ;;  %5863 = vmatprep.subr.bf16.mxu0 %v6990_v37 }
 0x132   : > { %1318 = vmatmul.mubr.bf16.vlgmr.msra.gmra.mrb[16].mxu1 %v6579_v16  ;;  %1554 = vmatmul.mubr.bf16.vlgmr.msra.gmra.mrb[16].mxu0 %v6582_v29  ;;  %v6651_v16 = vld [vmem:[%s8193_s0 + $0x140] ss:$8 sps:$4 sm:$0xff]  }
 0x133   : > { %5744 = vmatpush3.bf16.msra.mxu1 %v6988_v33  ;;  %5864 = vmatpush3.bf16.msra.mxu0 %v6988_v33  ;;  %v6654_v29 = vld [vmem:[%s8193_s0 + $0x200] ss:$8 sps:$4 sm:$0xff]  }
 0x134   : > { %5745 = vmatprep.subr.bf16.mxu1 %v6986_v32  ;;  %5865 = vmatprep.subr.bf16.mxu0 %v6986_v32 }
 0x135   : > { %1325 = vmatprep.mubr.bf16.mxu1 %v6585_v34  ;;  %1561 = vmatprep.mubr.bf16.mxu0 %v6588_v35  ;;  %v6657_v34 = vld [vmem:[%s8193_s0 + $0x154] ss:$8 sps:$4 sm:$0xff]  }
 0x136   : > { %v6660_v35 = vld [vmem:[%s8193_s0 + $0x214] ss:$8 sps:$4 sm:$0xff]  }
 0x137   : > { %5746 = vmatpush3.bf16.msra.mxu1 %v6983_v28  ;;  %5866 = vmatpush3.bf16.msra.mxu0 %v6983_v28 }
 0x138   : > { %5747 = vmatprep.subr.bf16.mxu1 %v7030_v50  ;;  %5867 = vmatprep.subr.bf16.mxu0 %v7030_v50 }
 0x13a   : > { %1326 = vmatmul.mubr.bf16.gmra.mrb[20].mxu1 %v6587_v17  ;;  %1562 = vmatmul.mubr.bf16.gmra.mrb[20].mxu0 %v6590_v36  ;;  %v6659_v17 = vld [vmem:[%s8193_s0 + $0x150] ss:$8 sps:$4 sm:$0xff]   ;;  %v6663_v36 = vld [vmem:[%s8193_s0 + $0x164] ss:$8 sps:$4 sm:$0xff]  }
 0x13b   : > { %5748 = vmatpush3.bf16.msra.mxu1 %v7028_v46  ;;  %5868 = vmatpush3.bf16.msra.mxu0 %v7028_v46 }
 0x13c   : > { %5749 = vmatprep.subr.bf16.mxu1 %v7026_v45  ;;  %5869 = vmatprep.subr.bf16.mxu0 %v7026_v45 }
 0x13d   : > { %1333 = vmatprep.mubr.bf16.mxu1 %v6591_v22  ;;  %1569 = vmatprep.mubr.bf16.mxu0 %v6594_v40 }
 0x13f   : > { %5750 = vmatpush3.bf16.msra.mxu1 %v7020_v39  ;;  %5870 = vmatpush3.bf16.msra.mxu0 %v7020_v39 }
 0x140   : > { %5751 = vmatprep.subr.bf16.mxu1 %v7058_v51  ;;  %5871 = vmatprep.subr.bf16.mxu0 %v7058_v51 }
 0x142   : > { %1334 = vmatmul.mubr.bf16.gmra.mrb[24].mxu1 %v6593_v41  ;;  %1570 = vmatmul.mubr.bf16.gmra.mrb[24].mxu0 %v6596_v42 }
 0x143   : > { %5752 = vmatpush3.bf16.msra.mxu1 %v7056_v49  ;;  %5872 = vmatpush3.bf16.msra.mxu0 %v7056_v49 }
 0x144   : > { %5753 = vmatprep.subr.bf16.mxu1 %v7054_v47  ;;  %5873 = vmatprep.subr.bf16.mxu0 %v7054_v47 }
 0x145   : > { %1341 = vmatprep.mubr.bf16.mxu1 %v6597_v23  ;;  %1577 = vmatprep.mubr.bf16.mxu0 %v6600_v52 }
 0x147   : > { %5754 = vmatpush3.bf16.msra.mxu1 %v7052_v38  ;;  %5874 = vmatpush3.bf16.msra.mxu0 %v7052_v38 }
 0x148   : > { %5755 = vmatprep.subr.bf16.mxu1 %v7082_v20  ;;  %5875 = vmatprep.subr.bf16.mxu0 %v7082_v20 }
 0x14a   : > { %1342 = vmatmul.mubr.bf16.gmra.mrb[28].mxu1 %v6599_v55  ;;  %1578 = vmatmul.mubr.bf16.gmra.mrb[28].mxu0 %v6602_v56 }
 0x14b   : > { %5756 = vmatpush3.bf16.msra.mxu1 %v7080_v27  ;;  %5876 = vmatpush3.bf16.msra.mxu0 %v7080_v27 }
 0x14c   : > { %5757 = vmatprep.subr.bf16.mxu1 %v7078_v26  ;;  %5877 = vmatprep.subr.bf16.mxu0 %v7078_v26 }
 0x14d   : > { %1435 = vmatprep.mubr.bf16.mxu1 %v6605_v57  ;;  %1789 = vmatprep.mubr.bf16.mxu0 %v6608_v58 }
 0x14f   : > { %5758 = vmatpush3.bf16.msra.mxu1 %v7076_v14  ;;  %5878 = vmatpush3.bf16.msra.mxu0 %v7076_v14 }
 0x150   : > { %5823 = vmatprep.subr.bf16.mxu1 %v6990_v37  ;;  %5943 = vmatprep.subr.bf16.mxu0 %v6990_v37 }
 0x152   : > { %1436 = vmatmul.mubr.bf16.vlgmr.msra.gmra.mrb[32].mxu1 %v6603_v60  ;;  %1790 = vmatmul.mubr.bf16.vlgmr.msra.gmra.mrb[32].mxu0 %v6606_v61 }
 0x153   : > { %5824 = vmatpush3.bf16.msra.mxu1 %v6988_v33  ;;  %5944 = vmatpush3.bf16.msra.mxu0 %v6988_v33 }
 0x154   : > { %5825 = vmatprep.subr.bf16.mxu1 %v6986_v32  ;;  %5945 = vmatprep.subr.bf16.mxu0 %v6986_v32 }
 0x155   : > { %1443 = vmatprep.mubr.bf16.mxu1 %v6609_v62  ;;  %1797 = vmatprep.mubr.bf16.mxu0 %v6612_v63 }
 0x157   : > { %5826 = vmatpush3.bf16.msra.mxu1 %v6983_v28  ;;  %5946 = vmatpush3.bf16.msra.mxu0 %v6983_v28 }
 0x158   : > { %5827 = vmatprep.subr.bf16.mxu1 %v7030_v50  ;;  %5947 = vmatprep.subr.bf16.mxu0 %v7030_v50 }
 0x15a   : > { %1444 = vmatmul.mubr.bf16.gmra.mrb[36].mxu1 %v6611_v0  ;;  %1798 = vmatmul.mubr.bf16.gmra.mrb[36].mxu0 %v6614_v1 }
 0x15b   : > { %5828 = vmatpush3.bf16.msra.mxu1 %v7028_v46  ;;  %5948 = vmatpush3.bf16.msra.mxu0 %v7028_v46 }
 0x15c   : > { %5829 = vmatprep.subr.bf16.mxu1 %v7026_v45  ;;  %5949 = vmatprep.subr.bf16.mxu0 %v7026_v45 }
 0x15d   : > { %1451 = vmatprep.mubr.bf16.mxu1 %v6615_v30  ;;  %1805 = vmatprep.mubr.bf16.mxu0 %v6618_v31 }
 0x15f   : > { %5830 = vmatpush3.bf16.msra.mxu1 %v7020_v39  ;;  %5950 = vmatpush3.bf16.msra.mxu0 %v7020_v39 }
 0x160   : > { %5831 = vmatprep.subr.bf16.mxu1 %v7058_v51  ;;  %5951 = vmatprep.subr.bf16.mxu0 %v7058_v51 }
 0x162   : > { %1452 = vmatmul.mubr.bf16.gmra.mrb[40].mxu1 %v6617_v43  ;;  %1806 = vmatmul.mubr.bf16.gmra.mrb[40].mxu0 %v6620_v48 }
 0x163   : > { %5832 = vmatpush3.bf16.msra.mxu1 %v7056_v49  ;;  %5952 = vmatpush3.bf16.msra.mxu0 %v7056_v49 }
 0x164   : > { %5833 = vmatprep.subr.bf16.mxu1 %v7054_v47  ;;  %5953 = vmatprep.subr.bf16.mxu0 %v7054_v47 }
 0x165   : > { %1459 = vmatprep.mubr.bf16.mxu1 %v6621_v24  ;;  %1813 = vmatprep.mubr.bf16.mxu0 %v6624_v44 }
 0x167   : > { %5834 = vmatpush3.bf16.msra.mxu1 %v7052_v38  ;;  %5954 = vmatpush3.bf16.msra.mxu0 %v7052_v38 }
 0x168   : > { %5835 = vmatprep.subr.bf16.mxu1 %v7082_v20  ;;  %5955 = vmatprep.subr.bf16.mxu0 %v7082_v20 }
 0x16a   : > { %1460 = vmatmul.mubr.bf16.gmra.mrb[44].mxu1 %v6623_v2  ;;  %1814 = vmatmul.mubr.bf16.gmra.mrb[44].mxu0 %v6626_v53 }
 0x16b   : > { %5836 = vmatpush3.bf16.msra.mxu1 %v7080_v27  ;;  %5956 = vmatpush3.bf16.msra.mxu0 %v7080_v27 }
 0x16c   : > { %5837 = vmatprep.subr.bf16.mxu1 %v7078_v26  ;;  %5957 = vmatprep.subr.bf16.mxu0 %v7078_v26 }
 0x16d   : > { %1671 = vmatprep.mubr.bf16.mxu1 %v6629_v3  ;;  %2025 = vmatprep.mubr.bf16.mxu0 %v6632_v54 }
 0x16f   : > { %5838 = vmatpush3.bf16.msra.mxu1 %v7076_v14  ;;  %5958 = vmatpush3.bf16.msra.mxu0 %v7076_v14 }
 0x170   : > { %5903 = vmatprep.subr.bf16.mxu1 %v6990_v37  ;;  %6023 = vmatprep.subr.bf16.mxu0 %v6990_v37 }
 0x172   : > { %1672 = vmatmul.mubr.bf16.vlgmr.msra.gmra.mrb[48].mxu1 %v6627_v4  ;;  %2026 = vmatmul.mubr.bf16.vlgmr.msra.gmra.mrb[48].mxu0 %v6630_v59 }
 0x173   : > { %5904 = vmatpush3.bf16.msra.mxu1 %v6988_v33  ;;  %6024 = vmatpush3.bf16.msra.mxu0 %v6988_v33 }
 0x174   : > { %5905 = vmatprep.subr.bf16.mxu1 %v6986_v32  ;;  %6025 = vmatprep.subr.bf16.mxu0 %v6986_v32 }
 0x175   : > { %1679 = vmatprep.mubr.bf16.mxu1 %v6633_v5  ;;  %2033 = vmatprep.mubr.bf16.mxu0 %v6636_v6 }
 0x177   : > { %5906 = vmatpush3.bf16.msra.mxu1 %v6983_v28  ;;  %6026 = vmatpush3.bf16.msra.mxu0 %v6983_v28 }
 0x178   : > { %5907 = vmatprep.subr.bf16.mxu1 %v7030_v50  ;;  %6027 = vmatprep.subr.bf16.mxu0 %v7030_v50 }
 0x17a   : > { %1680 = vmatmul.mubr.bf16.gmra.mrb[52].mxu1 %v6635_v7  ;;  %2034 = vmatmul.mubr.bf16.gmra.mrb[52].mxu0 %v6638_v8 }
 0x17b   : > { %5908 = vmatpush3.bf16.msra.mxu1 %v7028_v46  ;;  %6028 = vmatpush3.bf16.msra.mxu0 %v7028_v46 }
 0x17c   : > { %5909 = vmatprep.subr.bf16.mxu1 %v7026_v45  ;;  %6029 = vmatprep.subr.bf16.mxu0 %v7026_v45 }
 0x17d   : > { %1687 = vmatprep.mubr.bf16.mxu1 %v6639_v9  ;;  %2041 = vmatprep.mubr.bf16.mxu0 %v6642_v11 }
 0x17f   : > { %5910 = vmatpush3.bf16.msra.mxu1 %v7020_v39  ;;  %6030 = vmatpush3.bf16.msra.mxu0 %v7020_v39 }
 0x180   : > { %5911 = vmatprep.subr.bf16.mxu1 %v7058_v51  ;;  %6031 = vmatprep.subr.bf16.mxu0 %v7058_v51 }
 0x182   : > { %1688 = vmatmul.mubr.bf16.gmra.mrb[56].mxu1 %v6641_v12  ;;  %2042 = vmatmul.mubr.bf16.gmra.mrb[56].mxu0 %v6644_v15 }
 0x183   : > { %5912 = vmatpush3.bf16.msra.mxu1 %v7056_v49  ;;  %6032 = vmatpush3.bf16.msra.mxu0 %v7056_v49 }
 0x184   : > { %5913 = vmatprep.subr.bf16.mxu1 %v7054_v47  ;;  %6033 = vmatprep.subr.bf16.mxu0 %v7054_v47 }
 0x185   : > { %1695 = vmatprep.mubr.bf16.mxu1 %v6645_v18  ;;  %2049 = vmatprep.mubr.bf16.mxu0 %v6648_v10 }
 0x187   : > { %5914 = vmatpush3.bf16.msra.mxu1 %v7052_v38  ;;  %6034 = vmatpush3.bf16.msra.mxu0 %v7052_v38 }
 0x188   : > { %5915 = vmatprep.subr.bf16.mxu1 %v7082_v20  ;;  %6035 = vmatprep.subr.bf16.mxu0 %v7082_v20 }
 0x18a   : > { %1696 = vmatmul.mubr.bf16.gmra.mrb[60].mxu1 %v6647_v13  ;;  %2050 = vmatmul.mubr.bf16.gmra.mrb[60].mxu0 %v6650_v19 }
 0x18b   : > { %5916 = vmatpush3.bf16.msra.mxu1 %v7080_v27  ;;  %6036 = vmatpush3.bf16.msra.mxu0 %v7080_v27 }
 0x18c   : > { %5917 = vmatprep.subr.bf16.mxu1 %v7078_v26  ;;  %6037 = vmatprep.subr.bf16.mxu0 %v7078_v26 }
 0x18d   : > { %1907 = vmatprep.mubr.bf16.mxu1 %v6653_v21  ;;  %2261 = vmatprep.mubr.bf16.mxu0 %v6656_v25 }
 0x18f   : > { %5918 = vmatpush3.bf16.msra.mxu1 %v7076_v14  ;;  %6038 = vmatpush3.bf16.msra.mxu0 %v7076_v14 }
 0x190   : > { %5983 = vmatprep.subr.bf16.mxu1 %v6990_v37  ;;  %v6662_v37 = vld [vmem:[%s8193_s0 + $0x210] ss:$8 sps:$4 sm:$0xff]  }
 0x192   : > { %1908 = vmatmul.mubr.bf16.vlgmr.msra.gmra.mrb[64].mxu1 %v6651_v16  ;;  %2262 = vmatmul.mubr.bf16.vlgmr.msra.gmra.mrb[64].mxu0 %v6654_v29 }
 0x193   : > { %5984 = vmatpush3.bf16.msra.mxu1 %v6988_v33  ;;  %1915 = vmatprep.mubr.bf16.mxu1 %v6657_v34  ;;  %v6680_v33 = vld [vmem:[%s8193_s0 + $0x220] ss:$8 sps:$4 sm:$0xff]  }
 0x194   : > { %5985 = vmatprep.subr.bf16.mxu1 %v6986_v32  ;;  %2269 = vmatprep.mubr.bf16.mxu0 %v6660_v35  ;;  %v6678_v32 = vld [vmem:[%s8193_s0 + $0x224] ss:$8 sps:$4 sm:$0xff]  }
 0x197   : > { %5986 = vmatpush3.bf16.msra.mxu1 %v6983_v28  ;;  %v6665_v28 = vld [vmem:[%s8193_s0 + $0x160] ss:$8 sps:$4 sm:$0xff]  }
 0x198   : > { %5987 = vmatprep.subr.bf16.mxu1 %v7030_v50  ;;  %v6666_v50 = vld [vmem:[%s8193_s0 + $0x174] ss:$8 sps:$4 sm:$0xff]  }
 0x19a   : > { %1916 = vmatmul.mubr.bf16.gmra.mrb[68].mxu1 %v6659_v17  ;;  %2270 = vmatmul.mubr.bf16.gmra.mrb[68].mxu0 %v6662_v37 }
 0x19b   : > { %5988 = vmatpush3.bf16.msra.mxu1 %v7028_v46  ;;  %1923 = vmatprep.mubr.bf16.mxu1 %v6663_v36  ;;  %v6686_v46 = vld [vmem:[%s8193_s0 + $0x230] ss:$8 sps:$4 sm:$0xff]  }
 0x19c   : > { %5989 = vmatprep.subr.bf16.mxu1 %v7026_v45  ;;  %2277 = vmatprep.mubr.bf16.mxu0 %v6678_v32  ;;  %v6684_v45 = vld [vmem:[%s8193_s0 + $0x234] ss:$8 sps:$4 sm:$0xff]  }
 0x19f   : > { %5990 = vmatpush3.bf16.msra.mxu1 %v7020_v39  ;;  %v6668_v39 = vld [vmem:[%s8193_s0 + $0x170] ss:$8 sps:$4 sm:$0xff]  }
 0x1a0   : > { %5991 = vmatprep.subr.bf16.mxu1 %v7058_v51  ;;  %v6671_v51 = vld [vmem:[%s8193_s0 + $0x1c4] ss:$8 sps:$4 sm:$0xff]  }
 0x1a2   : > { %1924 = vmatmul.mubr.bf16.gmra.mrb[72].mxu1 %v6665_v28  ;;  %2278 = vmatmul.mubr.bf16.gmra.mrb[72].mxu0 %v6680_v33 }
 0x1a3   : > { %5992 = vmatpush3.bf16.msra.mxu1 %v7056_v49  ;;  %1931 = vmatprep.mubr.bf16.mxu1 %v6666_v50  ;;  %v6674_v49 = vld [vmem:[%s8193_s0 + $0x1d0] ss:$8 sps:$4 sm:$0xff]  }
 0x1a4   : > { %5993 = vmatprep.subr.bf16.mxu1 %v7054_v47  ;;  %2285 = vmatprep.mubr.bf16.mxu0 %v6684_v45  ;;  %v6669_v47 = vld [vmem:[%s8193_s0 + $0x1c0] ss:$8 sps:$4 sm:$0xff]  }
 0x1a7   : > { %5994 = vmatpush3.bf16.msra.mxu1 %v7052_v38  ;;  %v6672_v38 = vld [vmem:[%s8193_s0 + $0x1d4] ss:$8 sps:$4 sm:$0xff]  }
 0x1a8   : > { %5995 = vmatprep.subr.bf16.mxu1 %v7082_v20  ;;  %v6683_v20 = vld [vmem:[%s8193_s0 + $0x1f0] ss:$8 sps:$4 sm:$0xff]  }
 0x1aa   : > { %1932 = vmatmul.mubr.bf16.gmra.mrb[76].mxu1 %v6668_v39  ;;  %2286 = vmatmul.mubr.bf16.gmra.mrb[76].mxu0 %v6686_v46 }
 0x1ab   : > { %5996 = vmatpush3.bf16.msra.mxu1 %v7080_v27  ;;  %2143 = vmatprep.mubr.bf16.mxu1 %v6671_v51  ;;  %v6681_v27 = vld [vmem:[%s8193_s0 + $0x1f4] ss:$8 sps:$4 sm:$0xff]  }
 0x1ac   : > { %5997 = vmatprep.subr.bf16.mxu1 %v7078_v26  ;;  %v6675_v26 = vld [vmem:[%s8193_s0 + $0x1e4] ss:$8 sps:$4 sm:$0xff]  }
 0x1af   : > { %5998 = vmatpush3.bf16.msra.mxu1 %v7076_v14  ;;  %v6677_v14 = vld [vmem:[%s8193_s0 + $0x1e0] ss:$8 sps:$4 sm:$0xff]   ;;  %s8201_s0 = smov 24  }
 0x1b2   : > { %2144 = vmatmul.mubr.bf16.vlgmr.msra.gmra.mrb[80].mxu1 %v6669_v47 }
 0x1b3   : > { %2151 = vmatprep.mubr.bf16.mxu1 %v6672_v38 }
 0x1ba   : > { %2152 = vmatmul.mubr.bf16.gmra.mrb[84].mxu1 %v6674_v49 }
 0x1bb   : > { %2159 = vmatprep.mubr.bf16.mxu1 %v6675_v26 }
 0x1c2   : > { %2160 = vmatmul.mubr.bf16.gmra.mrb[88].mxu1 %v6677_v14 }
 0x1c3   : > { %2167 = vmatprep.mubr.bf16.mxu1 %v6681_v27 }
 0x1ca   : > { %2168 = vmatmul.mubr.bf16.gmra.mrb[92].mxu1 %v6683_v20 }
 0x205   : > { %v5719_v22 = vpop.f32.mrb[16].mxu1  ;;  %v5799_v40 = vpop.f32.mrb[16].mxu0 }
 0x206   : > { %v5720_v41 = vpop.f32.mrb[17].mxu1  ;;  %v5800_v42 = vpop.f32.mrb[17].mxu0 }
 0x207   : > { %v7414_v23 = vadd.f32 %v5720_v41, %v5719_v22  ;;  %v5722_v52 = vpop.f32.mrb[18].mxu1  ;;  %v5801_v55 = vadd.f32 %v5800_v42, %v5799_v40  ;;  %v5802_v56 = vpop.f32.mrb[18].mxu0 }
 0x208   : > { %v5723_v57 = vpop.f32.mrb[19].mxu1  ;;  %v5803_v58 = vpop.f32.mrb[19].mxu0 }
 0x209   : > { %v7416_v60 = vadd.f32 %v5723_v57, %v5722_v52  ;;  %v5804_v61 = vadd.f32 %v5803_v58, %v5802_v56 }
 0x20b   : > { %v1350_v62 = vpack.c.bf16 %v7416_v60, %v7414_v23  ;;  %v1586_v63 = vpack.c.bf16 %v5804_v61, %v5801_v55 }
 0x20d   : > { %v5725_v0 = vpop.f32.mrb[20].mxu1  ;;  %v5805_v1 = vpop.f32.mrb[20].mxu0  ;;  %2314 = vrot.lane.b32.xlu1 %v1586_v63, %s8170_s1 }
 0x20e   : > { %v5726_v30 = vpop.f32.mrb[21].mxu1  ;;  %v5806_v31 = vpop.f32.mrb[21].mxu0 }
 0x20f   : > { %v7421_v43 = vadd.f32 %v5726_v30, %v5725_v0  ;;  %v5728_v48 = vpop.f32.mrb[22].mxu1  ;;  %v5807_v24 = vadd.f32 %v5806_v31, %v5805_v1  ;;  %v5808_v44 = vpop.f32.mrb[22].mxu0 }
 0x210   : > { %v5729_v2 = vpop.f32.mrb[23].mxu1  ;;  %v5809_v53 = vpop.f32.mrb[23].mxu0 }
 0x211   : > { %v7423_v3 = vadd.f32 %v5729_v2, %v5728_v48  ;;  %v5810_v54 = vadd.f32 %v5809_v53, %v5808_v44 }
 0x213   : > { %v1351_v4 = vpack.c.bf16 %v7423_v3, %v7421_v43  ;;  %v1587_v59 = vpack.c.bf16 %v5810_v54, %v5807_v24 }
 0x215   : > { %v5731_v5 = vpop.f32.mrb[24].mxu1  ;;  %v5811_v6 = vpop.f32.mrb[24].mxu0  ;;  %2316 = vrot.lane.b32.xlu1 %v1587_v59, %s8170_s1 }
 0x216   : > { %v5732_v7 = vpop.f32.mrb[25].mxu1  ;;  %v5812_v8 = vpop.f32.mrb[25].mxu0 }
 0x217   : > { %v7428_v9 = vadd.f32 %v5732_v7, %v5731_v5  ;;  %v5734_v11 = vpop.f32.mrb[26].mxu1  ;;  %v5813_v12 = vadd.f32 %v5812_v8, %v5811_v6  ;;  %v5814_v15 = vpop.f32.mrb[26].mxu0 }
 0x218   : > { %v5735_v18 = vpop.f32.mrb[27].mxu1  ;;  %v5815_v10 = vpop.f32.mrb[27].mxu0 }
 0x219   : > { %v7430_v13 = vadd.f32 %v5735_v18, %v5734_v11  ;;  %v5816_v19 = vadd.f32 %v5815_v10, %v5814_v15 }
 0x21b   : > { %v1352_v21 = vpack.c.bf16 %v7430_v13, %v7428_v9  ;;  %v1588_v25 = vpack.c.bf16 %v5816_v19, %v5813_v12 }
 0x21d   : > { %v5737_v16 = vpop.f32.mrb[28].mxu1  ;;  %v5817_v29 = vpop.f32.mrb[28].mxu0  ;;  %2318 = vrot.lane.b32.xlu0 %v1588_v25, %s8170_s1 }
 0x21e   : > { %v5738_v34 = vpop.f32.mrb[29].mxu1  ;;  %v5818_v35 = vpop.f32.mrb[29].mxu0 }
 0x21f   : > { %v7435_v17 = vadd.f32 %v5738_v34, %v5737_v16  ;;  %v5740_v37 = vpop.f32.mrb[30].mxu1  ;;  %v5819_v36 = vadd.f32 %v5818_v35, %v5817_v29  ;;  %v5820_v32 = vpop.f32.mrb[30].mxu0 }
 0x220   : > { %v5741_v28 = vpop.f32.mrb[31].mxu1  ;;  %v5821_v33 = vpop.f32.mrb[31].mxu0 }
 0x221   : > { %v7437_v50 = vadd.f32 %v5741_v28, %v5740_v37  ;;  %v5822_v45 = vadd.f32 %v5821_v33, %v5820_v32 }
 0x223   : > { %v1353_v39 = vpack.c.bf16 %v7437_v50, %v7435_v17  ;;  %v1589_v46 = vpack.c.bf16 %v5822_v45, %v5819_v36 }
 0x225   : > { %v5759_v51 = vpop.f32.mrb[32].mxu1  ;;  %v5879_v47 = vpop.f32.mrb[32].mxu0  ;;  %2320 = vrot.lane.b32.xlu1 %v1589_v46, %s8170_s1 }
 0x226   : > { %v5760_v38 = vpop.f32.mrb[33].mxu1  ;;  %v5880_v49 = vpop.f32.mrb[33].mxu0 }
 0x227   : > { %v5761_v26 = vadd.f32 %v5760_v38, %v5759_v51  ;;  %v5762_v14 = vpop.f32.mrb[34].mxu1  ;;  %v5881_v27 = vadd.f32 %v5880_v49, %v5879_v47  ;;  %v5882_v20 = vpop.f32.mrb[34].mxu0 }
 0x228   : > { %v5763_v22 = vpop.f32.mrb[35].mxu1  ;;  %v5883_v40 = vpop.f32.mrb[35].mxu0 }
 0x229   : > { %v5764_v41 = vadd.f32 %v5763_v22, %v5762_v14  ;;  %v5884_v42 = vadd.f32 %v5883_v40, %v5882_v20 }
 0x22b   : > { %v1468_v52 = vpack.c.bf16 %v5764_v41, %v5761_v26  ;;  %v1822_v55 = vpack.c.bf16 %v5884_v42, %v5881_v27 }
 0x22d   : > { %v5765_v56 = vpop.f32.mrb[36].mxu1  ;;  %2302 = vrot.lane.b32.xlu0 %v1468_v52, %s6770_s26  ;;  %v5885_v57 = vpop.f32.mrb[36].mxu0 }
 0x22e   : > { %v5766_v58 = vpop.f32.mrb[37].mxu1  ;;  %v5886_v61 = vpop.f32.mrb[37].mxu0 }
 0x22f   : > { %v5767_v63 = vadd.f32 %v5766_v58, %v5765_v56  ;;  %v5768_v0 = vpop.f32.mrb[38].mxu1  ;;  %v5887_v1 = vadd.f32 %v5886_v61, %v5885_v57  ;;  %v5888_v30 = vpop.f32.mrb[38].mxu0 }
 0x230   : > { %v5769_v31 = vpop.f32.mrb[39].mxu1  ;;  %v5889_v48 = vpop.f32.mrb[39].mxu0 }
 0x231   : > { %v5770_v24 = vadd.f32 %v5769_v31, %v5768_v0  ;;  %2338 = vrot.lane.b32.xlu0 %v1822_v55, %s6771_s2  ;;  %v5890_v44 = vadd.f32 %v5889_v48, %v5888_v30 }
 0x233   : > { %v1469_v2 = vpack.c.bf16 %v5770_v24, %v5767_v63  ;;  %v1823_v53 = vpack.c.bf16 %v5890_v44, %v5887_v1 }
 0x235   : > { %v5771_v54 = vpop.f32.mrb[40].mxu1  ;;  %2304 = vrot.lane.b32.xlu0 %v1469_v2, %s6770_s26  ;;  %2340 = vrot.lane.b32.xlu1 %v1823_v53, %s6771_s2  ;;  %v5891_v59 = vpop.f32.mrb[40].mxu0 }
 0x236   : > { %v5772_v5 = vpop.f32.mrb[41].mxu1  ;;  %v5892_v6 = vpop.f32.mrb[41].mxu0 }
 0x237   : > { %v5773_v7 = vadd.f32 %v5772_v5, %v5771_v54  ;;  %v5774_v8 = vpop.f32.mrb[42].mxu1  ;;  %v5893_v11 = vadd.f32 %v5892_v6, %v5891_v59  ;;  %v5894_v12 = vpop.f32.mrb[42].mxu0 }
 0x238   : > { %v5775_v15 = vpop.f32.mrb[43].mxu1  ;;  %v5895_v18 = vpop.f32.mrb[43].mxu0 }
 0x239   : > { %v5776_v10 = vadd.f32 %v5775_v15, %v5774_v8  ;;  %v5896_v19 = vadd.f32 %v5895_v18, %v5894_v12 }
 0x23b   : > { %v1470_v25 = vpack.c.bf16 %v5776_v10, %v5773_v7  ;;  %v1824_v16 = vpack.c.bf16 %v5896_v19, %v5893_v11 }
 0x23d   : > { %v5777_v29 = vpop.f32.mrb[44].mxu1  ;;  %2306 = vrot.lane.b32.xlu1 %v1470_v25, %s6770_s26  ;;  %v5897_v34 = vpop.f32.mrb[44].mxu0  ;;  %2342 = vrot.lane.b32.xlu0 %v1824_v16, %s6771_s2 }
 0x23e   : > { %v5778_v35 = vpop.f32.mrb[45].mxu1  ;;  %v5898_v37 = vpop.f32.mrb[45].mxu0 }
 0x23f   : > { %v5779_v36 = vadd.f32 %v5778_v35, %v5777_v29  ;;  %v5780_v32 = vpop.f32.mrb[46].mxu1  ;;  %v5899_v28 = vadd.f32 %v5898_v37, %v5897_v34  ;;  %v5900_v33 = vpop.f32.mrb[46].mxu0 }
 0x240   : > { %v5781_v45 = vpop.f32.mrb[47].mxu1  ;;  %v5901_v46 = vpop.f32.mrb[47].mxu0 }
 0x241   : > { %v5782_v51 = vadd.f32 %v5781_v45, %v5780_v32  ;;  %v5902_v47 = vadd.f32 %v5901_v46, %v5900_v33 }
 0x243   : > { %v1471_v38 = vpack.c.bf16 %v5782_v51, %v5779_v36  ;;  %v1825_v49 = vpack.c.bf16 %v5902_v47, %v5899_v28 }
 0x245   : > { %v5839_v26 = vpop.f32.mrb[48].mxu1  ;;  %2308 = vrot.lane.b32.xlu1 %v1471_v38, %s6770_s26  ;;  %v5959_v14 = vpop.f32.mrb[48].mxu0  ;;  %s8172_s26 = smov 80  }
 0x246   : > { %v5840_v27 = vpop.f32.mrb[49].mxu1  ;;  %v5960_v20 = vpop.f32.mrb[49].mxu0 }
 0x247   : > { %v5841_v22 = vadd.f32 %v5840_v27, %v5839_v26  ;;  %v5842_v40 = vpop.f32.mrb[50].mxu1  ;;  %v5961_v41 = vadd.f32 %v5960_v20, %v5959_v14  ;;  %v5962_v42 = vpop.f32.mrb[50].mxu0 }
 0x248   : > { %v5843_v52 = vpop.f32.mrb[51].mxu1  ;;  %v5963_v55 = vpop.f32.mrb[51].mxu0 }
 0x249   : > { %v5844_v56 = vadd.f32 %v5843_v52, %v5842_v40  ;;  %2344 = vrot.lane.b32.xlu1 %v1825_v49, %s6771_s2  ;;  %v5964_v57 = vadd.f32 %v5963_v55, %v5962_v42 }
 0x24b   : > { %v1704_v58 = vpack.c.bf16 %v5844_v56, %v5841_v22  ;;  %v2058_v61 = vpack.c.bf16 %v5964_v57, %v5961_v41 }
 0x24d   : > { %v5845_v63 = vpop.f32.mrb[52].mxu1  ;;  %2326 = vrot.lane.b32.xlu0 %v1704_v58, %s8165_s6  ;;  %v5965_v0 = vpop.f32.mrb[52].mxu0 }
 0x24e   : > { %v5846_v1 = vpop.f32.mrb[53].mxu1  ;;  %v5966_v30 = vpop.f32.mrb[53].mxu0 }
 0x24f   : > { %v5847_v31 = vadd.f32 %v5846_v1, %v5845_v63  ;;  %v5848_v48 = vpop.f32.mrb[54].mxu1  ;;  %v5967_v24 = vadd.f32 %v5966_v30, %v5965_v0  ;;  %v5968_v44 = vpop.f32.mrb[54].mxu0 }
 0x250   : > { %v5849_v2 = vpop.f32.mrb[55].mxu1  ;;  %v5969_v53 = vpop.f32.mrb[55].mxu0 }
 0x251   : > { %v5850_v54 = vadd.f32 %v5849_v2, %v5848_v48  ;;  %2362 = vrot.lane.b32.xlu0 %v2058_v61, %s8168_s27  ;;  %v5970_v59 = vadd.f32 %v5969_v53, %v5968_v44 }
 0x253   : > { %v1705_v5 = vpack.c.bf16 %v5850_v54, %v5847_v31  ;;  %v2059_v6 = vpack.c.bf16 %v5970_v59, %v5967_v24 }
 0x255   : > { %v5851_v7 = vpop.f32.mrb[56].mxu1  ;;  %2328 = vrot.lane.b32.xlu1 %v1705_v5, %s8165_s6  ;;  %v5971_v8 = vpop.f32.mrb[56].mxu0 }
 0x256   : > { %v5852_v11 = vpop.f32.mrb[57].mxu1  ;;  %v5972_v12 = vpop.f32.mrb[57].mxu0 }
 0x257   : > { %v5853_v15 = vadd.f32 %v5852_v11, %v5851_v7  ;;  %v5854_v18 = vpop.f32.mrb[58].mxu1  ;;  %v7453_v10 = vadd.f32 %v5972_v12, %v5971_v8  ;;  %v5974_v19 = vpop.f32.mrb[58].mxu0  ;;  %v6687_v7 = vld [vmem:[%s8195_s3] sm:$0xff]  }
 0x258   : > { %v5855_v25 = vpop.f32.mrb[59].mxu1  ;;  %v5975_v16 = vpop.f32.mrb[59].mxu0  ;;  %6220 = vmatprep.subr.bf16.mxu0 %v6687_v7 }
 0x259   : > { %v5856_v29 = vadd.f32 %v5855_v25, %v5854_v18  ;;  %2364 = vrot.lane.b32.xlu1 %v2059_v6, %s8168_s27  ;;  %v7456_v34 = vadd.f32 %v5975_v16, %v5974_v19  ;;  %6221 = vmatpush3.bf16.msra.mxu0 %v6687_v7 }
 0x25b   : > { %v1706_v35 = vpack.c.bf16 %v5856_v29, %v5853_v15  ;;  %v2060_v37 = vpack.c.bf16 %v7456_v34, %v7453_v10 }
 0x25d   : > { %v5857_v36 = vpop.f32.mrb[60].mxu1  ;;  %2330 = vrot.lane.b32.xlu0 %v1706_v35, %s8165_s6  ;;  %v5977_v32 = vpop.f32.mrb[60].mxu0 }
 0x25e   : > { %v5858_v28 = vpop.f32.mrb[61].mxu1  ;;  %v5978_v33 = vpop.f32.mrb[61].mxu0 }
 0x25f   : > { %v5859_v45 = vadd.f32 %v5858_v28, %v5857_v36  ;;  %v5860_v46 = vpop.f32.mrb[62].mxu1  ;;  %v7461_v51 = vadd.f32 %v5978_v33, %v5977_v32  ;;  %v5980_v47 = vpop.f32.mrb[62].mxu0 }
 0x260   : > { %v5861_v38 = vpop.f32.mrb[63].mxu1  ;;  %v5981_v49 = vpop.f32.mrb[63].mxu0 }
 0x261   : > { %v5862_v26 = vadd.f32 %v5861_v38, %v5860_v46  ;;  %v7463_v14 = vadd.f32 %v5981_v49, %v5980_v47  ;;  %v6689_v46 = vld [vmem:[%s8195_s3 + $0x10] sm:$0xff]  }
 0x263   : > { %v1707_v27 = vpack.c.bf16 %v5862_v26, %v5859_v45  ;;  %v2061_v20 = vpack.c.bf16 %v7463_v14, %v7461_v51  ;;  %v6688_v45 = vld [vmem:[%s8195_s3 + $0x8] sm:$0xff]  }
 0x264   : > { %6222 = vmatprep.subr.bf16.mxu0 %v6688_v45 }
 0x265   : > { %v5919_v22 = vpop.f32.mrb[64].mxu1  ;;  %2332 = vrot.lane.b32.xlu1 %v1707_v27, %s8165_s6  ;;  %v6039_v40 = vpop.f32.mrb[64].mxu0  ;;  %6223 = vmatpush3.bf16.msra.mxu0 %v6688_v45  ;;  %s8198_s6 = sld [smem:[#allocation9_spill]] }
 0x266   : > { %v5920_v41 = vpop.f32.mrb[65].mxu1  ;;  %v6040_v42 = vpop.f32.mrb[65].mxu0  ;;  %6224 = vmatprep.subr.bf16.mxu0 %v6689_v46 }
 0x267   : > { %v5921_v52 = vadd.f32 %v5920_v41, %v5919_v22  ;;  %v5922_v55 = vpop.f32.mrb[66].mxu1  ;;  %v6041_v56 = vadd.f32 %v6040_v42, %v6039_v40  ;;  %v6042_v57 = vpop.f32.mrb[66].mxu0 }
 0x268   : > { %v5923_v58 = vpop.f32.mrb[67].mxu1  ;;  %v6043_v61 = vpop.f32.mrb[67].mxu0 }
 0x269   : > { %v5924_v63 = vadd.f32 %v5923_v58, %v5922_v55  ;;  %v6044_v0 = vadd.f32 %v6043_v61, %v6042_v57  ;;  %6225 = vmatpush3.bf16.msra.mxu0 %v6689_v46  ;;  %v6690_v58 = vld [vmem:[%s8195_s3 + $0x18] sm:$0xff]  }
 0x26a   : > { %6226 = vmatprep.subr.bf16.mxu0 %v6690_v58 }
 0x26b   : > { %v1940_v1 = vpack.c.bf16 %v5924_v63, %v5921_v52  ;;  %v2294_v30 = vpack.c.bf16 %v6044_v0, %v6041_v56 }
 0x26d   : > { %v5925_v31 = vpop.f32.mrb[68].mxu1  ;;  %2350 = vrot.lane.b32.xlu0 %v1940_v1, %s8164_s7  ;;  %v6045_v48 = vpop.f32.mrb[68].mxu0  ;;  %6227 = vmatpush3.bf16.msra.mxu0 %v6690_v58 }
 0x26e   : > { %v5926_v24 = vpop.f32.mrb[69].mxu1  ;;  %v6046_v44 = vpop.f32.mrb[69].mxu0 }
 0x26f   : > { %v5927_v2 = vadd.f32 %v5926_v24, %v5925_v31  ;;  %v5928_v53 = vpop.f32.mrb[70].mxu1  ;;  %v6047_v54 = vadd.f32 %v6046_v44, %v6045_v48  ;;  %v6048_v59 = vpop.f32.mrb[70].mxu0  ;;  %v6691_v31 = vld [vmem:[%s8195_s3 + $0x20] ss:$0 sps:$4 sm:$0xff]   ;;  %s8202_s3 = smov 16  }
 0x270   : > { %v5929_v5 = vpop.f32.mrb[71].mxu1  ;;  %v6049_v6 = vpop.f32.mrb[71].mxu0  ;;  %6533 = vmatprep.subr.msk.bf16.mxu0 %vm2522_vm3, %v6691_v31  ;;  %v2524_v44 = vsel %vm2522_vm3, %v6691_v31, 0 }
 0x271   : > { %v5930_v8 = vadd.f32 %v5929_v5, %v5928_v53  ;;  %v6050_v11 = vadd.f32 %v6049_v6, %v6048_v59  ;;  %2386 = vrot.lane.b32.xlu0 %v2294_v30, %s8166_s24  ;;  %6229 = vmatpush3.bf16.msra.mxu0 %v2524_v44 }
 0x273   : > { %v1941_v12 = vpack.c.bf16 %v5930_v8, %v5927_v2  ;;  %v2295_v15 = vpack.c.bf16 %v6050_v11, %v6047_v54 }
 0x275   : > { %v5931_v18 = vpop.f32.mrb[72].mxu1  ;;  %2352 = vrot.lane.b32.xlu1 %v1941_v12, %s8164_s7  ;;  %2388 = vrot.lane.b32.xlu0 %v2295_v15, %s8166_s24  ;;  %v6051_v19 = vpop.f32.mrb[72].mxu0 }
 0x276   : > { %v5932_v25 = vpop.f32.mrb[73].mxu1  ;;  %v6052_v16 = vpop.f32.mrb[73].mxu0 }
 0x277   : > { %v5933_v29 = vadd.f32 %v5932_v25, %v5931_v18  ;;  %v5934_v35 = vpop.f32.mrb[74].mxu1  ;;  %v7475_v36 = vadd.f32 %v6052_v16, %v6051_v19  ;;  %v6054_v32 = vpop.f32.mrb[74].mxu0 }
 0x278   : > { %v5935_v28 = vpop.f32.mrb[75].mxu1  ;;  %v6055_v33 = vpop.f32.mrb[75].mxu0 }
 0x279   : > { %v5936_v47 = vadd.f32 %v5935_v28, %v5934_v35  ;;  %v7483_v38 = vadd.f32 %v6055_v33, %v6054_v32 }
 0x27b   : > { %v1942_v49 = vpack.c.bf16 %v5936_v47, %v5933_v29  ;;  %v2296_v26 = vpack.c.bf16 %v7483_v38, %v7475_v36 }
 0x27d   : > { %v5937_v27 = vpop.f32.mrb[76].mxu1  ;;  %2354 = vrot.lane.b32.xlu0 %v1942_v49, %s8164_s7  ;;  %v6057_v22 = vpop.f32.mrb[76].mxu0 }
 0x27e   : > { %v5938_v40 = vpop.f32.mrb[77].mxu1  ;;  %v6058_v41 = vpop.f32.mrb[77].mxu0 }
 0x27f   : > { %v5939_v42 = vadd.f32 %v5938_v40, %v5937_v27  ;;  %v5940_v52 = vpop.f32.mrb[78].mxu1  ;;  %v6059_v55 = vadd.f32 %v6058_v41, %v6057_v22  ;;  %v6060_v57 = vpop.f32.mrb[78].mxu0 }
 0x280   : > { %v5941_v56 = vpop.f32.mrb[79].mxu1  ;;  %v6061_v63 = vpop.f32.mrb[79].mxu0 }
 0x281   : > { %v5942_v61 = vadd.f32 %v5941_v56, %v5940_v52  ;;  %v6062_v0 = vadd.f32 %v6061_v63, %v6060_v57  ;;  %v2315_v49 = vpop.permute.xlu1 %2314 }
 0x283   : > { %v1943_v1 = vpack.c.bf16 %v5942_v61, %v5939_v42  ;;  %v2297_v30 = vpack.c.bf16 %v6062_v0, %v6059_v55 }
 0x285   : > { %v5999_v48 = vpop.f32.mrb[80].mxu1  ;;  %2356 = vrot.lane.b32.xlu1 %v1943_v1, %s8164_s7  ;;  %s8174_s7 = smov 112  }
 0x286   : > { %v6000_v24 = vpop.f32.mrb[81].mxu1 }
 0x287   : > { %v6001_v2 = vadd.f32 %v6000_v24, %v5999_v48  ;;  %v6002_v53 = vpop.f32.mrb[82].mxu1  ;;  %v2317_v51 = vpop.permute.xlu1 %2316 }
 0x288   : > { %v6003_v54 = vpop.f32.mrb[83].mxu1 }
 0x289   : > { %v6004_v59 = vadd.f32 %v6003_v54, %v6002_v53 }
 0x28b   : > { %v2176_v5 = vpack.c.bf16 %v6004_v59, %v6001_v2 }
 0x28d   : > { %v6005_v6 = vpop.f32.mrb[84].mxu1  ;;  %2374 = vrot.lane.b32.xlu0 %v2176_v5, %s6776_s25 }
 0x28e   : > { %v6006_v7 = vpop.f32.mrb[85].mxu1 }
 0x28f   : > { %v6007_v8 = vadd.f32 %v6006_v7, %v6005_v6  ;;  %v6008_v11 = vpop.f32.mrb[86].mxu1  ;;  %v2319_v47 = vpop.permute.xlu0 %2318 }
 0x290   : > { %v6009_v12 = vpop.f32.mrb[87].mxu1 }
 0x291   : > { %v6010_v15 = vadd.f32 %v6009_v12, %v6008_v11  ;;  %2366 = vrot.lane.b32.xlu0 %v2060_v37, %s8168_s27 }
 0x293   : > { %v2177_v18 = vpack.c.bf16 %v6010_v15, %v6007_v8 }
 0x295   : > { %v6011_v19 = vpop.f32.mrb[88].mxu1  ;;  %2376 = vrot.lane.b32.xlu1 %v2177_v18, %s6776_s25 }
 0x296   : > { %v6012_v25 = vpop.f32.mrb[89].mxu1 }
 0x297   : > { %v6013_v16 = vadd.f32 %v6012_v25, %v6011_v19  ;;  %v6014_v29 = vpop.f32.mrb[90].mxu1 }
 0x298   : > { %v6015_v35 = vpop.f32.mrb[91].mxu1 }
 0x299   : > { %v6016_v36 = vadd.f32 %v6015_v35, %v6014_v29  ;;  %2368 = vrot.lane.b32.xlu1 %v2061_v20, %s8168_s27  ;;  %v2321_v20 = vpop.permute.xlu1 %2320  ;;  %s8199_s27 = smov 48  }
 0x29b   : > { %v2178_v32 = vpack.c.bf16 %v6016_v36, %v6013_v16 }
 0x29d   : > { %v6017_v28 = vpop.f32.mrb[92].mxu1  ;;  %2378 = vrot.lane.b32.xlu0 %v2178_v32, %s6776_s25 }
 0x29e   : > { %v6018_v33 = vpop.f32.mrb[93].mxu1 }
 0x29f   : > { %v6019_v45 = vadd.f32 %v6018_v33, %v6017_v28  ;;  %v6020_v10 = vpop.f32.mrb[94].mxu1  ;;  %v2303_v38 = vpop.permute.xlu0 %2302 }
 0x2a0   : > { %v6021_v34 = vpop.f32.mrb[95].mxu1  ;;  %v2397_v63 = vsel %vm2394_vm4, %v1350_v62, %v2303_v38  ;;  %v5513_v38 = vld [vmem:[%s8196_s29] ss:$0 sm:$0xff]  ;;  %s8176_s29 = smov 96  }
 0x2a1   : > { %v6022_v37 = vadd.f32 %v6021_v34, %v6020_v10  ;;  %2390 = vrot.lane.b32.xlu0 %v2296_v26, %s8166_s24 }
 0x2a3   : > { %v2179_v46 = vpack.c.bf16 %v6022_v37, %v6019_v45  ;;  %v2339_v27 = vpop.permute.xlu0 %2338 }
 0x2a5   : > { %2380 = vrot.lane.b32.xlu1 %v2179_v46, %s6776_s25  ;;  %s8181_s25 = smov 88  }
 0x2a7   : > { %v2305_v14 = vpop.permute.xlu0 %2304  ;;  %v2341_v40 = vpop.permute.xlu1 %2340 }
 0x2a8   : > { %v2400_v23 = vsel %vm2394_vm4, %v1351_v4, %v2305_v14 }
 0x2a9   : > { %2392 = vrot.lane.b32.xlu1 %v2297_v30, %s8166_s24  ;;  %v2409_v30 = vsel %vm2407_vm5, %v2397_v63, %v2315_v49  ;;  %v2411_v62 = vsel %vm2407_vm5, %v2400_v23, %v2317_v51  ;;  %s8200_s24 = smov 64  }
 0x2af   : > { %v2343_v22 = vpop.permute.xlu0 %2342  ;;  %v2307_v52 = vpop.permute.xlu1 %2306 }
 0x2b0   : > { %v2403_v12 = vsel %vm2394_vm4, %v1352_v21, %v2307_v52 }
 0x2b1   : > { %v2413_v19 = vsel %vm2407_vm5, %v2403_v12, %v2319_v47  ;;  %v6777_v47 = vmov 0.0  }
 0x2b2   : > { %6238 = vmatprep.subr.bf16.mxu0 %v6777_v47  ;;  %6250 = vmatprep.subr.bf16.mxu1 %v6777_v47 }
 0x2b3   : > { %6258 = vmatprep.mubr.msk.bf16.mxu1 %vm6778_vm13, %v6777_v47 }
 0x2b7   : > { %v2309_v55 = vpop.permute.xlu1 %2308 }
 0x2b8   : > { %v2406_v35 = vsel %vm2394_vm4, %v1353_v39, %v2309_v55 }
 0x2b9   : > { %v2415_v28 = vsel %vm2407_vm5, %v2406_v35, %v2321_v20 }
 0x2bb   : > { %v2345_v57 = vpop.permute.xlu1 %2344 }
 0x2bf   : > { %v2327_v41 = vpop.permute.xlu0 %2326 }
 0x2c0   : > { %v2418_v31 = vsel %vm2416_vm6, %v2409_v30, %v2327_v41 }
 0x2c1   : > { %v2427_v24 = vsel %vm2425_vm7, %v2418_v31, %v2339_v27 }
 0x2c3   : > { %v2363_v42 = vpop.permute.xlu0 %2362 }
 0x2c7   : > { %v2329_v61 = vpop.permute.xlu1 %2328 }
 0x2c8   : > { %v2420_v59 = vsel %vm2416_vm6, %v2411_v62, %v2329_v61 }
 0x2c9   : > { %v2429_v3 = vsel %vm2425_vm7, %v2420_v59, %v2341_v40 }
 0x2cb   : > { %v2365_v0 = vpop.permute.xlu1 %2364 }
 0x2cf   : > { %v2331_v56 = vpop.permute.xlu0 %2330 }
 0x2d0   : > { %v2422_v25 = vsel %vm2416_vm6, %v2413_v19, %v2331_v56 }
 0x2d1   : > { %v2431_v29 = vsel %vm2425_vm7, %v2422_v25, %v2343_v22 }
 0x2d7   : > { %v2333_v48 = vpop.permute.xlu1 %2332 }
 0x2d8   : > { %v2424_v45 = vsel %vm2416_vm6, %v2415_v28, %v2333_v48 }
 0x2d9   : > { %v2433_v17 = vsel %vm2425_vm7, %v2424_v45, %v2345_v57 }
 0x2df   : > { %v2351_v26 = vpop.permute.xlu0 %2350 }
 0x2e0   : > { %v2436_v60 = vsel %vm2434_vm8, %v2427_v24, %v2351_v26 }
 0x2e1   : > { %v2445_v54 = vsel %vm2443_vm9, %v2436_v60, %v2363_v42 }
 0x2e3   : > { %v2387_v58 = vpop.permute.xlu0 %2386 }
 0x2e7   : > { %v2389_v1 = vpop.permute.xlu0 %2388  ;;  %v2353_v2 = vpop.permute.xlu1 %2352 }
 0x2e8   : > { %v2438_v6 = vsel %vm2434_vm8, %v2429_v3, %v2353_v2 }
 0x2e9   : > { %v2447_v8 = vsel %vm2443_vm9, %v2438_v6, %v2365_v0 }
 0x2ef   : > { %v2355_v44 = vpop.permute.xlu0 %2354 }
 0x2f0   : > { %v2440_v9 = vsel %vm2434_vm8, %v2431_v29, %v2355_v44 }
 0x2f7   : > { %v2357_v4 = vpop.permute.xlu1 %2356 }
 0x2f8   : > { %v2442_v50 = vsel %vm2434_vm8, %v2433_v17, %v2357_v4 }
 0x2ff   : > { %v2375_v53 = vpop.permute.xlu0 %2374 }
 0x300   : > { %v2454_v5 = vsel %vm2452_vm10, %v2445_v54, %v2375_v53 }
 0x301   : > { %v2463_v43 = vsel %vm2461_vm11, %v2454_v5, %v2387_v58 }
 0x302   : > { %6230 = vmatprep.mubr.msk.bf16.mxu0 %vm2513_vm12, %v2463_v43 }
 0x303   : > { %v2367_v18 = vpop.permute.xlu0 %2366 }
 0x304   : > { %v2449_v13 = vsel %vm2443_vm9, %v2440_v9, %v2367_v18 }
 0x307   : > { %v2377_v7 = vpop.permute.xlu1 %2376 }
 0x308   : > { %v2456_v11 = vsel %vm2452_vm10, %v2447_v8, %v2377_v7 }
 0x309   : > { %v2465_v15 = vsel %vm2461_vm11, %v2456_v11, %v2389_v1 }
 0x30a   : > { %6231 = vmatmul.mubr.msk.bf16.vlgmr.msra.gmra.mrb[80].mxu0 %vm2513_vm12, %v2465_v15 }
 0x30b   : > { %v2369_v21 = vpop.permute.xlu1 %2368 }
 0x30c   : > { %v2451_v39 = vsel %vm2443_vm9, %v2442_v50, %v2369_v21 }
 0x30f   : > { %v2379_v16 = vpop.permute.xlu0 %2378 }
 0x310   : > { %v2458_v36 = vsel %vm2452_vm10, %v2449_v13, %v2379_v16 }
 0x313   : > { %v2391_v32 = vpop.permute.xlu0 %2390 }
 0x314   : > { %v2467_v33 = vsel %vm2461_vm11, %v2458_v36, %v2391_v32 }
 0x315   : > { %6234 = vmatprep.mubr.msk.bf16.mxu0 %vm2513_vm12, %v2467_v33 }
 0x317   : > { %v2381_v10 = vpop.permute.xlu1 %2380 }
 0x318   : > { %v2460_v34 = vsel %vm2452_vm10, %v2451_v39, %v2381_v10 }
 0x31b   : > { %v2393_v37 = vpop.permute.xlu1 %2392 }
 0x31c   : > { %v2469_v46 = vsel %vm2461_vm11, %v2460_v34, %v2393_v37  ;;  %v6692_v37 = vld [vmem:[%s8197_s28] sm:$0xff]  }
 0x31d   : > { %6235 = vmatmul.mubr.msk.bf16.gmra.mrb[84].mxu0 %vm2513_vm12, %v2469_v46  ;;  %v6693_v46 = vld [vmem:[%s8197_s28 + $0x8] sm:$0xff]  }
 0x31e   : > { %6246 = vmatprep.mubr.msk.bf16.mxu0 %vm6778_vm13, %v6777_v47 }
 0x3dd   : > { %v6232_v49 = vpop.f32.mrb[80].mxu0 }
 0x3de   : > { %v2569_v27 = vadd.f32 %v6232_v49, %v5513_v38  ;;  %v2560_v51 = vpop.f32.mrb[81].mxu0  ;;  %v6695_v49 = vld [vmem:[%s8197_s28 + $0x18] sm:$0xff]  }
 0x3df   : > { %v2561_v14 = vadd.f32 %v5513_v38, %v2560_v51  ;;  %v6233_v20 = vpop.f32.mrb[82].mxu0  ;;  %v6697_v51 = vld [vmem:[%s8197_s28 + $0x28] sm:$0xff]  }
 0x3e0   : > { %v2593_v22 = vadd.f32 3.0, %v2569_v27  ;;  %v2572_v40 = vadd.f32 %v6233_v20, %v5513_v38  ;;  %v2563_v41 = vpop.f32.mrb[83].mxu0  ;;  %v6699_v20 = vld [vmem:[%s8197_s28 + $0x38] sm:$0xff]  }
 0x3e1   : > { %v2591_v42 = vadd.f32 3.0, %v2561_v14  ;;  %v2564_v52 = vadd.f32 %v5513_v38, %v2563_v41  ;;  %v6779_v41 = vmov 0  }
 0x3e2   : > { %v2601_v55 = vmax.f32 %v2593_v22, 0.0  ;;  %v2594_v56 = vadd.f32 3.0, %v2572_v40  ;;  %v6700_v22 = vld [vmem:[%s8197_s28 + $0x40] sm:$0xff]  }
 0x3e3   : > { %v2599_v57 = vmax.f32 %v2591_v42, 0.0  ;;  %v2592_v26 = vadd.f32 3.0, %v2564_v52 }
 0x3e4   : > { %v2609_v58 = vmin.f32 %v2601_v55, 6.0  ;;  %v2602_v61 = vmax.f32 %v2594_v56, 0.0 }
 0x3e5   : > { %v2607_v63 = vmin.f32 %v2599_v57, 6.0  ;;  %v2600_v0 = vmax.f32 %v2592_v26, 0.0 }
 0x3e6   : > { %v2617_v1 = vmul.f32 %v2609_v58, %v2569_v27  ;;  %v2610_v30 = vmin.f32 %v2602_v61, 6.0  ;;  %v6696_v27 = vld [vmem:[%s8197_s28 + $0x20] sm:$0xff]  }
 0x3e7   : > { %v2615_v31 = vmul.f32 %v2607_v63, %v2561_v14  ;;  %v2608_v48 = vmin.f32 %v2600_v0, 6.0  ;;  %v6698_v14 = vld [vmem:[%s8197_s28 + $0x30] sm:$0xff]  }
 0x3e8   : > { %v2618_v24 = vmul.f32 %v2610_v30, %v2572_v40  ;;  %v2625_v23 = vmul.f32 0.16666667, %v2617_v1  ;;  %v6701_v40 = vld [vmem:[%s8198_s6] sm:$0xff]   ;;  %v6702_v1 = vld [vmem:[%s8198_s6 + $0x8] sm:$0xff]   ;;  %v6703_v30 = vld [vmem:[%s8198_s6 + $0x10] sm:$0xff]  }
 0x3e9   : > { %v2616_v44 = vmul.f32 %v2608_v48, %v2564_v52  ;;  %v2623_v62 = vmul.f32 0.16666667, %v2615_v31  ;;  %v6704_v31 = vld [vmem:[%s8198_s6 + $0x18] sm:$0xff]  }
 0x3ea   : > { %v2626_v60 = vmul.f32 0.16666667, %v2618_v24 }
 0x3eb   : > { %v2624_v2 = vmul.f32 0.16666667, %v2616_v44 }
 0x3ec   : > { %v7564_v53 = vpack.c.bf16 %v2626_v60, %v2625_v23 }
 0x3ed   : > { %v7566_v54 = vpack.c.bf16 %v2624_v2, %v2623_v62 }
 0x3ef   : > { %6239 = vmatpush3.bf16.msra.mxu0 %v7566_v54  ;;  %6251 = vmatpush3.bf16.msra.mxu1 %v7566_v54 }
 0x3f0   : > { %v6236_v59 = vpop.f32.mrb[84].mxu0  ;;  %6240 = vmatprep.subr.bf16.mxu0 %v6777_v47  ;;  %6252 = vmatprep.subr.bf16.mxu1 %v6777_v47 }
 0x3f1   : > { %v2585_v5 = vadd.f32 %v6236_v59, %v5513_v38  ;;  %v2576_v43 = vpop.f32.mrb[85].mxu0 }
 0x3f2   : > { %v2577_v3 = vadd.f32 %v5513_v38, %v2576_v43  ;;  %v6237_v4 = vpop.f32.mrb[86].mxu0  ;;  %v6706_v43 = vld [vmem:[%s8198_s6 + $0x28] sm:$0xff]  }
 0x3f3   : > { %v2597_v6 = vadd.f32 3.0, %v2585_v5  ;;  %v2588_v7 = vadd.f32 %v6237_v4, %v5513_v38  ;;  %v2579_v8 = vpop.f32.mrb[87].mxu0  ;;  %6241 = vmatpush3.bf16.msra.mxu0 %v7564_v53  ;;  %6253 = vmatpush3.bf16.msra.mxu1 %v7564_v53  ;;  %v6708_v4 = vld [vmem:[%s8198_s6 + $0x38] sm:$0xff]  }
 0x3f4   : > { %v2595_v11 = vadd.f32 3.0, %v2577_v3  ;;  %v2580_v12 = vadd.f32 %v5513_v38, %v2579_v8  ;;  %6242 = vmatprep.subr.bf16.mxu0 %v6777_v47  ;;  %6254 = vmatprep.subr.bf16.mxu1 %v6777_v47  ;;  %v6694_v38 = vld [vmem:[%s8197_s28 + $0x10] sm:$0xff]  }
 0x3f5   : > { %v2605_v15 = vmax.f32 %v2597_v6, 0.0  ;;  %v2598_v18 = vadd.f32 3.0, %v2588_v7 }
 0x3f6   : > { %v2603_v19 = vmax.f32 %v2595_v11, 0.0  ;;  %v2596_v25 = vadd.f32 3.0, %v2580_v12 }
 0x3f7   : > { %v2613_v16 = vmin.f32 %v2605_v15, 6.0  ;;  %v2606_v29 = vmax.f32 %v2598_v18, 0.0 }
 0x3f8   : > { %v2611_v35 = vmin.f32 %v2603_v19, 6.0  ;;  %v2604_v9 = vmax.f32 %v2596_v25, 0.0 }
 0x3f9   : > { %v2621_v13 = vmul.f32 %v2613_v16, %v2585_v5  ;;  %v2614_v21 = vmin.f32 %v2606_v29, 6.0  ;;  %v6705_v5 = vld [vmem:[%s8198_s6 + $0x20] sm:$0xff]  }
 0x3fa   : > { %v2619_v36 = vmul.f32 %v2611_v35, %v2577_v3  ;;  %v2612_v32 = vmin.f32 %v2604_v9, 6.0  ;;  %v6707_v3 = vld [vmem:[%s8198_s6 + $0x30] sm:$0xff]   ;;  %v6709_v29 = vld [vmem:[%s8198_s6 + $0x40] sm:$0xff]  }
 0x3fb   : > { %v2622_v28 = vmul.f32 %v2614_v21, %v2588_v7  ;;  %v2629_v45 = vmul.f32 0.16666667, %v2621_v13 }
 0x3fc   : > { %v2620_v33 = vmul.f32 %v2612_v32, %v2580_v12  ;;  %v2627_v17 = vmul.f32 0.16666667, %v2619_v36 }
 0x3fd   : > { %v2630_v10 = vmul.f32 0.16666667, %v2622_v28 }
 0x3fe   : > { %v2628_v50 = vmul.f32 0.16666667, %v2620_v33 }
 0x3ff   : > { %v7576_v39 = vpack.c.bf16 %v2630_v10, %v2629_v45 }
 0x400   : > { %v7578_v34 = vpack.c.bf16 %v2628_v50, %v2627_v17 }
 0x402   : > { %6243 = vmatpush3.bf16.msra.mxu0 %v7578_v34  ;;  %6255 = vmatpush3.bf16.msra.mxu1 %v7578_v34 }
 0x403   : > { %6244 = vmatprep.subr.bf16.mxu0 %v6777_v47  ;;  %6256 = vmatprep.subr.bf16.mxu1 %v6777_v47 }
 0x406   : > { %6245 = vmatpush3.bf16.msra.mxu0 %v7576_v39  ;;  %6257 = vmatpush3.bf16.msra.mxu1 %v7576_v39 }
 0x407   : > { %6262 = vmatprep.subr.bf16.mxu0 %v6777_v47  ;;  %6274 = vmatprep.subr.bf16.mxu1 %v6777_v47 }
 0x409   : > { %6247 = vmatmul.mubr.msk.bf16.vlgmr.msra.gmra.mrb[88].mxu0 %vm2461_vm11, %v6692_v37  ;;  %6259 = vmatmul.mubr.msk.bf16.vlgmr.msra.gmra.mrb[96].mxu1 %vm2461_vm11, %v6693_v46 }
 0x40a   : > { %6263 = vmatpush3.bf16.msra.mxu0 %v7566_v54  ;;  %6275 = vmatpush3.bf16.msra.mxu1 %v7566_v54 }
 0x40b   : > { %6264 = vmatprep.subr.bf16.mxu0 %v6777_v47  ;;  %6276 = vmatprep.subr.bf16.mxu1 %v6777_v47 }
 0x40c   : > { %6270 = vmatprep.mubr.msk.bf16.mxu0 %vm6778_vm13, %v6777_v47  ;;  %6282 = vmatprep.mubr.msk.bf16.mxu1 %vm6778_vm13, %v6777_v47 }
 0x40e   : > { %6265 = vmatpush3.bf16.msra.mxu0 %v7564_v53  ;;  %6277 = vmatpush3.bf16.msra.mxu1 %v7564_v53 }
 0x40f   : > { %6266 = vmatprep.subr.bf16.mxu0 %v6777_v47  ;;  %6278 = vmatprep.subr.bf16.mxu1 %v6777_v47 }
 0x412   : > { %6267 = vmatpush3.bf16.msra.mxu0 %v7578_v34  ;;  %6279 = vmatpush3.bf16.msra.mxu1 %v7578_v34 }
 0x413   : > { %6268 = vmatprep.subr.bf16.mxu0 %v6777_v47  ;;  %6280 = vmatprep.subr.bf16.mxu1 %v6777_v47 }
 0x416   : > { %6269 = vmatpush3.bf16.msra.mxu0 %v7576_v39  ;;  %6281 = vmatpush3.bf16.msra.mxu1 %v7576_v39 }
 0x417   : > { %6286 = vmatprep.subr.bf16.mxu0 %v6777_v47  ;;  %6298 = vmatprep.subr.bf16.mxu1 %v6777_v47 }
 0x419   : > { %6271 = vmatmul.mubr.msk.bf16.vlgmr.msra.gmra.mrb[92].mxu0 %vm2461_vm11, %v6694_v38  ;;  %6283 = vmatmul.mubr.msk.bf16.vlgmr.msra.gmra.mrb[100].mxu1 %vm2461_vm11, %v6695_v49 }
 0x41a   : > { %6287 = vmatpush3.bf16.msra.mxu0 %v7566_v54  ;;  %6299 = vmatpush3.bf16.msra.mxu1 %v7566_v54 }
 0x41b   : > { %6288 = vmatprep.subr.bf16.mxu0 %v6777_v47  ;;  %6300 = vmatprep.subr.bf16.mxu1 %v6777_v47 }
 0x41c   : > { %6294 = vmatprep.mubr.msk.bf16.mxu0 %vm6778_vm13, %v6777_v47  ;;  %6306 = vmatprep.mubr.msk.bf16.mxu1 %vm6778_vm13, %v6777_v47 }
 0x41e   : > { %6289 = vmatpush3.bf16.msra.mxu0 %v7564_v53  ;;  %6301 = vmatpush3.bf16.msra.mxu1 %v7564_v53 }
 0x41f   : > { %6290 = vmatprep.subr.bf16.mxu0 %v6777_v47  ;;  %6302 = vmatprep.subr.bf16.mxu1 %v6777_v47 }
 0x422   : > { %6291 = vmatpush3.bf16.msra.mxu0 %v7578_v34  ;;  %6303 = vmatpush3.bf16.msra.mxu1 %v7578_v34 }
 0x423   : > { %6292 = vmatprep.subr.bf16.mxu0 %v6777_v47  ;;  %6304 = vmatprep.subr.bf16.mxu1 %v6777_v47 }
 0x426   : > { %6293 = vmatpush3.bf16.msra.mxu0 %v7576_v39  ;;  %6305 = vmatpush3.bf16.msra.mxu1 %v7576_v39 }
 0x427   : > { %6310 = vmatprep.subr.bf16.mxu0 %v6777_v47  ;;  %6322 = vmatprep.subr.bf16.mxu1 %v6777_v47 }
 0x429   : > { %6295 = vmatmul.mubr.msk.bf16.vlgmr.msra.gmra.mrb[96].mxu0 %vm2461_vm11, %v6696_v27  ;;  %6307 = vmatmul.mubr.msk.bf16.vlgmr.msra.gmra.mrb[104].mxu1 %vm2461_vm11, %v6697_v51 }
 0x42a   : > { %6311 = vmatpush3.bf16.msra.mxu0 %v7566_v54  ;;  %6323 = vmatpush3.bf16.msra.mxu1 %v7566_v54 }
 0x42b   : > { %6312 = vmatprep.subr.bf16.mxu0 %v6777_v47  ;;  %6324 = vmatprep.subr.bf16.mxu1 %v6777_v47 }
 0x42c   : > { %6318 = vmatprep.mubr.msk.bf16.mxu0 %vm6778_vm13, %v6777_v47  ;;  %6330 = vmatprep.mubr.msk.bf16.mxu1 %vm6778_vm13, %v6777_v47 }
 0x42e   : > { %6313 = vmatpush3.bf16.msra.mxu0 %v7564_v53  ;;  %6325 = vmatpush3.bf16.msra.mxu1 %v7564_v53 }
 0x42f   : > { %6314 = vmatprep.subr.bf16.mxu0 %v6777_v47  ;;  %6326 = vmatprep.subr.bf16.mxu1 %v6777_v47 }
 0x432   : > { %6315 = vmatpush3.bf16.msra.mxu0 %v7578_v34  ;;  %6327 = vmatpush3.bf16.msra.mxu1 %v7578_v34 }
 0x433   : > { %6316 = vmatprep.subr.bf16.mxu0 %v6777_v47  ;;  %6328 = vmatprep.subr.bf16.mxu1 %v6777_v47 }
 0x436   : > { %6317 = vmatpush3.bf16.msra.mxu0 %v7576_v39  ;;  %6329 = vmatpush3.bf16.msra.mxu1 %v7576_v39 }
 0x437   : > { %6334 = vmatprep.subr.bf16.mxu0 %v6777_v47  ;;  %3233 = vmatprep.subr.bf16.mxu1 %v6779_v41 }
 0x439   : > { %6319 = vmatmul.mubr.msk.bf16.vlgmr.msra.gmra.mrb[100].mxu0 %vm2461_vm11, %v6698_v14  ;;  %6331 = vmatmul.mubr.msk.bf16.vlgmr.msra.gmra.mrb[108].mxu1 %vm2461_vm11, %v6699_v20 }
 0x43a   : > { %6335 = vmatpush3.bf16.msra.mxu0 %v7566_v54  ;;  %6342 = vmatprep.mubr.msk.bf16.mxu0 %vm6778_vm13, %v6777_v47 }
 0x43b   : > { %6336 = vmatprep.subr.bf16.mxu0 %v6777_v47  ;;  %3234 = vmatpush1.bf16.msra.mxu1 %v6701_v40 }
 0x43c   : > { %3235 = vmatprep.subr.bf16.mxu1 %v6779_v41 }
 0x43e   : > { %6337 = vmatpush3.bf16.msra.mxu0 %v7564_v53 }
 0x43f   : > { %6338 = vmatprep.subr.bf16.mxu0 %v6777_v47  ;;  %3236 = vmatpush1.bf16.msra.mxu1 %v6702_v1 }
 0x440   : > { %3237 = vmatprep.subr.bf16.mxu1 %v6779_v41 }
 0x442   : > { %6339 = vmatpush3.bf16.msra.mxu0 %v7578_v34 }
 0x443   : > { %6340 = vmatprep.subr.bf16.mxu0 %v6777_v47  ;;  %3238 = vmatpush1.bf16.msra.mxu1 %v6703_v30 }
 0x444   : > { %3239 = vmatprep.subr.bf16.mxu1 %v6779_v41 }
 0x446   : > { %6341 = vmatpush3.bf16.msra.mxu0 %v7576_v39 }
 0x447   : > { %6346 = vmatprep.subr.bf16.mxu0 %v6777_v47  ;;  %3240 = vmatpush1.bf16.msra.mxu1 %v6704_v31 }
 0x448   : > { %3241 = vmatprep.subr.bf16.mxu1 %v6779_v41 }
 0x449   : > { %6343 = vmatmul.mubr.msk.bf16.vlgmr.msra.gmra.mrb[104].mxu0 %vm2461_vm11, %v6700_v22 }
 0x44a   : > { %6348 = vmatprep.mubr.msk.bf16.mxu0 %vm6778_vm13, %v6777_v47 }
 0x44b   : > { %3242 = vmatpush1.bf16.msra.mxu1 %v6705_v5  ;;  %v3285_v5 = vld [vmem:[%s8144_s9] sm:$0x3] }
 0x44c   : > { %3243 = vmatprep.subr.bf16.mxu1 %v6779_v41 }
 0x44f   : > { %3244 = vmatpush1.bf16.msra.mxu1 %v6706_v43  ;;  %v5575_v43 = vld [vmem:[%s8144_s9 + $0x8] sm:$0x3] }
 0x450   : > { %3245 = vmatprep.subr.bf16.mxu1 %v6779_v41 }
 0x453   : > { %3246 = vmatpush1.bf16.msra.mxu1 %v6707_v3  ;;  %v5569_v3 = vld [vmem:[%s8144_s9 + $0x2] sm:$0x3] }
 0x454   : > { %3247 = vmatprep.subr.bf16.mxu1 %v6779_v41 }
 0x457   : > { %3248 = vmatpush1.bf16.msra.mxu1 %v6708_v4  ;;  %v5579_v4 = vld [vmem:[%s8144_s9 + $0xc] sm:$0x3] }
 0x458   : > { %3249 = vmatprep.subr.bf16.mxu1 %v6779_v41 }
 0x45b   : > { %3250 = vmatpush1.bf16.msra.mxu1 %v6709_v29  ;;  %v6715_v29 = vld [vmem:[%s8145_s10 + $0x28] sm:$0xff]  }
 0x45c   : > { %6370 = vmatprep.subr.bf16.mxu1 %v6777_v47 }
 0x4dc   : > { %v7700_v42 = vpop.f32.mrb[88].mxu0  ;;  %v2732_v52 = vpop.f32.mrb[96].mxu1 }
 0x4dd   : > { %v6248_v55 = vpop.f32.mrb[89].mxu0  ;;  %v6260_v56 = vpop.f32.mrb[97].mxu1 }
 0x4de   : > { %v7702_v57 = vpop.f32.mrb[90].mxu0  ;;  %v2735_v26 = vpop.f32.mrb[98].mxu1 }
 0x4df   : > { %v2686_v58 = vpack.c.bf16 %v7702_v57, %v7700_v42  ;;  %v2739_v61 = vpack.c.bf16 %v2735_v26, %v2732_v52  ;;  %v6249_v63 = vpop.f32.mrb[91].mxu0  ;;  %v6261_v0 = vpop.f32.mrb[99].mxu1  ;;  %v5557_v57 = vld [vmem:[%s8143_s8] ss:$0 sm:$0xff] }
 0x4e1   : > { %3112 = vrot.lane.b32.xlu0 %v2739_v61, %s8170_s1  ;;  %s8180_s1 = smov 120  }
 0x4ec   : > { %v2785_v48 = vpop.f32.mrb[92].mxu0  ;;  %v2838_v24 = vpop.f32.mrb[100].mxu1 }
 0x4ed   : > { %v6272_v44 = vpop.f32.mrb[93].mxu0  ;;  %v6284_v23 = vpop.f32.mrb[101].mxu1 }
 0x4ee   : > { %v2788_v60 = vpop.f32.mrb[94].mxu0  ;;  %v2841_v62 = vpop.f32.mrb[102].mxu1 }
 0x4ef   : > { %v2792_v2 = vpack.c.bf16 %v2788_v60, %v2785_v48  ;;  %v6273_v53 = vpop.f32.mrb[95].mxu0  ;;  %v2845_v54 = vpack.c.bf16 %v2841_v62, %v2838_v24  ;;  %v6285_v59 = vpop.f32.mrb[103].mxu1 }
 0x4f1   : > { %3115 = vrot.lane.b32.xlu1 %v2792_v2, %s6771_s2  ;;  %3118 = vrot.lane.b32.xlu0 %v2845_v54, %s8199_s27  ;;  %s8204_s2 = smov 40  }
 0x4fc   : > { %v2891_v6 = vpop.f32.mrb[96].mxu0  ;;  %v2944_v7 = vpop.f32.mrb[104].mxu1 }
 0x4fd   : > { %v6296_v8 = vpop.f32.mrb[97].mxu0  ;;  %v6308_v11 = vpop.f32.mrb[105].mxu1 }
 0x4fe   : > { %v2894_v12 = vpop.f32.mrb[98].mxu0  ;;  %v2947_v15 = vpop.f32.mrb[106].mxu1  ;;  %v5573_v8 = vld [vmem:[%s8144_s9 + $0x6] sm:$0x3]  ;;  %v5577_v11 = vld [vmem:[%s8144_s9 + $0xa] sm:$0x3] }
 0x4ff   : > { %v2898_v18 = vpack.c.bf16 %v2894_v12, %v2891_v6  ;;  %v6297_v19 = vpop.f32.mrb[99].mxu0  ;;  %v2951_v25 = vpack.c.bf16 %v2947_v15, %v2944_v7  ;;  %v6309_v16 = vpop.f32.mrb[107].mxu1  ;;  %v5571_v6 = vld [vmem:[%s8144_s9 + $0x4] sm:$0x3]  ;;  %v5583_v7 = vld [vmem:[%s8144_s9 + $0x10] sm:$0x3] }
 0x500   : > { %v5581_v12 = vld [vmem:[%s8144_s9 + $0xe] sm:$0x3]  ;;  %v6710_v15 = vld [vmem:[%s8145_s10] sm:$0xff]   ;;  %v6712_v19 = vld [vmem:[%s8145_s10 + $0x10] sm:$0xff]  }
 0x501   : > { %3121 = vrot.lane.b32.xlu1 %v2898_v18, %s8200_s24  ;;  %3124 = vrot.lane.b32.xlu0 %v2951_v25, %s8172_s26  ;;  %v6711_v18 = vld [vmem:[%s8145_s10 + $0x8] sm:$0xff]   ;;  %v6713_v25 = vld [vmem:[%s8145_s10 + $0x18] sm:$0xff]   ;;  %s8206_s26 = smov 80  }
 0x502   : > { %v6714_v16 = vld [vmem:[%s8145_s10 + $0x20] sm:$0xff]  }
 0x50c   : > { %v2997_v35 = vpop.f32.mrb[100].mxu0  ;;  %v3050_v9 = vpop.f32.mrb[108].mxu1 }
 0x50d   : > { %v6320_v13 = vpop.f32.mrb[101].mxu0  ;;  %v6332_v21 = vpop.f32.mrb[109].mxu1 }
 0x50e   : > { %v3000_v36 = vpop.f32.mrb[102].mxu0  ;;  %v3053_v32 = vpop.f32.mrb[110].mxu1  ;;  %v6716_v13 = vld [vmem:[%s8145_s10 + $0x30] sm:$0xff]  }
 0x50f   : > { %v3004_v28 = vpack.c.bf16 %v3000_v36, %v2997_v35  ;;  %v3057_v33 = vpack.c.bf16 %v3053_v32, %v3050_v9  ;;  %v6321_v45 = vpop.f32.mrb[103].mxu0  ;;  %v6333_v10 = vpop.f32.mrb[111].mxu1 }
 0x510   : > { %v6717_v10 = vld [vmem:[%s8145_s10 + $0x38] sm:$0xff]  }
 0x511   : > { %3127 = vrot.lane.b32.xlu1 %v3004_v28, %s8176_s29  ;;  %3130 = vrot.lane.b32.xlu0 %v3057_v33, %s8174_s7  ;;  %s8208_s7 = smov 120   ;;  %s5341_s29 = sshll.u32 %s8210_s30, 3 }
 0x51c   : > { %v3103_v17 = vpop.f32.mrb[104].mxu0 }
 0x51d   : > { %v6344_v50 = vpop.f32.mrb[105].mxu0 }
 0x51e   : > { %v3106_v39 = vpop.f32.mrb[106].mxu0 }
 0x51f   : > { %v3110_v34 = vpack.c.bf16 %v3106_v39, %v3103_v17  ;;  %v6345_v37 = vpop.f32.mrb[107].mxu0  ;;  %v6718_v39 = vld [vmem:[%s8145_s10 + $0x40] sm:$0xff]  }
 0x521   : > { %5567 = vmatprep.mubr.msk.bf16.mxu1 %vm2407_vm5, %v3110_v34 }
 0x553   : > { %v3113_v46 = vpop.permute.xlu0 %3112 }
 0x554   : > { %v3134_v49 = vsel %vm2407_vm5, %v2686_v58, %v3113_v46 }
 0x563   : > { %v3116_v38 = vpop.permute.xlu1 %3115  ;;  %v3119_v27 = vpop.permute.xlu0 %3118 }
 0x564   : > { %v3136_v51 = vsel %vm2425_vm7, %v3134_v49, %v3116_v38 }
 0x565   : > { %v3138_v20 = vsel %vm2443_vm9, %v3136_v51, %v3119_v27 }
 0x573   : > { %v3122_v14 = vpop.permute.xlu1 %3121  ;;  %v3125_v22 = vpop.permute.xlu0 %3124 }
 0x574   : > { %v3140_v40 = vsel %vm2461_vm11, %v3138_v20, %v3122_v14  ;;  %v6719_v20 = vld [vmem:[%s8145_s10 + $0x48] sm:$0xff]  }
 0x575   : > { %v3143_v52 = vsel %vm3141_vm14, %v3140_v40, %v3125_v22 }
 0x583   : > { %v3128_v55 = vpop.permute.xlu1 %3127  ;;  %v3131_v56 = vpop.permute.xlu0 %3130 }
 0x584   : > { %v3146_v26 = vsel %vm3144_vm15, %v3143_v52, %v3128_v55  ;;  %v6720_v52 = vld [vmem:[%s8145_s10 + $0x50] sm:$0xff]  }
 0x585   : > { %v3149_v42 = vsel %vm3147_vm0, %v3146_v26, %v3131_v56 }
 0x586   : > { %3266 = vmatmul.mubr.bf16.vlgmr.msra.gmra.mrb[112].mxu1 %v3149_v42 }
 0x587   : > { %6372 = vmatprep.mubr.msk.bf16.mxu1 %vm6778_vm13, %v6777_v47 }
 0x659   : > { %v3267_v58 = vpop.f32.mrb[112].mxu1 }
 0x65a   : > { %v3268_v61 = vadd.f32 %v5557_v57, %v3267_v58  ;;  %v3269_v63 = vpop.f32.mrb[113].mxu1 }
 0x65b   : > { %v3270_v0 = vpop.f32.mrb[114].mxu1  ;;  %v6721_v63 = vld [vmem:[%s8145_s10 + $0x58] sm:$0xff]  }
 0x65c   : > { %v3274_v1 = vadd.f32 3.0, %v3268_v61  ;;  %v3271_v30 = vadd.f32 %v5557_v57, %v3270_v0  ;;  %v3272_v31 = vpop.f32.mrb[115].mxu1 }
 0x65e   : > { %v3276_v48 = vmax.f32 %v3274_v1, 0.0  ;;  %v3275_v24 = vadd.f32 3.0, %v3271_v30 }
 0x660   : > { %v3278_v44 = vmin.f32 %v3276_v48, 6.0  ;;  %v3277_v23 = vmax.f32 %v3275_v24, 0.0  ;;  %v6722_v48 = vld [vmem:[%s8145_s10 + $0x60] sm:$0xff]  }
 0x662   : > { %v3280_v60 = vmul.f32 %v3278_v44, %v3268_v61  ;;  %v3279_v62 = vmin.f32 %v3277_v23, 6.0  ;;  %v6723_v44 = vld [vmem:[%s8145_s10 + $0x68] ss:$0 sps:$4 sm:$0xff]  }
 0x664   : > { %v3281_v2 = vmul.f32 %v3279_v62, %v3271_v30  ;;  %v3282_v53 = vmul.f32 0.16666667, %v3280_v60  ;;  %v3860_v60 = vsel %vm2522_vm3, %v6723_v44, 0 }
 0x666   : > { %v3283_v54 = vmul.f32 0.16666667, %v3281_v2 }
 0x668   : > { %v3284_v59 = vpack.c.bf16 %v3283_v54, %v3282_v53 }
 0x66a   : > { %6347 = vmatpush3.bf16.msra.mxu0 %v3284_v59  ;;  %6371 = vmatpush3.bf16.msra.mxu1 %v3284_v59 }
 0x66b   : > { %6352 = vmatprep.subr.bf16.mxu0 %v6777_v47  ;;  %6382 = vmatprep.subr.bf16.mxu1 %v6777_v47 }
 0x66d   : > { %6349 = vmatmul.mubr.msk.bf16.vlgmr.msra.gmra.mrb[108].mxu0 %vm2407_vm5, %v3285_v5  ;;  %6373 = vmatmul.mubr.msk.bf16.vlgmr.msra.gmra.mrb[116].mxu1 %vm2407_vm5, %v5575_v43 }
 0x66e   : > { %6353 = vmatpush3.bf16.msra.mxu0 %v3284_v59  ;;  %6383 = vmatpush3.bf16.msra.mxu1 %v3284_v59 }
 0x66f   : > { %6354 = vmatprep.mubr.msk.bf16.mxu0 %vm6778_vm13, %v6777_v47  ;;  %6358 = vmatprep.subr.bf16.mxu0 %v6777_v47 }
 0x670   : > { %6384 = vmatprep.mubr.msk.bf16.mxu1 %vm6778_vm13, %v6777_v47  ;;  %6394 = vmatprep.subr.bf16.mxu1 %v6777_v47 }
 0x675   : > { %6355 = vmatmul.mubr.msk.bf16.vlgmr.msra.gmra.mrb[112].mxu0 %vm2407_vm5, %v5569_v3  ;;  %6385 = vmatmul.mubr.msk.bf16.vlgmr.msra.gmra.mrb[120].mxu1 %vm2407_vm5, %v5579_v4 }
 0x676   : > { %6359 = vmatpush3.bf16.msra.mxu0 %v3284_v59  ;;  %6395 = vmatpush3.bf16.msra.mxu1 %v3284_v59 }
 0x677   : > { %6360 = vmatprep.mubr.msk.bf16.mxu0 %vm6778_vm13, %v6777_v47  ;;  %6364 = vmatprep.subr.bf16.mxu0 %v6777_v47 }
 0x678   : > { %6396 = vmatprep.mubr.msk.bf16.mxu1 %vm6778_vm13, %v6777_v47  ;;  %6400 = vmatprep.subr.bf16.mxu1 %v6777_v47 }
 0x67d   : > { %6361 = vmatmul.mubr.msk.bf16.vlgmr.msra.gmra.mrb[116].mxu0 %vm2407_vm5, %v5571_v6  ;;  %6397 = vmatmul.mubr.msk.bf16.vlgmr.msra.gmra.mrb[124].mxu1 %vm2407_vm5, %v5583_v7 }
 0x67e   : > { %6365 = vmatpush3.bf16.msra.mxu0 %v3284_v59  ;;  %6366 = vmatprep.mubr.msk.bf16.mxu0 %vm6778_vm13, %v6777_v47 }
 0x67f   : > { %6376 = vmatprep.subr.bf16.mxu0 %v6777_v47  ;;  %6404 = vmatprep.mubr.msk.bf16.mxu1 %vm6778_vm13, %v6777_v47 }
 0x685   : > { %6367 = vmatmul.mubr.msk.bf16.vlgmr.msra.gmra.mrb[120].mxu0 %vm2407_vm5, %v5573_v8 }
 0x686   : > { %6377 = vmatpush3.bf16.msra.mxu0 %v3284_v59  ;;  %6378 = vmatprep.mubr.msk.bf16.mxu0 %vm6778_vm13, %v6777_v47 }
 0x687   : > { %6388 = vmatprep.subr.bf16.mxu0 %v6777_v47 }
 0x68d   : > { %6379 = vmatmul.mubr.msk.bf16.vlgmr.msra.gmra.mrb[124].mxu0 %vm2407_vm5, %v5577_v11 }
 0x68e   : > { %6389 = vmatpush3.bf16.msra.mxu0 %v3284_v59  ;;  %6390 = vmatprep.mubr.msk.bf16.mxu0 %vm6778_vm13, %v6777_v47 }
 0x68f   : > { %3862 = vmatprep.subr.bf16.mxu0 %v6779_v41 }
 0x695   : > { %6391 = vmatmul.mubr.msk.bf16.vlgmr.msra.gmra.mrb[128].mxu0 %vm2407_vm5, %v5581_v12 }
 0x696   : > { %3863 = vmatpush1.bf16.msra.mxu0 %v6710_v15 }
 0x697   : > { %3864 = vmatprep.subr.bf16.mxu0 %v6779_v41 }
 0x69a   : > { %3865 = vmatpush1.bf16.msra.mxu0 %v6711_v18 }
 0x69b   : > { %3866 = vmatprep.subr.bf16.mxu0 %v6779_v41 }
 0x69e   : > { %3867 = vmatpush1.bf16.msra.mxu0 %v6712_v19 }
 0x69f   : > { %3868 = vmatprep.subr.bf16.mxu0 %v6779_v41 }
 0x6a2   : > { %3869 = vmatpush1.bf16.msra.mxu0 %v6713_v25 }
 0x6a3   : > { %3870 = vmatprep.subr.bf16.mxu0 %v6779_v41 }
 0x6a6   : > { %3871 = vmatpush1.bf16.msra.mxu0 %v6714_v16 }
 0x6a7   : > { %3872 = vmatprep.subr.bf16.mxu0 %v6779_v41 }
 0x6aa   : > { %3873 = vmatpush1.bf16.msra.mxu0 %v6715_v29 }
 0x6ab   : > { %3874 = vmatprep.subr.bf16.mxu0 %v6779_v41 }
 0x6ae   : > { %3875 = vmatpush1.bf16.msra.mxu0 %v6716_v13 }
 0x6af   : > { %3876 = vmatprep.subr.bf16.mxu0 %v6779_v41 }
 0x6b2   : > { %3877 = vmatpush1.bf16.msra.mxu0 %v6717_v10  ;;  %v5585_v10 = vld [vmem:[%s8146_s11] ss:$0 sm:$0xff] }
 0x6b3   : > { %3878 = vmatprep.subr.bf16.mxu0 %v6779_v41 }
 0x6b6   : > { %3879 = vmatpush1.bf16.msra.mxu0 %v6718_v39 }
 0x6b7   : > { %3880 = vmatprep.subr.bf16.mxu0 %v6779_v41 }
 0x6ba   : > { %3881 = vmatpush1.bf16.msra.mxu0 %v6719_v20 }
 0x6bb   : > { %3882 = vmatprep.subr.bf16.mxu0 %v6779_v41 }
 0x6be   : > { %3883 = vmatpush1.bf16.msra.mxu0 %v6720_v52 }
 0x6bf   : > { %3884 = vmatprep.subr.bf16.mxu0 %v6779_v41 }
 0x6c2   : > { %3885 = vmatpush1.bf16.msra.mxu0 %v6721_v63 }
 0x6c3   : > { %3886 = vmatprep.subr.bf16.mxu0 %v6779_v41 }
 0x6c6   : > { %3887 = vmatpush1.bf16.msra.mxu0 %v6722_v48 }
 0x6c7   : > { %3888 = vmatprep.subr.bf16.mxu0 %v6779_v41  ;;  %v6724_v41 = vld [vmem:[%s8147_s12] sm:$0xff]  }
 0x6c8   : > { %6401 = vmatpush3.bf16.msra.mxu1 %v6724_v41 }
 0x6c9   : > { %6402 = vmatprep.subr.bf16.mxu1 %v6777_v47 }
 0x6ca   : > { %3889 = vmatpush1.bf16.msra.mxu0 %v3860_v60  ;;  %v5609_v60 = vld [vmem:[%s8149_s14 + $0x4] sm:$0xf] }
 0x6cb   : > { %6456 = vmatprep.subr.bf16.mxu0 %v6777_v47 }
 0x740   : > { %v7843_v35 = vpop.f32.mrb[108].mxu0  ;;  %v7845_v9 = vpop.f32.mrb[116].mxu1 }
 0x741   : > { %v6350_v21 = vpop.f32.mrb[109].mxu0  ;;  %v6374_v36 = vpop.f32.mrb[117].mxu1  ;;  %v3513_v59 = vpack.c.bf16 %v7845_v9, %v7845_v9  ;;  %v3329_v19 = vpack.c.bf16 %v7843_v35, %v7843_v35 }
 0x742   : > { %v3326_v32 = vpop.f32.mrb[110].mxu0  ;;  %v3510_v28 = vpop.f32.mrb[118].mxu1 }
 0x743   : > { %v6351_v33 = vpop.f32.mrb[111].mxu0  ;;  %v6375_v45 = vpop.f32.mrb[119].mxu1 }
 0x744   : > { %v6725_v45 = vld [vmem:[%s8147_s12 + $0x8] sm:$0xff]  }
 0x745   : > { %6403 = vmatpush3.bf16.msra.mxu1 %v6725_v45 }
 0x746   : > { %6408 = vmatprep.subr.mxu1 %v6777_v47 }
 0x748   : > { %v3369_v17 = vpop.f32.mrb[112].mxu0  ;;  %v3599_v50 = vpop.f32.mrb[120].mxu1 }
 0x749   : > { %v3375_v34 = vpack.c.bf16 %v3369_v17, %v3369_v17  ;;  %v6356_v37 = vpop.f32.mrb[113].mxu0  ;;  %v3605_v46 = vpack.c.bf16 %v3599_v50, %v3599_v50  ;;  %v6386_v38 = vpop.f32.mrb[121].mxu1 }
 0x74a   : > { %v3372_v49 = vpop.f32.mrb[114].mxu0  ;;  %v3602_v27 = vpop.f32.mrb[122].mxu1  ;;  %v5601_v38 = vld [vmem:[%s8148_s13] ss:$0 sm:$0xff] }
 0x74b   : > { %3699 = vrot.lane.b32.xlu1 %v3375_v34, %s8201_s0  ;;  %v6357_v51 = vpop.f32.mrb[115].mxu0  ;;  %3714 = vrot.lane.b32.xlu0 %v3605_v46, %s8202_s3  ;;  %v6387_v14 = vpop.f32.mrb[123].mxu1  ;;  %s8203_s0 = smov 96  }
 0x750   : > { %v3415_v22 = vpop.f32.mrb[116].mxu0  ;;  %v3691_v40 = vpop.f32.mrb[124].mxu1 }
 0x751   : > { %v3421_v55 = vpack.c.bf16 %v3415_v22, %v3415_v22  ;;  %v6362_v56 = vpop.f32.mrb[117].mxu0  ;;  %v6398_v26 = vpop.f32.mrb[125].mxu1  ;;  %v3697_v6 = vpack.c.bf16 %v3691_v40, %v3691_v40  ;;  %v3969_v40 = vld [vmem:[%s8149_s14] sm:$0xf] }
 0x752   : > { %v3418_v42 = vpop.f32.mrb[118].mxu0  ;;  %v3694_v57 = vpop.f32.mrb[126].mxu1 }
 0x753   : > { %3702 = vrot.lane.b32.xlu0 %v3421_v55, %s8199_s27  ;;  %v6363_v58 = vpop.f32.mrb[119].mxu0  ;;  %v6399_v61 = vpop.f32.mrb[127].mxu1  ;;  %s6783_s27 = smov 72  }
 0x758   : > { %v3461_v0 = vpop.f32.mrb[120].mxu0 }
 0x759   : > { %v3467_v1 = vpack.c.bf16 %v3461_v0, %v3461_v0  ;;  %v6368_v30 = vpop.f32.mrb[121].mxu0 }
 0x75a   : > { %v3464_v31 = vpop.f32.mrb[122].mxu0 }
 0x75b   : > { %3705 = vrot.lane.b32.xlu1 %v3467_v1, %s6783_s27  ;;  %v6369_v24 = vpop.f32.mrb[123].mxu0  ;;  %s8205_s27 = smov 112  }
 0x760   : > { %v3553_v23 = vpop.f32.mrb[124].mxu0 }
 0x761   : > { %v3559_v62 = vpack.c.bf16 %v3553_v23, %v3553_v23  ;;  %v6380_v2 = vpop.f32.mrb[125].mxu0 }
 0x762   : > { %v3556_v53 = vpop.f32.mrb[126].mxu0 }
 0x763   : > { %3711 = vrot.lane.b32.xlu1 %v3559_v62, %s8180_s1  ;;  %v6381_v54 = vpop.f32.mrb[127].mxu0 }
 0x767   : > { %3708 = vrot.lane.b32.xlu1 %v3513_v59, %s8203_s0 }
 0x768   : > { %v3645_v5 = vpop.f32.mrb[128].mxu0 }
 0x769   : > { %v3651_v43 = vpack.c.bf16 %v3645_v5, %v3645_v5  ;;  %v6392_v3 = vpop.f32.mrb[129].mxu0 }
 0x76a   : > { %v3648_v4 = vpop.f32.mrb[130].mxu0 }
 0x76b   : > { %3717 = vrot.lane.b32.xlu0 %v3651_v43, %s8204_s2  ;;  %v6393_v7 = vpop.f32.mrb[131].mxu0 }
 0x76f   : > { %3720 = vrot.lane.b32.xlu0 %v3697_v6, %s8200_s24 }
 0x7bd   : > { %v3700_v8 = vpop.permute.xlu1 %3699  ;;  %v3715_v11 = vpop.permute.xlu0 %3714 }
 0x7be   : > { %v3724_v25 = vsel %vm2416_vm6, %v3329_v19, %v3700_v8  ;;  %vm4047_vm6 = vcmask 27648  }
 0x7c5   : > { %v3703_v18 = vpop.permute.xlu0 %3702 }
 0x7c6   : > { %v3726_v9 = vsel %vm2443_vm9, %v3724_v25, %v3703_v18 }
 0x7cd   : > { %v3706_v12 = vpop.permute.xlu1 %3705 }
 0x7ce   : > { %v3728_v13 = vsel %vm2513_vm12, %v3726_v9, %v3706_v12  ;;  %v6727_v12 = vld [vmem:[%s8150_s15 + $0x8] sm:$0xff]  }
 0x7d5   : > { %v3712_v15 = vpop.permute.xlu1 %3711 }
 0x7d6   : > { %v3736_v21 = vsel %vm2407_vm5, %v3712_v15, %v3715_v11  ;;  %v6726_v11 = vld [vmem:[%s8150_s15] sm:$0xff]  }
 0x7d9   : > { %v3709_v16 = vpop.permute.xlu1 %3708 }
 0x7da   : > { %v3730_v36 = vsel %vm3144_vm15, %v3728_v13, %v3709_v16 }
 0x7db   : > { %v3733_v35 = vsel %vm3731_vm2, %v3730_v36, %v3712_v15 }
 0x7dd   : > { %v3718_v29 = vpop.permute.xlu0 %3717 }
 0x7de   : > { %v3738_v32 = vsel %vm2434_vm8, %v3736_v21, %v3718_v29  ;;  %vm4061_vm8 = vcmask 31744  }
 0x7e1   : > { %v3721_v28 = vpop.permute.xlu0 %3720 }
 0x7e2   : > { %v3740_v33 = vsel %vm2461_vm11, %v3738_v32, %v3721_v28  ;;  %v6728_v32 = vld [vmem:[%s8152_s17] sm:$0xff]   ;;  %v6729_v28 = vld [vmem:[%s8152_s17 + $0x8] sm:$0xff]  }
 0x7e3   : > { %5600 = vmatprep.mubr.msk.bf16.mxu0 %vm3856_vm1, %v3740_v33 }
 0x7e4   : > { %3895 = vmatmul.mubr.bf16.vlgmr.msra.gmra.mrb[132].mxu0 %v3733_v35  ;;  %v5617_v35 = vld [vmem:[%s8151_s16] ss:$0 sm:$0xff] }
 0x7e5   : > { %6460 = vmatprep.mubr.msk.bf16.mxu0 %vm6778_vm13, %v6777_v47 }
 0x8b7   : > { %v3896_v17 = vpop.f32.mrb[132].mxu0 }
 0x8b8   : > { %v7912_v50 = vadd.f32 %v5585_v10, %v3896_v17  ;;  %v3898_v39 = vpop.f32.mrb[133].mxu0 }
 0x8b9   : > { %v3899_v34 = vpop.f32.mrb[134].mxu0 }
 0x8ba   : > { %v3902_v37 = vpack.c.bf16 %v7912_v50, %v7912_v50  ;;  %v3900_v46 = vpop.f32.mrb[135].mxu0 }
 0x8bb   : > { %v6730_v46 = vld [vmem:[%s8154_s19] sm:$0xff]  }
 0x8bc   : > { %6405 = vmatmul.mubr.msk.bf16.vlgmr.msra.gmra.mrb[128].mxu1 %vm2425_vm7, %v3902_v37 }
 0x8bd   : > { %6410 = vmatprep.mubr.msk.f32.mxu1 %vm6778_vm13, %v6777_v47 }
 0x98f   : > { %v3963_v49 = vpop.f32.mrb[128].mxu1 }
 0x990   : > { %v3964_v27 = vadd.f32 %v5601_v38, %v3963_v49  ;;  %v6406_v51 = vpop.f32.mrb[129].mxu1  ;;  %v6732_v38 = vld [vmem:[%s8154_s19 + $0x10] sm:$0xff]   ;;  %v6733_v49 = vld [vmem:[%s8154_s19 + $0x18] sm:$0xff]  }
 0x991   : > { %v3966_v14 = vpop.f32.mrb[130].mxu1 }
 0x992   : > { %3971 = vrot.lane.b32.xlu1 %v3964_v27, %s8180_s1  ;;  %v6407_v20 = vpop.f32.mrb[131].mxu1  ;;  %s708_s1 = scalar_lea.vmem %s8158_s23, %s5341_s29 }
 0xa04   : > { %v3972_v22 = vpop.permute.xlu1 %3971 }
 0xa05   : > { %6409 = vmatpush3.xpose.msk.msra.mxu1 %vm2394_vm4, %v3972_v22 }
 0xa06   : > { %6413 = vmatprep.subr.mxu1 %v6777_v47 }
 0xa08   : > { %6411 = vmatmul.mubr.msk.f32.vlgmr.msra.gmra.mrb[132].mxu1 %vm2394_vm4, %v3964_v27 }
 0xa09   : > { %6415 = vmatprep.mubr.msk.f32.mxu1 %vm6778_vm13, %v6777_v47 }
 0xadb   : > { %v4043_v52 = vpop.f32.mrb[132].mxu1 }
 0xadc   : > { %v4044_v55 = vadd.f32 %v4043_v52, %v3969_v40  ;;  %v6412_v56 = vpop.f32.mrb[133].mxu1 }
 0xade   : > { %v4048_v26 = vsel %vm4047_vm6, %v4044_v55, -inf }
 0xadf   : > { %4049 = vmax.xlane.f32.xlu0 %v4048_v26 }
 0xaf5   : > { %4059 = vrot.lane.b32.xlu0 %v3964_v27, %s8205_s27 }
 0xaf9   : > { %4139 = vrot.lane.b32.xlu0 %v3964_v27, %s8203_s0 }
 0xb6c   : > { %v4050_v42 = vpop.xlane.xlu0 %4049 }
 0xb6d   : > { %v4051_v57 = vsub.f32 %v4044_v55, %v4050_v42 }
 0xb6f   : > { %v4052_v58 = vmul.f32 1.442695, %v4051_v57 }
 0xb70   : > { %v4060_v61 = vpop.permute.xlu0 %4059 }
 0xb71   : > { %6744 = vpow2.f32 %v4052_v58  ;;  %6414 = vmatpush3.msk.msra.mxu1 %vm2522_vm3, %v4060_v61  ;;  %v6734_v58 = vld [vmem:[%s8147_s12 + $0x10] sm:$0xff]   ;;  %v6735_v61 = vld [vmem:[%s8147_s12 + $0x18] sm:$0xff]  }
 0xb72   : > { %6418 = vmatprep.subr.mxu1 %v6777_v47  ;;  %6457 = vmatpush3.bf16.msra.mxu0 %v6734_v58 }
 0xb73   : > { %6458 = vmatprep.subr.bf16.mxu0 %v6777_v47 }
 0xb74   : > { %v4140_v24 = vpop.permute.xlu0 %4139 }
 0xb76   : > { %6459 = vmatpush3.bf16.msra.mxu0 %v6735_v61  ;;  %v5655_v61 = vld [vmem:[%s8151_s16 + $0x1] ss:$0 sm:$0xff] }
 0xb77   : > { %6464 = vmatprep.subr.mxu0 %v6777_v47 }
 0xb7b   : > { %v6745_v63 = vpop.eup %6744 }
 0xb7c   : > { %v4054_v0 = vsel %vm4047_vm6, %v6745_v63, 0.0 }
 0xb7d   : > { %4055 = vadd.xlane.f32.xlu1 %v4054_v0  ;;  %v5627_v0 = vld [vmem:[%s8155_s20] ss:$0 sm:$0xff] }
 0xb8e   : > { %4141 = vrot.lane.b32.xlu1 %v3964_v27, %s8181_s25  ;;  %s8207_s25 = smov 88  }
 0xc0a   : > { %v4056_v1 = vpop.xlane.xlu1 %4055 }
 0xc0b   : > { %6746 = vrcp.f32 %v4056_v1 }
 0xc0e   : > { %v4142_v48 = vpop.permute.xlu1 %4141 }
 0xc15   : > { %v6747_v30 = vpop.eup %6746 }
 0xc16   : > { %v4058_v31 = vmul.f32 %v6747_v30, %v6745_v63 }
 0xc18   : > { %6416 = vmatmul.mubr.msk.f32.vlgmr.msra.gmra.mrb[134].mxu1 %vm4061_vm8, %v4058_v31 }
 0xc19   : > { %6419 = vmatpush3.xpose.msk.msra.mxu1 %vm2394_vm4, %v4142_v48  ;;  %6420 = vmatprep.mubr.msk.f32.mxu1 %vm6778_vm13, %v6777_v47 }
 0xc1a   : > { %6423 = vmatprep.subr.mxu1 %v6777_v47 }
 0xc1c   : > { %6421 = vmatmul.mubr.msk.f32.vlgmr.msra.gmra.mrb[136].mxu1 %vm2394_vm4, %v4140_v24 }
 0xc1d   : > { %6425 = vmatprep.mubr.msk.f32.mxu1 %vm6778_vm13, %v6777_v47 }
 0xceb   : > { %v4133_v44 = vpop.f32.mrb[134].mxu1 }
 0xcec   : > { %v6417_v23 = vpop.f32.mrb[135].mxu1 }
 0xced   : > { %v5633_v23 = vld [vmem:[%s8148_s13 + $0x1] ss:$0 sm:$0xff] }
 0xcef   : > { %v4213_v62 = vpop.f32.mrb[136].mxu1 }
 0xcf0   : > { %v4214_v2 = vadd.f32 %v5609_v60, %v4213_v62  ;;  %v6422_v53 = vpop.f32.mrb[137].mxu1 }
 0xcf2   : > { %v4217_v54 = vsel %vm4047_vm6, %v4214_v2, -inf }
 0xcf3   : > { %4218 = vmax.xlane.f32.xlu1 %v4217_v54 }
 0xd80   : > { %v4219_v41 = vpop.xlane.xlu1 %4218 }
 0xd81   : > { %v4220_v59 = vsub.f32 %v4214_v2, %v4219_v41 }
 0xd83   : > { %v4221_v5 = vmul.f32 1.442695, %v4220_v59 }
 0xd85   : > { %6748 = vpow2.f32 %v4221_v5 }
 0xd8f   : > { %v6749_v43 = vpop.eup %6748 }
 0xd90   : > { %v4223_v3 = vsel %vm4047_vm6, %v6749_v43, 0.0 }
 0xd91   : > { %4224 = vadd.xlane.f32.xlu0 %v4223_v3 }
 0xda7   : > { %4228 = vrot.lane.b32.xlu0 %v3964_v27, %s8206_s26  ;;  %v5618_v27 = vld [vmem:[%s8153_s18] ss:$0 sm:$0xff] }
 0xe1e   : > { %v4225_v4 = vpop.xlane.xlu0 %4224 }
 0xe1f   : > { %6750 = vrcp.f32 %v4225_v4 }
 0xe22   : > { %v4229_v6 = vpop.permute.xlu0 %4228 }
 0xe23   : > { %6424 = vmatpush3.msk.msra.mxu1 %vm2522_vm3, %v4229_v6 }
 0xe24   : > { %6428 = vmatprep.subr.bf16.mxu1 %v6777_v47 }
 0xe29   : > { %v6751_v7 = vpop.eup %6750 }
 0xe2a   : > { %v4227_v8 = vmul.f32 %v6751_v7, %v6749_v43  ;;  %v5637_v43 = vld [vmem:[%s8149_s14 + $0x8] sm:$0xf]  ;;  %v5642_v7 = vld [vmem:[%s8149_s14 + $0xc] sm:$0xf] }
 0xe2c   : > { %6426 = vmatmul.mubr.msk.f32.vlgmr.msra.gmra.mrb[138].mxu1 %vm4061_vm8, %v4227_v8 }
 0xe2d   : > { %6432 = vmatprep.mubr.msk.bf16.mxu1 %vm6778_vm13, %v6777_v47  ;;  %6429 = vmatpush3.bf16.msra.mxu1 %v6726_v11 }
 0xe2e   : > { %6430 = vmatprep.subr.bf16.mxu1 %v6777_v47 }
 0xe31   : > { %6431 = vmatpush3.bf16.msra.mxu1 %v6727_v12 }
 0xe32   : > { %6436 = vmatprep.subr.bf16.mxu1 %v6777_v47 }
 0xeff   : > { %v4301_v15 = vpop.f32.mrb[138].mxu1 }
 0xf00   : > { %4306 = vrot.lane.b32.xlu1 %v4301_v15, %s8202_s3  ;;  %v6427_v18 = vpop.f32.mrb[139].mxu1 }
 0xf72   : > { %v4307_v19 = vpop.permute.xlu1 %4306 }
 0xf73   : > { %v4309_v25 = vsel %vm2407_vm5, %v4133_v44, %v4307_v19 }
 0xf74   : > { %v4310_v16 = vadd.f32 3.0, %v4309_v25 }
 0xf76   : > { %v4311_v29 = vmax.f32 %v4310_v16, 0.0 }
 0xf78   : > { %v4312_v9 = vmin.f32 %v4311_v29, 6.0 }
 0xf7a   : > { %v4313_v13 = vmul.f32 %v4312_v9, %v4309_v25 }
 0xf7c   : > { %v4314_v21 = vmul.f32 0.16666667, %v4313_v13 }
 0xf7e   : > { %v4315_v36 = vpack.c.bf16 %v4314_v21, %v4314_v21 }
 0xf80   : > { %6433 = vmatmul.mubr.msk.bf16.vlgmr.msra.gmra.mrb[140].mxu1 %vm2425_vm7, %v4315_v36 }
 0xf81   : > { %6440 = vmatprep.mubr.msk.bf16.mxu1 %vm6778_vm13, %v6777_v47  ;;  %6437 = vmatpush3.bf16.msra.mxu1 %v6728_v32 }
 0xf82   : > { %6438 = vmatprep.subr.bf16.mxu1 %v6777_v47 }
 0xf85   : > { %6439 = vmatpush3.bf16.msra.mxu1 %v6729_v28 }
 0xf86   : > { %6444 = vmatprep.subr.bf16.mxu1 %v6777_v47 }
0x1053   : > { %v4369_v33 = vpop.f32.mrb[140].mxu1 }
0x1054   : > { %v4375_v45 = vadd.f32 %v4369_v33, %v7912_v50  ;;  %v6434_v10 = vpop.f32.mrb[141].mxu1  ;;  %v6731_v50 = vld [vmem:[%s8154_s19 + $0x8] sm:$0xff]  }
0x1055   : > { %v4372_v17 = vpop.f32.mrb[142].mxu1 }
0x1056   : > { %v4383_v39 = vadd.f32 %v5617_v35, %v4375_v45  ;;  %v6435_v34 = vpop.f32.mrb[143].mxu1 }
0x1058   : > { %v4384_v37 = vpack.c.bf16 %v4383_v39, %v4383_v39 }
0x105a   : > { %6441 = vmatmul.mubr.msk.bf16.vlgmr.msra.gmra.mrb[144].mxu1 %vm2425_vm7, %v4384_v37 }
0x105b   : > { %6452 = vmatprep.mubr.msk.bf16.mxu1 %vm6778_vm13, %v6777_v47  ;;  %6445 = vmatpush3.bf16.msra.mxu1 %v6730_v46  ;;  %v6736_v46 = vld [vmem:[%s8150_s15 + $0x10] sm:$0xff]  }
0x105c   : > { %6446 = vmatprep.subr.bf16.mxu1 %v6777_v47 }
0x105f   : > { %6447 = vmatpush3.bf16.msra.mxu1 %v6731_v50 }
0x1060   : > { %6448 = vmatprep.subr.bf16.mxu1 %v6777_v47 }
0x1063   : > { %6449 = vmatpush3.bf16.msra.mxu1 %v6732_v38 }
0x1064   : > { %6450 = vmatprep.subr.bf16.mxu1 %v6777_v47 }
0x1067   : > { %6451 = vmatpush3.bf16.msra.mxu1 %v6733_v49  ;;  %v6737_v49 = vld [vmem:[%s8150_s15 + $0x18] sm:$0xff]  }
0x1068   : > { %6469 = vmatprep.subr.mxu1 %v6777_v47 }
0x112d   : > { %v4445_v51 = vpop.f32.mrb[144].mxu1 }
0x112e   : > { %v4446_v14 = vadd.f32 %v5618_v27, %v4445_v51  ;;  %v6442_v20 = vpop.f32.mrb[145].mxu1 }
0x112f   : > { %v4448_v22 = vpop.f32.mrb[146].mxu1 }
0x1130   : > { %v4451_v40 = vadd.f32 3.0, %v4446_v14  ;;  %v6443_v52 = vpop.f32.mrb[147].mxu1 }
0x1132   : > { %v4452_v55 = vmax.f32 %v4451_v40, 0.0 }
0x1134   : > { %v4453_v56 = vmin.f32 %v4452_v55, 6.0 }
0x1136   : > { %v4454_v26 = vmul.f32 %v4453_v56, %v4446_v14 }
0x1138   : > { %v4455_v42 = vmul.f32 0.16666667, %v4454_v26 }
0x113a   : > { %v4456_v57 = vpack.c.bf16 %v4455_v42, %v4455_v42  ;;  %v6738_v42 = vld [vmem:[%s8152_s17 + $0x10] sm:$0xff]  }
0x113c   : > { %6453 = vmatmul.mubr.msk.bf16.vlgmr.msra.gmra.mrb[148].mxu1 %vm2461_vm11, %v4456_v57  ;;  %v6739_v57 = vld [vmem:[%s8152_s17 + $0x18] sm:$0xff]  }
0x113d   : > { %6471 = vmatprep.mubr.msk.f32.mxu1 %vm6778_vm13, %v6777_v47 }
0x120f   : > { %v4526_v63 = vpop.f32.mrb[148].mxu1 }
0x1210   : > { %v4532_v1 = vadd.f32 %v4526_v63, %v4383_v39  ;;  %v6454_v30 = vpop.f32.mrb[149].mxu1 }
0x1211   : > { %v4529_v31 = vpop.f32.mrb[150].mxu1 }
0x1212   : > { %v8018_v48 = vadd.f32 %v5627_v0, %v4532_v1  ;;  %v6455_v24 = vpop.f32.mrb[151].mxu1 }
0x1214   : > { %v4541_v44 = vpack.c.bf16 %v8018_v48, %v8018_v48 }
0x1216   : > { %6461 = vmatmul.mubr.msk.bf16.vlgmr.msra.gmra.mrb[136].mxu0 %vm2425_vm7, %v4541_v44  ;;  %v6740_v44 = vld [vmem:[%s8154_s19 + $0x20] sm:$0xff]  }
0x1217   : > { %6466 = vmatprep.mubr.msk.f32.mxu0 %vm6778_vm13, %v6777_v47 }
0x12e9   : > { %v4604_v60 = vpop.f32.mrb[136].mxu0 }
0x12ea   : > { %v4605_v62 = vadd.f32 %v5633_v23, %v4604_v60  ;;  %v6462_v2 = vpop.f32.mrb[137].mxu0  ;;  %v6742_v23 = vld [vmem:[%s8154_s19 + $0x30] sm:$0xff]   ;;  %v6743_v60 = vld [vmem:[%s8154_s19 + $0x38] sm:$0xff]  }
0x12eb   : > { %v4607_v53 = vpop.f32.mrb[138].mxu0 }
0x12ec   : > { %4781 = vrot.lane.b32.xlu0 %v4605_v62, %s8207_s25  ;;  %4613 = vrot.lane.b32.xlu1 %v4605_v62, %s8208_s7  ;;  %v6463_v54 = vpop.f32.mrb[139].mxu0 }
0x12f0   : > { %4779 = vrot.lane.b32.xlu1 %v4605_v62, %s8203_s0 }
0x135e   : > { %v4614_v41 = vpop.permute.xlu1 %4613  ;;  %v4782_v59 = vpop.permute.xlu0 %4781 }
0x135f   : > { %6465 = vmatpush3.xpose.msk.msra.mxu0 %vm2394_vm4, %v4614_v41 }
0x1360   : > { %6474 = vmatprep.subr.mxu0 %v6777_v47 }
0x1362   : > { %6467 = vmatmul.mubr.msk.f32.vlgmr.msra.gmra.mrb[140].mxu0 %vm2394_vm4, %v4605_v62  ;;  %v4780_v5 = vpop.permute.xlu1 %4779 }
0x1363   : > { %6475 = vmatpush3.xpose.msk.msra.mxu0 %vm2394_vm4, %v4782_v59  ;;  %6476 = vmatprep.mubr.msk.f32.mxu0 %vm6778_vm13, %v6777_v47 }
0x1364   : > { %6484 = vmatprep.subr.bf16.mxu0 %v6777_v47 }
0x1366   : > { %6477 = vmatmul.mubr.msk.f32.vlgmr.msra.gmra.mrb[142].mxu0 %vm2394_vm4, %v4780_v5  ;;  %vm5279_vm4 = vcmask 15360  }
0x1367   : > { %6488 = vmatprep.mubr.msk.bf16.mxu0 %vm6778_vm13, %v6777_v47  ;;  %6485 = vmatpush3.bf16.msra.mxu0 %v6736_v46 }
0x1368   : > { %6486 = vmatprep.subr.bf16.mxu0 %v6777_v47 }
0x136b   : > { %6487 = vmatpush3.bf16.msra.mxu0 %v6737_v49 }
0x136c   : > { %6500 = vmatprep.subr.bf16.mxu0 %v6777_v47 }
0x1435   : > { %v4685_v3 = vpop.f32.mrb[140].mxu0 }
0x1436   : > { %v4686_v4 = vadd.f32 %v5637_v43, %v4685_v3  ;;  %v6468_v6 = vpop.f32.mrb[141].mxu0 }
0x1438   : > { %v4689_v8 = vsel %vm4047_vm6, %v4686_v4, -inf }
0x1439   : > { %4690 = vmax.xlane.f32.xlu0 %v4689_v8  ;;  %v4853_v11 = vpop.f32.mrb[142].mxu0  ;;  %v5196_v8 = vld [vmem:[%s8156_s21 + $0x8] sm:$0xff] }
0x143a   : > { %v4854_v12 = vadd.f32 %v5642_v7, %v4853_v11  ;;  %v6478_v15 = vpop.f32.mrb[143].mxu0  ;;  %v5195_v7 = vld [vmem:[%s8156_s21] sm:$0xff] }
0x143b   : > { %v6524_v11 = vpack.c.bf16 %v5196_v8, %v5195_v7  ;;  %v5197_v15 = vld [vmem:[%s8156_s21 + $0x10] sm:$0xff] }
0x143c   : > { %v4857_v18 = vsel %vm4047_vm6, %v4854_v12, -inf }
0x143d   : > { %4858 = vmax.xlane.f32.xlu1 %v4857_v18  ;;  %v5198_v18 = vld [vmem:[%s8156_s21 + $0x18] sm:$0xff] }
0x144e   : > { %4700 = vrot.lane.b32.xlu1 %v4605_v62, %s8205_s27 }
0x14c6   : > { %v4691_v19 = vpop.xlane.xlu0 %4690 }
0x14c7   : > { %v4692_v25 = vsub.f32 %v4686_v4, %v4691_v19  ;;  %v6527_v19 = vpack.c.bf16 %v5198_v18, %v5197_v15 }
0x14c9   : > { %v4693_v16 = vmul.f32 1.442695, %v4692_v25 }
0x14ca   : > { %v4859_v29 = vpop.xlane.xlu1 %4858 }
0x14cb   : > { %6752 = vpow2.f32 %v4693_v16  ;;  %v4860_v9 = vsub.f32 %v4854_v12, %v4859_v29  ;;  %v6786_v12 = vmov 0.0|0.0   ;;  %v5679_v16 = vld [vmem:[%s8155_s20 + $0x1] ss:$0 sm:$0xff] }
0x14cd   : > { %v4861_v13 = vmul.f32 1.442695, %v4860_v9 }
0x14ce   : > { %v4701_v21 = vpop.permute.xlu1 %4700 }
0x14cf   : > { %6754 = vpow2.f32 %v4861_v13  ;;  %6470 = vmatpush3.msk.msra.mxu1 %vm2522_vm3, %v4701_v21 }
0x14d0   : > { %6479 = vmatprep.subr.mxu1 %v6777_v47 }
0x14d5   : > { %v6753_v36 = vpop.eup %6752 }
0x14d6   : > { %v4695_v32 = vsel %vm4047_vm6, %v6753_v36, 0.0 }
0x14d7   : > { %4696 = vadd.xlane.f32.xlu0 %v4695_v32 }
0x14d9   : > { %v6755_v28 = vpop.eup %6754 }
0x14da   : > { %v4863_v33 = vsel %vm4047_vm6, %v6755_v28, 0.0 }
0x14db   : > { %4864 = vadd.xlane.f32.xlu0 %v4863_v33 }
0x14f1   : > { %4868 = vrot.lane.b32.xlu0 %v4605_v62, %s8206_s26  ;;  %v5661_v62 = vld [vmem:[%s8153_s18 + $0x1] ss:$0 sm:$0xff] }
0x1564   : > { %v4697_v35 = vpop.xlane.xlu0 %4696 }
0x1565   : > { %6756 = vrcp.f32 %v4697_v35 }
0x1568   : > { %v4865_v45 = vpop.xlane.xlu0 %4864 }
0x1569   : > { %6758 = vrcp.f32 %v4865_v45 }
0x156c   : > { %v4869_v39 = vpop.permute.xlu0 %4868 }
0x156f   : > { %v6757_v10 = vpop.eup %6756 }
0x1570   : > { %v4699_v17 = vmul.f32 %v6757_v10, %v6753_v36 }
0x1572   : > { %6472 = vmatmul.mubr.msk.f32.vlgmr.msra.gmra.mrb[152].mxu1 %vm4061_vm8, %v4699_v17 }
0x1573   : > { %v6759_v34 = vpop.eup %6758  ;;  %6480 = vmatpush3.msk.msra.mxu1 %vm2522_vm3, %v4869_v39  ;;  %6481 = vmatprep.mubr.msk.f32.mxu1 %vm6778_vm13, %v6777_v47  ;;  %vm5187_vm3 = vcmask 257024   ;;  %v5680_v39 = vld [vmem:[%s8157_s22] ss:$0 sm:$0xff] }
0x1574   : > { %v4867_v37 = vmul.f32 %v6759_v34, %v6755_v28  ;;  %6492 = vmatprep.subr.bf16.mxu1 %v6777_v47 }
0x1576   : > { %6482 = vmatmul.mubr.msk.f32.vlgmr.msra.gmra.mrb[154].mxu1 %vm4061_vm8, %v4867_v37 }
0x1577   : > { %6496 = vmatprep.mubr.msk.bf16.mxu1 %vm6778_vm13, %v6777_v47  ;;  %6493 = vmatpush3.bf16.msra.mxu1 %v6738_v42 }
0x1578   : > { %6494 = vmatprep.subr.bf16.mxu1 %v6777_v47 }
0x157b   : > { %6495 = vmatpush3.bf16.msra.mxu1 %v6739_v57 }
0x157c   : > { %6523 = vmatprep.subr.bf16.mxu1 %v6786_v12 }
0x1645   : > { %v4773_v50 = vpop.f32.mrb[152].mxu1 }
0x1646   : > { %v6473_v38 = vpop.f32.mrb[153].mxu1 }
0x1649   : > { %v4941_v27 = vpop.f32.mrb[154].mxu1 }
0x164a   : > { %4946 = vrot.lane.b32.xlu1 %v4941_v27, %s8202_s3  ;;  %v6483_v51 = vpop.f32.mrb[155].mxu1 }
0x16bc   : > { %v4947_v14 = vpop.permute.xlu1 %4946 }
0x16bd   : > { %v4949_v20 = vsel %vm2407_vm5, %v4773_v50, %v4947_v14 }
0x16be   : > { %v4950_v22 = vadd.f32 3.0, %v4949_v20 }
0x16c0   : > { %v4951_v40 = vmax.f32 %v4950_v22, 0.0 }
0x16c2   : > { %v4952_v52 = vmin.f32 %v4951_v40, 6.0 }
0x16c4   : > { %v4953_v55 = vmul.f32 %v4952_v52, %v4949_v20 }
0x16c6   : > { %v4954_v56 = vmul.f32 0.16666667, %v4953_v55 }
0x16c8   : > { %v4955_v26 = vpack.c.bf16 %v4954_v56, %v4954_v56 }
0x16ca   : > { %6489 = vmatmul.mubr.msk.bf16.vlgmr.msra.gmra.mrb[144].mxu0 %vm2425_vm7, %v4955_v26 }
0x16cb   : > { %6508 = vmatprep.mubr.msk.bf16.mxu0 %vm6778_vm13, %v6777_v47  ;;  %6501 = vmatpush3.bf16.msra.mxu0 %v6740_v44 }
0x16cc   : > { %6502 = vmatprep.subr.bf16.mxu0 %v6777_v47 }
0x179d   : > { %v5010_v58 = vpop.f32.mrb[144].mxu0 }
0x179e   : > { %v5016_v63 = vadd.f32 %v5010_v58, %v8018_v48  ;;  %v6490_v0 = vpop.f32.mrb[145].mxu0  ;;  %v6741_v48 = vld [vmem:[%s8154_s19 + $0x28] sm:$0xff]  }
0x179f   : > { %v5013_v1 = vpop.f32.mrb[146].mxu0  ;;  %6503 = vmatpush3.bf16.msra.mxu0 %v6741_v48 }
0x17a0   : > { %v5025_v30 = vadd.f32 %v5655_v61, %v5016_v63  ;;  %v6491_v31 = vpop.f32.mrb[147].mxu0  ;;  %6504 = vmatprep.subr.bf16.mxu0 %v6777_v47 }
0x17a2   : > { %v5026_v24 = vpack.c.bf16 %v5025_v30, %v5025_v30 }
0x17a3   : > { %6505 = vmatpush3.bf16.msra.mxu0 %v6742_v23 }
0x17a4   : > { %6497 = vmatmul.mubr.msk.bf16.vlgmr.msra.gmra.mrb[156].mxu1 %vm2425_vm7, %v5026_v24  ;;  %6506 = vmatprep.subr.bf16.mxu0 %v6777_v47 }
0x17a5   : > { %6520 = vmatprep.mubr.msk.f32.mxu1 %vm6778_vm13, %v6777_v47  ;;  %6525 = vmatpush3.bf16.msra.mxu1 %v6524_v11 }
0x17a6   : > { %6526 = vmatprep.subr.bf16.mxu1 %v6786_v12 }
0x17a7   : > { %6507 = vmatpush3.bf16.msra.mxu0 %v6743_v60 }
0x17a9   : > { %6528 = vmatpush3.bf16.msra.mxu1 %v6527_v19 }
0x1877   : > { %v5089_v2 = vpop.f32.mrb[156].mxu1 }
0x1878   : > { %v5090_v53 = vadd.f32 %v5661_v62, %v5089_v2  ;;  %v6498_v54 = vpop.f32.mrb[157].mxu1 }
0x1879   : > { %v5092_v41 = vpop.f32.mrb[158].mxu1 }
0x187a   : > { %v5095_v59 = vadd.f32 3.0, %v5090_v53  ;;  %v6499_v5 = vpop.f32.mrb[159].mxu1 }
0x187c   : > { %v5096_v43 = vmax.f32 %v5095_v59, 0.0 }
0x187e   : > { %v5097_v3 = vmin.f32 %v5096_v43, 6.0 }
0x1880   : > { %v5098_v4 = vmul.f32 %v5097_v3, %v5090_v53 }
0x1882   : > { %v5099_v6 = vmul.f32 0.16666667, %v5098_v4 }
0x1884   : > { %v5100_v47 = vpack.c.bf16 %v5099_v6, %v5099_v6 }
0x1886   : > { %6509 = vmatmul.mubr.msk.bf16.vlgmr.msra.gmra.mrb[148].mxu0 %vm2461_vm11, %v5100_v47 }
0x1959   : > { %v5171_v25 = vpop.f32.mrb[148].mxu0 }
0x195a   : > { %v5177_v29 = vadd.f32 %v5171_v25, %v5025_v30  ;;  %v6510_v9 = vpop.f32.mrb[149].mxu0 }
0x195b   : > { %v5174_v13 = vpop.f32.mrb[150].mxu0 }
0x195c   : > { %v5186_v21 = vadd.f32 %v5679_v16, %v5177_v29  ;;  %v6511_v36 = vpop.f32.mrb[151].mxu0 }
0x195e   : > { %v5188_v32 = vsel %vm5187_vm3, %v5186_v21, 0.0 }
0x195f   : > { %v5189_v28 = vrot.slane %v5188_v32, 4 }
0x1961   : > { %v5190_v33 = vadd.f32 %v5189_v28, %v5188_v32 }
0x1963   : > { %v5191_v35 = vrot.slane %v5190_v33, 2 }
0x1965   : > { %v5192_v45 = vadd.f32 %v5191_v35, %v5190_v33 }
0x1967   : > { %v5193_v10 = vrot.slane %v5192_v45, 1 }
0x1969   : > { %v5194_v17 = vadd.f32 %v5193_v10, %v5192_v45 }
0x196b   : > { %6521 = vmatmul.mubr.msk.f32.vlgmr.msra.gmra.mrb[160].mxu1 %vm2425_vm7, %v5194_v17 }
0x1a3e   : > { %v5275_v34 = vpop.f32.mrb[160].mxu1 }
0x1a3f   : > { %v5276_v37 = vadd.f32 %v5680_v39, %v5275_v34  ;;  %v6522_v46 = vpop.f32.mrb[161].mxu1 }
0x1a41   : > { %5280 = vst.msk [vmem:[%s708_s1] sm:$0xff] %vm5279_vm4, %v5276_v37 }
0x1a42 PF: > { %s33_s4 = sadd.s32 1, %s6766_s4  }
0x1a43   : > { %p30_p4 = scmp.ge.s32.totalorder %s33_s4, 4  }
0x1a45   :  { %32 = sbr.rel (!%p30_p4) target bundleno = 9 (0x9), region = 177 }

</bundles_post_ra>
